<compile_context>
chip_gen: v7x
topology: tpu7x:2x2x1
jax: 0.10.0
libtpu: 0.0.40
codegen_flags: <defaults>
</compile_context>

<pallas_src>
import functools

import jax
import jax.numpy as jnp
from jax.experimental import pallas as pl
from jax.experimental.pallas import tpu as pltpu

HIDDEN = 400   # fixed by the module definition
HP = 512       # zero-padded hidden width (multiple of 128); exact through ReLU


def _round_up(n, m):
    return ((n + m - 1) // m) * m


def _mlp_kernel(xt_ref, zt_ref, w1x_ref, w1z_ref, b1_ref, w2_ref, b2_ref,
                w3_ref, b3_ref, w4_ref, b4_ref, o_ref):
    """One batch tile, feature-major: activations are [HP, TB] (batch on lanes)."""
    f32 = jnp.float32
    bf16 = jnp.bfloat16

    # Layer 1: implicit concat([x, z]) -- h^T = W1x^T @ x^T + W1z^T @ z^T + b1
    h = (jnp.dot(w1x_ref[...], xt_ref[...], preferred_element_type=f32)
         + jnp.dot(w1z_ref[...], zt_ref[...], preferred_element_type=f32)
         + b1_ref[...])
    h = jnp.maximum(h, 0.0)                                           # [HP, TB] f32

    h = jnp.dot(w2_ref[...], h.astype(bf16), preferred_element_type=f32) + b2_ref[...]
    h = jnp.maximum(h, 0.0)                                           # [HP, TB]

    h = jnp.dot(w3_ref[...], h.astype(bf16), preferred_element_type=f32) + b3_ref[...]
    h = jnp.maximum(h, 0.0)                                           # [HP, TB]

    # Layer 4: lane-dense [1, TB] row, no transposes anywhere in the kernel.
    o_ref[...] = (jnp.dot(w4_ref[...], h.astype(bf16), preferred_element_type=f32)
                  + b4_ref[...])


@functools.partial(jax.jit, static_argnames=("tile_b",))
def base_model_forward(x, z, params, *, tile_b=1024):
    """Pallas forward pass. x:[B,Dx], z:[B,Dz] -> [B,1] (float32)."""
    w1, b1, w2, b2, w3, b3, w4, b4 = params
    B, dx = x.shape
    dz = z.shape[1]
    assert w1.shape == (dx + dz, HIDDEN)

    # Batch tile: multiple of 128, clamped to the padded batch; keep >= 2 grid
    # steps whenever b128 >= 256 so both v7x TensorCores get work.
    b128 = _round_up(B, 128)
    tb = min(_round_up(tile_b, 128), b128)
    if b128 >= 256:
        tb = min(tb, _round_up(-(-b128 // 2), 128))
    b_pad = _round_up(B, tb)

    if b_pad != B:
        x = jnp.pad(x, ((0, b_pad - B), (0, 0)))
        z = jnp.pad(z, ((0, b_pad - B), (0, 0)))

    # Feature-major bf16 batch tiles: [D, B_pad] with batch on the lane axis.
    xt = x.T.astype(jnp.bfloat16)
    zt = z.T.astype(jnp.bfloat16)

    # Weights in [out, in] layout, W1 pre-split, hidden zero-padded to HP,
    # stored bf16 (MXU operands). Biases stay f32 as [HP, 1] columns.
    def pad2(a, rows, cols):
        r, c = a.shape
        return jnp.pad(a, ((0, rows - r), (0, cols - c)))

    w1xT = pad2(w1[:dx].T, HP, dx).astype(jnp.bfloat16)      # [HP, dx]
    w1zT = pad2(w1[dx:].T, HP, dz).astype(jnp.bfloat16)      # [HP, dz]
    w2T = pad2(w2.T, HP, HP).astype(jnp.bfloat16)            # [HP, HP]
    w3T = pad2(w3.T, HP, HP).astype(jnp.bfloat16)            # [HP, HP]
    w4T = pad2(w4.T, 1, HP).astype(jnp.bfloat16)             # [1, HP]
    b1c = pad2(b1.reshape(HIDDEN, 1), HP, 1)                 # [HP, 1] f32
    b2c = pad2(b2.reshape(HIDDEN, 1), HP, 1)
    b3c = pad2(b3.reshape(HIDDEN, 1), HP, 1)
    b4c = b4.reshape(1, 1)                                   # [1, 1] f32

    grid = (b_pad // tb,)

    def rep(arr):
        shape = arr.shape
        nd = len(shape)
        return pl.BlockSpec(shape, lambda i, nd=nd: (0,) * nd)

    out = pl.pallas_call(
        _mlp_kernel,
        out_shape=jax.ShapeDtypeStruct((1, b_pad), jnp.float32),
        grid_spec=pltpu.PrefetchScalarGridSpec(
            num_scalar_prefetch=0,
            grid=grid,
            in_specs=[
                pl.BlockSpec((dx, tb), lambda i: (0, i)),    # x^T batch tile
                pl.BlockSpec((dz, tb), lambda i: (0, i)),    # z^T batch tile
                rep(w1xT), rep(w1zT), rep(b1c),
                rep(w2T), rep(b2c),
                rep(w3T), rep(b3c),
                rep(w4T), rep(b4c),
            ],
            out_specs=pl.BlockSpec((1, tb), lambda i: (0, i)),
        ),
        compiler_params=pltpu.CompilerParams(
            dimension_semantics=("parallel",),
            vmem_limit_bytes=40 * 1024 * 1024,
        ),
    )(xt, zt, w1xT, w1zT, b1c, w2T, b2c, w3T, b3c, w4T, b4c)

    # (1, B_pad) lane-dense row -> (B, 1) column, dropping padded rows.
    return out.reshape(b_pad, 1)[:B]


def init_params(key, x_dim, z_dim):
    """Deterministic init mimicking nn.Linear's default (uniform +/- 1/sqrt(fan_in))."""
    din = x_dim + z_dim
    dims = [(din, HIDDEN), (HIDDEN, HIDDEN), (HIDDEN, HIDDEN), (HIDDEN, 1)]
    params = []
    for (fan_in, fan_out) in dims:
        key, kw, kb = jax.random.split(key, 3)
        bound = 1.0 / (fan_in ** 0.5)
        w = jax.random.uniform(kw, (fan_in, fan_out), jnp.float32, -bound, bound)
        b = jax.random.uniform(kb, (1, fan_out), jnp.float32, -bound, bound)
        params.extend([w, b])
    return tuple(params)


def reference_forward(x, z, params):
    """Pure-JAX reference using the same bf16-operand / f32-accumulate recipe."""
    w1, b1, w2, b2, w3, b3, w4, b4 = params
    bf16 = jnp.bfloat16

    def mm(a, w):
        return jnp.dot(a.astype(bf16), w.astype(bf16),
                       preferred_element_type=jnp.float32)

    h = jnp.concatenate([x, z], axis=-1)
    h = jnp.maximum(mm(h, w1) + b1, 0.0)
    h = jnp.maximum(mm(h, w2) + b2, 0.0)
    h = jnp.maximum(mm(h, w3) + b3, 0.0)
    return mm(h, w4) + b4


if __name__ == "__main__":
    key = jax.random.PRNGKey(0)
    B, x_dim, z_dim = 16, 16, 8

    k_params, kx, kz = jax.random.split(key, 3)
    params = init_params(k_params, x_dim, z_dim)
    x = jax.random.normal(kx, (B, x_dim), jnp.float32)
    z = jax.random.normal(kz, (B, z_dim), jnp.float32)

    out = base_model_forward(x, z, params)
    out = jax.block_until_ready(out)

    ref = reference_forward(x, z, params)
    assert out.shape == (B, 1), out.shape
    assert jnp.allclose(out, ref, atol=2e-3, rtol=2e-3), "mismatch vs reference"

    print("KERNEL_OK")
</pallas_src>

<mosaic_0001>
module attributes {stable_mosaic.version = 11 : i64} {
  func.func @_mlp_kernel(%arg0: i32, %arg1: memref<16x128xbf16, #tpu.memory_space<vmem>>, %arg2: memref<8x128xbf16, #tpu.memory_space<vmem>>, %arg3: memref<512x16xbf16, #tpu.memory_space<vmem>>, %arg4: memref<512x8xbf16, #tpu.memory_space<vmem>>, %arg5: memref<512x1xf32, #tpu.memory_space<vmem>>, %arg6: memref<512x512xbf16, #tpu.memory_space<vmem>>, %arg7: memref<512x1xf32, #tpu.memory_space<vmem>>, %arg8: memref<512x512xbf16, #tpu.memory_space<vmem>>, %arg9: memref<512x1xf32, #tpu.memory_space<vmem>>, %arg10: memref<1x512xbf16, #tpu.memory_space<vmem>>, %arg11: memref<1x1xf32, #tpu.memory_space<vmem>>, %arg12: memref<1x128xf32, #tpu.memory_space<vmem>>) attributes {dimension_semantics = [#tpu.dimension_semantics<parallel>], iteration_bounds = array<i64: 1>, scalar_prefetch = 0 : i64, scratch_operands = 0 : i64, tpu.core_type = #tpu.core_type<tc>, window_params = [{transform_indices = @transform_0, window_bounds = array<i64: 16, 128>}, {transform_indices = @transform_1, window_bounds = array<i64: 8, 128>}, {pipeline_mode = #tpu.pipeline_mode<synchronous>, transform_indices = @transform_2, window_bounds = array<i64: 512, 16>}, {pipeline_mode = #tpu.pipeline_mode<synchronous>, transform_indices = @transform_3, window_bounds = array<i64: 512, 8>}, {pipeline_mode = #tpu.pipeline_mode<synchronous>, transform_indices = @transform_4, window_bounds = array<i64: 512, 1>}, {pipeline_mode = #tpu.pipeline_mode<synchronous>, transform_indices = @transform_5, window_bounds = array<i64: 512, 512>}, {pipeline_mode = #tpu.pipeline_mode<synchronous>, transform_indices = @transform_6, window_bounds = array<i64: 512, 1>}, {pipeline_mode = #tpu.pipeline_mode<synchronous>, transform_indices = @transform_7, window_bounds = array<i64: 512, 512>}, {pipeline_mode = #tpu.pipeline_mode<synchronous>, transform_indices = @transform_8, window_bounds = array<i64: 512, 1>}, {pipeline_mode = #tpu.pipeline_mode<synchronous>, transform_indices = @transform_9, window_bounds = array<i64: 1, 512>}, {pipeline_mode = #tpu.pipeline_mode<synchronous>, transform_indices = @transform_10, window_bounds = array<i64: 1, 1>}, {transform_indices = @transform_11, window_bounds = array<i64: 1, 128>}]} {
    %c0 = arith.constant 0 : index
    %c0_0 = arith.constant 0 : index
    %0 = vector.load %arg3[%c0, %c0_0] : memref<512x16xbf16, #tpu.memory_space<vmem>>, vector<512x16xbf16>
    %c0_1 = arith.constant 0 : index
    %c0_2 = arith.constant 0 : index
    %1 = vector.load %arg1[%c0_1, %c0_2] : memref<16x128xbf16, #tpu.memory_space<vmem>>, vector<16x128xbf16>
    %cst = arith.constant dense<0.000000e+00> : vector<512x128xf32>
    %2 = tpu.matmul %0, %1, %cst {dimension_numbers = #tpu.dot_dimension_numbers<[1], [0], [0], [1], [0, 0, 1, 1], [], []>} : vector<512x16xbf16>, vector<16x128xbf16>, vector<512x128xf32> -> vector<512x128xf32>
    %c0_3 = arith.constant 0 : index
    %c0_4 = arith.constant 0 : index
    %3 = vector.load %arg4[%c0_3, %c0_4] : memref<512x8xbf16, #tpu.memory_space<vmem>>, vector<512x8xbf16>
    %c0_5 = arith.constant 0 : index
    %c0_6 = arith.constant 0 : index
    %4 = vector.load %arg2[%c0_5, %c0_6] : memref<8x128xbf16, #tpu.memory_space<vmem>>, vector<8x128xbf16>
    %cst_7 = arith.constant dense<0.000000e+00> : vector<512x128xf32>
    %5 = tpu.matmul %3, %4, %cst_7 {dimension_numbers = #tpu.dot_dimension_numbers<[1], [0], [0], [1], [0, 0, 1, 1], [], []>} : vector<512x8xbf16>, vector<8x128xbf16>, vector<512x128xf32> -> vector<512x128xf32>
    %6 = arith.addf %2, %5 : vector<512x128xf32>
    %c0_8 = arith.constant 0 : index
    %c0_9 = arith.constant 0 : index
    %7 = vector.load %arg5[%c0_8, %c0_9] : memref<512x1xf32, #tpu.memory_space<vmem>>, vector<512x1xf32>
    %8 = vector.broadcast %7 : vector<512x1xf32> to vector<512x128xf32>
    %9 = arith.addf %6, %8 : vector<512x128xf32>
    %cst_10 = arith.constant 0.000000e+00 : f32
    %10 = vector.broadcast %cst_10 : f32 to vector<512x128xf32>
    %11 = arith.maximumf %9, %10 : vector<512x128xf32>
    %c0_11 = arith.constant 0 : index
    %c0_12 = arith.constant 0 : index
    %12 = vector.load %arg6[%c0_11, %c0_12] : memref<512x512xbf16, #tpu.memory_space<vmem>>, vector<512x512xbf16>
    %13 = arith.truncf %11 : vector<512x128xf32> to vector<512x128xbf16>
    %cst_13 = arith.constant dense<0.000000e+00> : vector<512x128xf32>
    %14 = tpu.matmul %12, %13, %cst_13 {dimension_numbers = #tpu.dot_dimension_numbers<[1], [0], [0], [1], [0, 0, 1, 1], [], []>} : vector<512x512xbf16>, vector<512x128xbf16>, vector<512x128xf32> -> vector<512x128xf32>
    %c0_14 = arith.constant 0 : index
    %c0_15 = arith.constant 0 : index
    %15 = vector.load %arg7[%c0_14, %c0_15] : memref<512x1xf32, #tpu.memory_space<vmem>>, vector<512x1xf32>
    %16 = vector.broadcast %15 : vector<512x1xf32> to vector<512x128xf32>
    %17 = arith.addf %14, %16 : vector<512x128xf32>
    %cst_16 = arith.constant 0.000000e+00 : f32
    %18 = vector.broadcast %cst_16 : f32 to vector<512x128xf32>
    %19 = arith.maximumf %17, %18 : vector<512x128xf32>
    %c0_17 = arith.constant 0 : index
    %c0_18 = arith.constant 0 : index
    %20 = vector.load %arg8[%c0_17, %c0_18] : memref<512x512xbf16, #tpu.memory_space<vmem>>, vector<512x512xbf16>
    %21 = arith.truncf %19 : vector<512x128xf32> to vector<512x128xbf16>
    %cst_19 = arith.constant dense<0.000000e+00> : vector<512x128xf32>
    %22 = tpu.matmul %20, %21, %cst_19 {dimension_numbers = #tpu.dot_dimension_numbers<[1], [0], [0], [1], [0, 0, 1, 1], [], []>} : vector<512x512xbf16>, vector<512x128xbf16>, vector<512x128xf32> -> vector<512x128xf32>
    %c0_20 = arith.constant 0 : index
    %c0_21 = arith.constant 0 : index
    %23 = vector.load %arg9[%c0_20, %c0_21] : memref<512x1xf32, #tpu.memory_space<vmem>>, vector<512x1xf32>
    %24 = vector.broadcast %23 : vector<512x1xf32> to vector<512x128xf32>
    %25 = arith.addf %22, %24 : vector<512x128xf32>
    %cst_22 = arith.constant 0.000000e+00 : f32
    %26 = vector.broadcast %cst_22 : f32 to vector<512x128xf32>
    %27 = arith.maximumf %25, %26 : vector<512x128xf32>
    %c0_23 = arith.constant 0 : index
    %c0_24 = arith.constant 0 : index
    %28 = vector.load %arg10[%c0_23, %c0_24] : memref<1x512xbf16, #tpu.memory_space<vmem>>, vector<1x512xbf16>
    %29 = arith.truncf %27 : vector<512x128xf32> to vector<512x128xbf16>
    %cst_25 = arith.constant dense<0.000000e+00> : vector<1x128xf32>
    %30 = tpu.matmul %28, %29, %cst_25 {dimension_numbers = #tpu.dot_dimension_numbers<[1], [0], [0], [1], [0, 0, 1, 1], [], []>} : vector<1x512xbf16>, vector<512x128xbf16>, vector<1x128xf32> -> vector<1x128xf32>
    %c0_26 = arith.constant 0 : index
    %c0_27 = arith.constant 0 : index
    %31 = vector.load %arg11[%c0_26, %c0_27] : memref<1x1xf32, #tpu.memory_space<vmem>>, vector<1x1xf32>
    %32 = vector.broadcast %31 : vector<1x1xf32> to vector<1x128xf32>
    %33 = arith.addf %30, %32 : vector<1x128xf32>
    %c0_28 = arith.constant 0 : index
    %c0_29 = arith.constant 0 : index
    %34 = vector.load %arg12[%c0_28, %c0_29] : memref<1x128xf32, #tpu.memory_space<vmem>>, vector<1x128xf32>
    tpu.vector_store %arg12[%c0_28, %c0_29], %33 {strides = array<i32>} : memref<1x128xf32, #tpu.memory_space<vmem>>, vector<1x128xf32>,
    return
  }
  func.func @transform_0(%arg0: i32) -> (i32, i32) {
    %c0_i32 = arith.constant 0 : i32
    %c0_i32_0 = arith.constant 0 : i32
    return %c0_i32, %arg0 : i32, i32
  }
  func.func @transform_1(%arg0: i32) -> (i32, i32) {
    %c0_i32 = arith.constant 0 : i32
    %c0_i32_0 = arith.constant 0 : i32
    return %c0_i32, %arg0 : i32, i32
  }
  func.func @transform_2(%arg0: i32) -> (i32, i32) {
    %c0_i32 = arith.constant 0 : i32
    %c0_i32_0 = arith.constant 0 : i32
    %c0_i32_1 = arith.constant 0 : i32
    return %c0_i32, %c0_i32_0 : i32, i32
  }
  func.func @transform_3(%arg0: i32) -> (i32, i32) {
    %c0_i32 = arith.constant 0 : i32
    %c0_i32_0 = arith.constant 0 : i32
    %c0_i32_1 = arith.constant 0 : i32
    return %c0_i32, %c0_i32_0 : i32, i32
  }
  func.func @transform_4(%arg0: i32) -> (i32, i32) {
    %c0_i32 = arith.constant 0 : i32
    %c0_i32_0 = arith.constant 0 : i32
    %c0_i32_1 = arith.constant 0 : i32
    return %c0_i32, %c0_i32_0 : i32, i32
  }
  func.func @transform_5(%arg0: i32) -> (i32, i32) {
    %c0_i32 = arith.constant 0 : i32
    %c0_i32_0 = arith.constant 0 : i32
    %c0_i32_1 = arith.constant 0 : i32
    return %c0_i32, %c0_i32_0 : i32, i32
  }
  func.func @transform_6(%arg0: i32) -> (i32, i32) {
    %c0_i32 = arith.constant 0 : i32
    %c0_i32_0 = arith.constant 0 : i32
    %c0_i32_1 = arith.constant 0 : i32
    return %c0_i32, %c0_i32_0 : i32, i32
  }
  func.func @transform_7(%arg0: i32) -> (i32, i32) {
    %c0_i32 = arith.constant 0 : i32
    %c0_i32_0 = arith.constant 0 : i32
    %c0_i32_1 = arith.constant 0 : i32
    return %c0_i32, %c0_i32_0 : i32, i32
  }
  func.func @transform_8(%arg0: i32) -> (i32, i32) {
    %c0_i32 = arith.constant 0 : i32
    %c0_i32_0 = arith.constant 0 : i32
    %c0_i32_1 = arith.constant 0 : i32
    return %c0_i32, %c0_i32_0 : i32, i32
  }
  func.func @transform_9(%arg0: i32) -> (i32, i32) {
    %c0_i32 = arith.constant 0 : i32
    %c0_i32_0 = arith.constant 0 : i32
    %c0_i32_1 = arith.constant 0 : i32
    return %c0_i32, %c0_i32_0 : i32, i32
  }
  func.func @transform_10(%arg0: i32) -> (i32, i32) {
    %c0_i32 = arith.constant 0 : i32
    %c0_i32_0 = arith.constant 0 : i32
    %c0_i32_1 = arith.constant 0 : i32
    return %c0_i32, %c0_i32_0 : i32, i32
  }
  func.func @transform_11(%arg0: i32) -> (i32, i32) {
    %c0_i32 = arith.constant 0 : i32
    %c0_i32_0 = arith.constant 0 : i32
    return %c0_i32, %arg0 : i32, i32
  }
}

</mosaic_0001>

<bundles_post_ra>
// kernel: base_model_forward.1
= control target key start
LH: loop header
LB: loop body
LE: loop exit
PB: predicated region body
PF: predicated region fallthrough
CT: control target
= control target key end

     0   :  { %vm429_vm0 = vcmask 1043456   ;;  %v9485_v0 = vmov 0   ;;  %vm332_vm1 = vcmask 64512   ;;  %vm888_vm2 = vcmask 130048   ;;  %s9473_s4 = inlined_call_operand.vmem [shape: f32[512,1], index: 4, kind: input, shape index: {}]   ;;  %s9474_s1 = inlined_call_operand.vmem [shape: bf16[8,128], index: 1, kind: input, shape index: {}]   ;;  %s9475_s3 = inlined_call_operand.vmem [shape: bf16[512,8], index: 3, kind: input, shape index: {}]   ;;  %s9476_s0 = inlined_call_operand.vmem [shape: bf16[16,128], index: 0, kind: input, shape index: {}]   ;;  %s9477_s2 = inlined_call_operand.vmem [shape: bf16[512,16], index: 2, kind: input, shape index: {}]   ;;  %s9478_s6 = inlined_call_operand.vmem [shape: f32[512,1], index: 6, kind: input, shape index: {}]   ;;  %s9479_s5 = inlined_call_operand.vmem [shape: bf16[512,512], index: 5, kind: input, shape index: {}]   ;;  %s9480_s10 = inlined_call_operand.<no memory space> [shape: f32[1,1], index: 10, kind: input, shape index: {}]   ;;  %s9481_s8 = inlined_call_operand.vmem [shape: f32[512,1], index: 8, kind: input, shape index: {}]   ;;  %s9482_s7 = inlined_call_operand.vmem [shape: bf16[512,512], index: 7, kind: input, shape index: {}]   ;;  %s9483_s9 = inlined_call_operand.vmem [shape: bf16[1,512], index: 9, kind: input, shape index: {}]   ;;  %s9484_s11 = inlined_call_operand.vmem [shape: f32[1,128], index: 11, kind: output, shape index: {}]  }
   0x1   :  { %6678 = vset.pattern.permute.xlu1 %v9485_v0  ;;  %6677 = vset.pattern.permute.xlu0 %v9485_v0  ;;  %v1276_v1 = vld [vmem:[%s9473_s4 + $0x10] sm:$0xff]  ;;  %v1274_v2 = vld [vmem:[%s9473_s4] sm:$0xff]  ;;  %v1277_v6 = vld [vmem:[%s9473_s4 + $0x18] sm:$0xff] }
   0x2   :  { %v171_v3 = vld [vmem:[%s9474_s1] sm:$0xf]  ;;  %1350 = vperm.xlu1 %6678, %v1276_v1   ;;  %1340 = vperm.xlu0 %6677, %v1274_v2   ;;  %v1275_v7 = vld [vmem:[%s9473_s4 + $0x8] sm:$0xff]  ;;  %v6681_v10 = vld [vmem:[%s9475_s3 + $0x10] sm:$0xff]  }
   0x3   :  { %v431_v4 = vsel %vm429_vm0, %v171_v3, 0  ;;  %v6679_v5 = vld [vmem:[%s9475_s3] sm:$0xff]   ;;  %6673 = vmatprep.subr.msk.bf16.mxu0 %vm429_vm0, %v171_v3  ;;  %6674 = vmatprep.subr.msk.bf16.mxu1 %vm429_vm0, %v171_v3  ;;  %v6680_v8 = vld [vmem:[%s9475_s3 + $0x8] sm:$0xff]   ;;  %v1281_v12 = vld [vmem:[%s9473_s4 + $0x38] sm:$0xff] }
   0x4   :  { %6092 = vmatpush3.bf16.msra.mxu0 %v431_v4  ;;  %6093 = vmatprep.mubr.msk.bf16.mxu0 %vm332_vm1, %v6679_v5  ;;  %v1279_v9 = vld [vmem:[%s9473_s4 + $0x28] sm:$0xff]  ;;  %v1278_v11 = vld [vmem:[%s9473_s4 + $0x20] sm:$0xff]  ;;  %v1280_v13 = vld [vmem:[%s9473_s4 + $0x30] sm:$0xff] }
   0x5   :  { %6224 = vmatpush3.bf16.msra.mxu1 %v431_v4  ;;  %v6682_v14 = vld [vmem:[%s9475_s3 + $0x18] sm:$0xff]   ;;  %v6683_v15 = vld [vmem:[%s9475_s3 + $0x20] sm:$0xff]   ;;  %v1283_v17 = vld [vmem:[%s9473_s4 + $0x48] sm:$0xff] }
   0x6   :  { %1355 = vperm.xlu1 %6678, %v1277_v6   ;;  %1345 = vperm.xlu0 %6677, %v1275_v7   ;;  %v6685_v16 = vld [vmem:[%s9476_s0] sm:$0xff]   ;;  %v1285_v19 = vld [vmem:[%s9473_s4 + $0x58] sm:$0xff]  ;;  %v1284_v20 = vld [vmem:[%s9473_s4 + $0x50] sm:$0xff] }
   0x7   :  { %6094 = vmatmul.mubr.msk.bf16.vlgmr.msra.gmra.mrb[0].mxu0 %vm332_vm1, %v6680_v8  ;;  %2970 = vmatprep.subr.bf16.mxu1 %v9485_v0  ;;  %v1282_v18 = vld [vmem:[%s9473_s4 + $0x40] sm:$0xff]  ;;  %v6684_v21 = vld [vmem:[%s9475_s3 + $0x28] sm:$0xff]   ;;  %v6692_v25 = vld [vmem:[%s9475_s3 + $0x30] sm:$0xff]  }
   0x8   :  { %6097 = vmatprep.mubr.msk.bf16.mxu0 %vm332_vm1, %v6681_v10  ;;  %6157 = vmatprep.subr.bf16.mxu0 %v6685_v16  ;;  %v6686_v22 = vld [vmem:[%s9477_s2] sm:$0xff]   ;;  %v1287_v23 = vld [vmem:[%s9473_s4 + $0x68] sm:$0xff]  ;;  %v6693_v26 = vld [vmem:[%s9475_s3 + $0x38] sm:$0xff]  }
   0x9   :  { %6158 = vmatpush3.bf16.msra.mxu0 %v6685_v16  ;;  %v1286_v24 = vld [vmem:[%s9473_s4 + $0x60] sm:$0xff]  ;;  %6105 = vmatprep.mubr.msk.bf16.mxu1 %vm332_vm1, %v6692_v25  ;;  %v1289_v27 = vld [vmem:[%s9473_s4 + $0x78] sm:$0xff]  ;;  %v1288_v28 = vld [vmem:[%s9473_s4 + $0x70] sm:$0xff] }
   0xa   :  { %1365 = vperm.xlu1 %6678, %v1279_v9   ;;  %1360 = vperm.xlu0 %6677, %v1278_v11   ;;  %v6687_v29 = vld [vmem:[%s9477_s2 + $0x8] sm:$0xff]   ;;  %v6688_v30 = vld [vmem:[%s9477_s2 + $0x10] sm:$0xff]   ;;  %v6696_v31 = vld [vmem:[%s9475_s3 + $0x40] sm:$0xff]  }
   0xb   :  { %4796 = vmatprep.subr.bf16.mxu0 %v9485_v0  ;;  %6106 = vmatmul.mubr.msk.bf16.vlgmr.msra.gmra.mrb[0].mxu1 %vm332_vm1, %v6693_v26  ;;  %v1291_v32 = vld [vmem:[%s9473_s4 + $0x88] sm:$0xff]  ;;  %v1290_v33 = vld [vmem:[%s9473_s4 + $0x80] sm:$0xff]  ;;  %v1293_v35 = vld [vmem:[%s9473_s4 + $0x98] sm:$0xff] }
   0xc   :  { %6109 = vmatprep.mubr.msk.bf16.mxu1 %vm332_vm1, %v6696_v31  ;;  %v6697_v34 = vld [vmem:[%s9475_s3 + $0x48] sm:$0xff]   ;;  %v1292_v36 = vld [vmem:[%s9473_s4 + $0x90] sm:$0xff]  ;;  %v6689_v38 = vld [vmem:[%s9477_s2 + $0x18] sm:$0xff]  }
   0xd   :  { %v6700_v37 = vld [vmem:[%s9475_s3 + $0x50] sm:$0xff]   ;;  %v6690_v39 = vld [vmem:[%s9477_s2 + $0x20] sm:$0xff]   ;;  %v1295_v40 = vld [vmem:[%s9473_s4 + $0xa8] sm:$0xff] }
   0xe   :  { %1375 = vperm.xlu1 %6678, %v1281_v12   ;;  %1370 = vperm.xlu0 %6677, %v1280_v13   ;;  %v1294_v41 = vld [vmem:[%s9473_s4 + $0xa0] sm:$0xff]  ;;  %v6701_v42 = vld [vmem:[%s9475_s3 + $0x58] sm:$0xff]   ;;  %v1296_v45 = vld [vmem:[%s9473_s4 + $0xb0] sm:$0xff] }
   0xf   :  { %6098 = vmatmul.mubr.msk.bf16.gmra.mrb[4].mxu0 %vm332_vm1, %v6682_v14  ;;  %v6704_v43 = vld [vmem:[%s9475_s3 + $0x60] sm:$0xff]   ;;  %v1297_v44 = vld [vmem:[%s9473_s4 + $0xb8] sm:$0xff]  ;;  %v6691_v46 = vld [vmem:[%s9477_s2 + $0x28] sm:$0xff]  }
  0x10   :  { %6101 = vmatprep.mubr.msk.bf16.mxu0 %vm332_vm1, %v6683_v15  ;;  %v6694_v47 = vld [vmem:[%s9477_s2 + $0x30] sm:$0xff]   ;;  %v1299_v48 = vld [vmem:[%s9473_s4 + $0xc8] sm:$0xff]  ;;  %v1298_v49 = vld [vmem:[%s9473_s4 + $0xc0] sm:$0xff] }
  0x11   :  { %v6705_v50 = vld [vmem:[%s9475_s3 + $0x68] sm:$0xff]   ;;  %v6708_v51 = vld [vmem:[%s9475_s3 + $0x70] sm:$0xff]   ;;  %v1301_v52 = vld [vmem:[%s9473_s4 + $0xd8] sm:$0xff] }
  0x12   :  { %1385 = vperm.xlu1 %6678, %v1283_v17   ;;  %1380 = vperm.xlu0 %6677, %v1282_v18   ;;  %v1300_v53 = vld [vmem:[%s9473_s4 + $0xd0] sm:$0xff]  ;;  %v6695_v54 = vld [vmem:[%s9477_s2 + $0x38] sm:$0xff]   ;;  %v6698_v55 = vld [vmem:[%s9477_s2 + $0x40] sm:$0xff]  }
  0x13   :  { %6110 = vmatmul.mubr.msk.bf16.gmra.mrb[4].mxu1 %vm332_vm1, %v6697_v34  ;;  %v1303_v56 = vld [vmem:[%s9473_s4 + $0xe8] sm:$0xff]  ;;  %v1302_v57 = vld [vmem:[%s9473_s4 + $0xe0] sm:$0xff]  ;;  %v6709_v58 = vld [vmem:[%s9475_s3 + $0x78] sm:$0xff]  }
  0x14   :  { %6113 = vmatprep.mubr.msk.bf16.mxu1 %vm332_vm1, %v6700_v37  ;;  %v6712_v59 = vld [vmem:[%s9475_s3 + $0x80] sm:$0xff]   ;;  %v1305_v60 = vld [vmem:[%s9473_s4 + $0xf8] sm:$0xff]  ;;  %v1304_v61 = vld [vmem:[%s9473_s4 + $0xf0] sm:$0xff] }
  0x15   :  { %v6699_v62 = vld [vmem:[%s9477_s2 + $0x48] sm:$0xff]   ;;  %v6702_v63 = vld [vmem:[%s9477_s2 + $0x50] sm:$0xff]   ;;  %v1306_v2 = vld [vmem:[%s9473_s4 + $0x100] sm:$0xff] }
  0x16   :  { %1395 = vperm.xlu1 %6678, %v1285_v19   ;;  %1390 = vperm.xlu0 %6677, %v1284_v20   ;;  %v1307_v1 = vld [vmem:[%s9473_s4 + $0x108] sm:$0xff]  ;;  %v6716_v4 = vld [vmem:[%s9475_s3 + $0x90] sm:$0xff]   ;;  %v1309_v5 = vld [vmem:[%s9473_s4 + $0x118] sm:$0xff] }
  0x17   :  { %6102 = vmatmul.mubr.msk.bf16.gmra.mrb[8].mxu0 %vm332_vm1, %v6684_v21  ;;  %v6714_v3 = vld [vmem:[%s9475_s3 + $0x88] sm:$0xff]   ;;  %v1308_v6 = vld [vmem:[%s9473_s4 + $0x110] sm:$0xff]  ;;  %v6703_v7 = vld [vmem:[%s9477_s2 + $0x58] sm:$0xff]  }
  0x18   :  { %6159 = vmatprep.mubr.msk.bf16.mxu0 %vm888_vm2, %v6686_v22  ;;  %v6706_v8 = vld [vmem:[%s9477_s2 + $0x60] sm:$0xff]   ;;  %v1311_v9 = vld [vmem:[%s9473_s4 + $0x128] sm:$0xff]  ;;  %v6718_v11 = vld [vmem:[%s9475_s3 + $0x98] sm:$0xff]  }
  0x19   :  { %v1310_v10 = vld [vmem:[%s9473_s4 + $0x120] sm:$0xff]  ;;  %v1313_v13 = vld [vmem:[%s9473_s4 + $0x138] sm:$0xff]  ;;  %v1312_v14 = vld [vmem:[%s9473_s4 + $0x130] sm:$0xff] }
  0x1a   :  { %1405 = vperm.xlu1 %6678, %v1287_v23   ;;  %1400 = vperm.xlu0 %6677, %v1286_v24   ;;  %v6720_v12 = vld [vmem:[%s9475_s3 + $0xa0] sm:$0xff]   ;;  %v6707_v15 = vld [vmem:[%s9477_s2 + $0x68] sm:$0xff]   ;;  %v6710_v16 = vld [vmem:[%s9477_s2 + $0x70] sm:$0xff]  }
  0x1b   :  { %6114 = vmatmul.mubr.msk.bf16.gmra.mrb[8].mxu1 %vm332_vm1, %v6701_v42  ;;  %v1315_v17 = vld [vmem:[%s9473_s4 + $0x148] sm:$0xff]  ;;  %v1314_v18 = vld [vmem:[%s9473_s4 + $0x140] sm:$0xff]  ;;  %v6724_v20 = vld [vmem:[%s9475_s3 + $0xb0] sm:$0xff]  }
  0x1c   :  { %6117 = vmatprep.mubr.msk.bf16.mxu1 %vm332_vm1, %v6704_v43  ;;  %v6722_v19 = vld [vmem:[%s9475_s3 + $0xa8] sm:$0xff]   ;;  %v1317_v21 = vld [vmem:[%s9473_s4 + $0x158] sm:$0xff]  ;;  %v1316_v22 = vld [vmem:[%s9473_s4 + $0x150] sm:$0xff] }
  0x1d   :  { %v6711_v23 = vld [vmem:[%s9477_s2 + $0x78] sm:$0xff]   ;;  %v6713_v24 = vld [vmem:[%s9477_s2 + $0x80] sm:$0xff]   ;;  %v1319_v25 = vld [vmem:[%s9473_s4 + $0x168] sm:$0xff] }
  0x1e   :  { %1415 = vperm.xlu1 %6678, %v1289_v27   ;;  %1410 = vperm.xlu0 %6677, %v1288_v28   ;;  %v1318_v26 = vld [vmem:[%s9473_s4 + $0x160] sm:$0xff]  ;;  %v6726_v27 = vld [vmem:[%s9475_s3 + $0xb8] sm:$0xff]   ;;  %v6715_v31 = vld [vmem:[%s9477_s2 + $0x88] sm:$0xff]  }
  0x1f   :  { %6160 = vmatmul.mubr.msk.bf16.vlgmr.msra.gmra.mrb[0].mxu0 %vm888_vm2, %v6687_v29  ;;  %v6728_v28 = vld [vmem:[%s9475_s3 + $0xc0] sm:$0xff]   ;;  %v1321_v29 = vld [vmem:[%s9473_s4 + $0x178] sm:$0xff]  ;;  %v2007_v0 = vld [vmem:[%s9478_s6 + $0x1e8] sm:$0xff] }
  0x20   :  { %6163 = vmatprep.mubr.msk.bf16.mxu0 %vm888_vm2, %v6688_v30  ;;  %v1320_v30 = vld [vmem:[%s9473_s4 + $0x170] sm:$0xff]  ;;  %v1322_v34 = vld [vmem:[%s9473_s4 + $0x180] sm:$0xff]  ;;  %v1325_v37 = vld [vmem:[%s9473_s4 + $0x198] sm:$0xff] }
  0x21   :  { %v1326_v42 = vld [vmem:[%s9473_s4 + $0x1a0] sm:$0xff]  ;;  %v6734_v43 = vld [vmem:[%s9475_s3 + $0xd8] sm:$0xff]  }
  0x22   :  { %1425 = vperm.xlu1 %6678, %v1291_v32   ;;  %1420 = vperm.xlu0 %6677, %v1290_v33   ;;  %v6717_v32 = vld [vmem:[%s9477_s2 + $0x90] sm:$0xff]   ;;  %v1323_v33 = vld [vmem:[%s9473_s4 + $0x188] sm:$0xff] }
  0x23   :  { %6118 = vmatmul.mubr.msk.bf16.gmra.mrb[12].mxu1 %vm332_vm1, %v6705_v50  ;;  %v1330_v50 = vld [vmem:[%s9473_s4 + $0x1c0] sm:$0xff] }
  0x24   :  { %6121 = vmatprep.mubr.msk.bf16.mxu1 %vm332_vm1, %v6708_v51  ;;  %v6738_v51 = vld [vmem:[%s9475_s3 + $0xe8] sm:$0xff]  }
  0x26   :  { %1435 = vperm.xlu1 %6678, %v1293_v35   ;;  %1430 = vperm.xlu0 %6677, %v1292_v36   ;;  %v6730_v35 = vld [vmem:[%s9475_s3 + $0xc8] sm:$0xff]   ;;  %v6732_v36 = vld [vmem:[%s9475_s3 + $0xd0] sm:$0xff]  }
  0x27   :  { %6164 = vmatmul.mubr.msk.bf16.gmra.mrb[4].mxu0 %vm888_vm2, %v6689_v38  ;;  %v1324_v38 = vld [vmem:[%s9473_s4 + $0x190] sm:$0xff] }
  0x28   :  { %6167 = vmatprep.mubr.msk.bf16.mxu0 %vm888_vm2, %v6690_v39  ;;  %v6719_v39 = vld [vmem:[%s9477_s2 + $0x98] sm:$0xff]  }
  0x2a   :  { %1445 = vperm.xlu1 %6678, %v1295_v40   ;;  %1440 = vperm.xlu0 %6677, %v1294_v41   ;;  %v6721_v40 = vld [vmem:[%s9477_s2 + $0xa0] sm:$0xff]   ;;  %v1327_v41 = vld [vmem:[%s9473_s4 + $0x1a8] sm:$0xff] }
  0x2b   :  { %6122 = vmatmul.mubr.msk.bf16.gmra.mrb[16].mxu1 %vm332_vm1, %v6709_v58  ;;  %v1334_v58 = vld [vmem:[%s9473_s4 + $0x1e0] sm:$0xff] }
  0x2c   :  { %6125 = vmatprep.mubr.msk.bf16.mxu1 %vm332_vm1, %v6712_v59  ;;  %v6742_v59 = vld [vmem:[%s9475_s3 + $0xf8] sm:$0xff]  }
  0x2e   :  { %1455 = vperm.xlu1 %6678, %v1297_v44   ;;  %1450 = vperm.xlu0 %6677, %v1296_v45   ;;  %v6736_v44 = vld [vmem:[%s9475_s3 + $0xe0] sm:$0xff]   ;;  %v1329_v45 = vld [vmem:[%s9473_s4 + $0x1b8] sm:$0xff] }
  0x2f   :  { %6168 = vmatmul.mubr.msk.bf16.gmra.mrb[8].mxu0 %vm888_vm2, %v6691_v46  ;;  %v1328_v46 = vld [vmem:[%s9473_s4 + $0x1b0] sm:$0xff] }
  0x30   :  { %6171 = vmatprep.mubr.msk.bf16.mxu0 %vm888_vm2, %v6694_v47  ;;  %v6723_v47 = vld [vmem:[%s9477_s2 + $0xa8] sm:$0xff]  }
  0x32   :  { %1465 = vperm.xlu1 %6678, %v1299_v48   ;;  %1460 = vperm.xlu0 %6677, %v1298_v49   ;;  %v6725_v48 = vld [vmem:[%s9477_s2 + $0xb0] sm:$0xff]   ;;  %v1331_v49 = vld [vmem:[%s9473_s4 + $0x1c8] sm:$0xff] }
  0x33   :  { %6126 = vmatmul.mubr.msk.bf16.gmra.mrb[20].mxu1 %vm332_vm1, %v6714_v3 }
  0x34   :  { %6129 = vmatprep.mubr.msk.bf16.mxu1 %vm332_vm1, %v6716_v4 }
  0x36   :  { %1475 = vperm.xlu1 %6678, %v1301_v52   ;;  %1470 = vperm.xlu0 %6677, %v1300_v53   ;;  %v6740_v52 = vld [vmem:[%s9475_s3 + $0xf0] sm:$0xff]   ;;  %v1333_v53 = vld [vmem:[%s9473_s4 + $0x1d8] sm:$0xff] }
  0x37   :  { %6172 = vmatmul.mubr.msk.bf16.gmra.mrb[12].mxu0 %vm888_vm2, %v6695_v54  ;;  %v1332_v54 = vld [vmem:[%s9473_s4 + $0x1d0] sm:$0xff] }
  0x38   :  { %6175 = vmatprep.mubr.msk.bf16.mxu0 %vm888_vm2, %v6698_v55  ;;  %v6727_v55 = vld [vmem:[%s9477_s2 + $0xb8] sm:$0xff]  }
  0x3a   :  { %1485 = vperm.xlu1 %6678, %v1303_v56   ;;  %1480 = vperm.xlu0 %6677, %v1302_v57   ;;  %v6729_v56 = vld [vmem:[%s9477_s2 + $0xc0] sm:$0xff]   ;;  %v1335_v57 = vld [vmem:[%s9473_s4 + $0x1e8] sm:$0xff] }
  0x3b   :  { %6130 = vmatmul.mubr.msk.bf16.gmra.mrb[24].mxu1 %vm332_vm1, %v6718_v11  ;;  %v1951_v11 = vld [vmem:[%s9478_s6 + $0x28] sm:$0xff] }
  0x3c   :  { %6133 = vmatprep.mubr.msk.bf16.mxu1 %vm332_vm1, %v6720_v12  ;;  %v1950_v12 = vld [vmem:[%s9478_s6 + $0x20] sm:$0xff] }
  0x3e   :  { %1495 = vperm.xlu1 %6678, %v1305_v60   ;;  %1490 = vperm.xlu0 %6677, %v1304_v61   ;;  %v1337_v60 = vld [vmem:[%s9473_s4 + $0x1f8] sm:$0xff]  ;;  %v1336_v61 = vld [vmem:[%s9473_s4 + $0x1f0] sm:$0xff] }
  0x3f   :  { %6176 = vmatmul.mubr.msk.bf16.gmra.mrb[16].mxu0 %vm888_vm2, %v6699_v62  ;;  %v6731_v62 = vld [vmem:[%s9477_s2 + $0xc8] sm:$0xff]  }
  0x40   :  { %6179 = vmatprep.mubr.msk.bf16.mxu0 %vm888_vm2, %v6702_v63  ;;  %v6733_v63 = vld [vmem:[%s9477_s2 + $0xd0] sm:$0xff]  }
  0x42   :  { %1505 = vperm.xlu1 %6678, %v1307_v1   ;;  %1500 = vperm.xlu0 %6677, %v1306_v2   ;;  %v1947_v1 = vld [vmem:[%s9478_s6 + $0x8] sm:$0xff]  ;;  %v1946_v2 = vld [vmem:[%s9478_s6] sm:$0xff] }
  0x43   :  { %6134 = vmatmul.mubr.msk.bf16.gmra.mrb[28].mxu1 %vm332_vm1, %v6722_v19 }
  0x44   :  { %6137 = vmatprep.mubr.msk.bf16.mxu1 %vm332_vm1, %v6724_v20 }
  0x46   :  { %1515 = vperm.xlu1 %6678, %v1309_v5   ;;  %1510 = vperm.xlu0 %6677, %v1308_v6   ;;  %v1949_v5 = vld [vmem:[%s9478_s6 + $0x18] sm:$0xff]  ;;  %v1948_v6 = vld [vmem:[%s9478_s6 + $0x10] sm:$0xff] }
  0x47   :  { %6180 = vmatmul.mubr.msk.bf16.gmra.mrb[20].mxu0 %vm888_vm2, %v6703_v7  ;;  %v6735_v7 = vld [vmem:[%s9477_s2 + $0xd8] sm:$0xff]  }
  0x48   :  { %6183 = vmatprep.mubr.msk.bf16.mxu0 %vm888_vm2, %v6706_v8  ;;  %v6737_v8 = vld [vmem:[%s9477_s2 + $0xe0] sm:$0xff]  }
  0x4a   :  { %1525 = vperm.xlu1 %6678, %v1311_v9   ;;  %1520 = vperm.xlu0 %6677, %v1310_v10  }
  0x4b   :  { %6138 = vmatmul.mubr.msk.bf16.gmra.mrb[32].mxu1 %vm332_vm1, %v6726_v27  ;;  %v6743_v27 = vld [vmem:[%s9477_s2 + $0xf8] sm:$0xff]  }
  0x4c   :  { %6141 = vmatprep.mubr.msk.bf16.mxu1 %vm332_vm1, %v6728_v28 }
  0x4e   :  { %1535 = vperm.xlu1 %6678, %v1313_v13   ;;  %1530 = vperm.xlu0 %6677, %v1312_v14  }
  0x4f   :  { %6184 = vmatmul.mubr.msk.bf16.gmra.mrb[24].mxu0 %vm888_vm2, %v6707_v15  ;;  %v1953_v15 = vld [vmem:[%s9478_s6 + $0x38] sm:$0xff] }
  0x50   :  { %6187 = vmatprep.mubr.msk.bf16.mxu0 %vm888_vm2, %v6710_v16  ;;  %v1952_v16 = vld [vmem:[%s9478_s6 + $0x30] sm:$0xff] }
  0x52   :  { %1545 = vperm.xlu1 %6678, %v1315_v17   ;;  %1540 = vperm.xlu0 %6677, %v1314_v18   ;;  %v6739_v17 = vld [vmem:[%s9477_s2 + $0xe8] sm:$0xff]   ;;  %v6741_v18 = vld [vmem:[%s9477_s2 + $0xf0] sm:$0xff]  }
  0x53   :  { %6142 = vmatmul.mubr.msk.bf16.gmra.mrb[36].mxu1 %vm332_vm1, %v6730_v35  ;;  %v1960_v35 = vld [vmem:[%s9478_s6 + $0x70] sm:$0xff] }
  0x54   :  { %6145 = vmatprep.mubr.msk.bf16.mxu1 %vm332_vm1, %v6732_v36 }
  0x56   :  { %1555 = vperm.xlu1 %6678, %v1317_v21   ;;  %1550 = vperm.xlu0 %6677, %v1316_v22   ;;  %v1955_v21 = vld [vmem:[%s9478_s6 + $0x48] sm:$0xff]  ;;  %v1954_v22 = vld [vmem:[%s9478_s6 + $0x40] sm:$0xff] }
  0x57   :  { %6188 = vmatmul.mubr.msk.bf16.gmra.mrb[28].mxu0 %vm888_vm2, %v6711_v23 }
  0x58   :  { %6191 = vmatprep.mubr.msk.bf16.mxu0 %vm888_vm2, %v6713_v24 }
  0x5a   :  { %1565 = vperm.xlu1 %6678, %v1319_v25   ;;  %1560 = vperm.xlu0 %6677, %v1318_v26   ;;  %v1957_v25 = vld [vmem:[%s9478_s6 + $0x58] sm:$0xff]  ;;  %v1956_v26 = vld [vmem:[%s9478_s6 + $0x50] sm:$0xff] }
  0x5b   :  { %6146 = vmatmul.mubr.msk.bf16.gmra.mrb[40].mxu1 %vm332_vm1, %v6734_v43  ;;  %v1964_v43 = vld [vmem:[%s9478_s6 + $0x90] sm:$0xff] }
  0x5c   :  { %6149 = vmatprep.mubr.msk.bf16.mxu1 %vm332_vm1, %v6736_v44 }
  0x5e   :  { %1575 = vperm.xlu1 %6678, %v1321_v29   ;;  %1570 = vperm.xlu0 %6677, %v1320_v30   ;;  %v1959_v30 = vld [vmem:[%s9478_s6 + $0x68] sm:$0xff] }
  0x5f   :  { %6192 = vmatmul.mubr.msk.bf16.gmra.mrb[32].mxu0 %vm888_vm2, %v6715_v31  ;;  %v1958_v31 = vld [vmem:[%s9478_s6 + $0x60] sm:$0xff] }
  0x60   :  { %6195 = vmatprep.mubr.msk.bf16.mxu0 %vm888_vm2, %v6717_v32 }
  0x62   :  { %1585 = vperm.xlu1 %6678, %v1323_v33   ;;  %1580 = vperm.xlu0 %6677, %v1322_v34   ;;  %v1961_v34 = vld [vmem:[%s9478_s6 + $0x78] sm:$0xff] }
  0x63   :  { %6150 = vmatmul.mubr.msk.bf16.gmra.mrb[44].mxu1 %vm332_vm1, %v6738_v51  ;;  %v1968_v51 = vld [vmem:[%s9478_s6 + $0xb0] sm:$0xff] }
  0x64   :  { %6153 = vmatprep.mubr.msk.bf16.mxu1 %vm332_vm1, %v6740_v52 }
  0x66   :  { %1595 = vperm.xlu1 %6678, %v1325_v37   ;;  %1590 = vperm.xlu0 %6677, %v1324_v38   ;;  %v1963_v38 = vld [vmem:[%s9478_s6 + $0x88] sm:$0xff] }
  0x67   :  { %6196 = vmatmul.mubr.msk.bf16.gmra.mrb[36].mxu0 %vm888_vm2, %v6719_v39  ;;  %v1962_v39 = vld [vmem:[%s9478_s6 + $0x80] sm:$0xff] }
  0x68   :  { %6199 = vmatprep.mubr.msk.bf16.mxu0 %vm888_vm2, %v6721_v40 }
  0x6a   :  { %1605 = vperm.xlu1 %6678, %v1327_v41   ;;  %1600 = vperm.xlu0 %6677, %v1326_v42   ;;  %v1965_v42 = vld [vmem:[%s9478_s6 + $0x98] sm:$0xff] }
  0x6b   :  { %6154 = vmatmul.mubr.msk.bf16.gmra.mrb[48].mxu1 %vm332_vm1, %v6742_v59  ;;  %v1972_v59 = vld [vmem:[%s9478_s6 + $0xd0] sm:$0xff] }
  0x6e   :  { %1615 = vperm.xlu1 %6678, %v1329_v45   ;;  %1610 = vperm.xlu0 %6677, %v1328_v46   ;;  %v1967_v46 = vld [vmem:[%s9478_s6 + $0xa8] sm:$0xff] }
  0x6f   :  { %6200 = vmatmul.mubr.msk.bf16.gmra.mrb[40].mxu0 %vm888_vm2, %v6723_v47  ;;  %v1966_v47 = vld [vmem:[%s9478_s6 + $0xa0] sm:$0xff] }
  0x70   :  { %6203 = vmatprep.mubr.msk.bf16.mxu0 %vm888_vm2, %v6725_v48 }
  0x72   :  { %1625 = vperm.xlu1 %6678, %v1331_v49   ;;  %1620 = vperm.xlu0 %6677, %v1330_v50   ;;  %v1969_v50 = vld [vmem:[%s9478_s6 + $0xb8] sm:$0xff] }
  0x76   :  { %1635 = vperm.xlu1 %6678, %v1333_v53   ;;  %1630 = vperm.xlu0 %6677, %v1332_v54   ;;  %v1971_v54 = vld [vmem:[%s9478_s6 + $0xc8] sm:$0xff] }
  0x77   :  { %6204 = vmatmul.mubr.msk.bf16.gmra.mrb[44].mxu0 %vm888_vm2, %v6727_v55  ;;  %v1970_v55 = vld [vmem:[%s9478_s6 + $0xc0] sm:$0xff] }
  0x78   :  { %6207 = vmatprep.mubr.msk.bf16.mxu0 %vm888_vm2, %v6729_v56 }
  0x7a   :  { %1645 = vperm.xlu1 %6678, %v1335_v57   ;;  %1640 = vperm.xlu0 %6677, %v1334_v58   ;;  %v1973_v58 = vld [vmem:[%s9478_s6 + $0xd8] sm:$0xff] }
  0x7e   :  { %1655 = vperm.xlu1 %6678, %v1337_v60   ;;  %1650 = vperm.xlu0 %6677, %v1336_v61   ;;  %v1975_v61 = vld [vmem:[%s9478_s6 + $0xe8] sm:$0xff] }
  0x7f   :  { %6208 = vmatmul.mubr.msk.bf16.gmra.mrb[48].mxu0 %vm888_vm2, %v6731_v62  ;;  %v1974_v62 = vld [vmem:[%s9478_s6 + $0xe0] sm:$0xff] }
  0x80   :  { %6211 = vmatprep.mubr.msk.bf16.mxu0 %vm888_vm2, %v6733_v63 }
  0x81   :  { %v7637_v3 = vpop.permute.xlu1 %1350  ;;  %v7639_v4 = vpop.permute.xlu0 %1340 }
  0x82   :  { %2017 = vperm.xlu1 %6678, %v1947_v1   ;;  %2012 = vperm.xlu0 %6677, %v1946_v2   ;;  %v1977_v1 = vld [vmem:[%s9478_s6 + $0xf8] sm:$0xff]  ;;  %v1976_v2 = vld [vmem:[%s9478_s6 + $0xf0] sm:$0xff] }
  0x85   :  { %v7653_v9 = vpop.permute.xlu1 %1355  ;;  %v7655_v10 = vpop.permute.xlu0 %1345 }
  0x86   :  { %2027 = vperm.xlu1 %6678, %v1949_v5   ;;  %2022 = vperm.xlu0 %6677, %v1948_v6   ;;  %v6746_v5 = vld [vmem:[%s9479_s5 + $0x4] ss:$16 sps:$4 sm:$0xff]  }
  0x87   :  { %6212 = vmatmul.mubr.msk.bf16.gmra.mrb[52].mxu0 %vm888_vm2, %v6735_v7  ;;  %3002 = vmatprep.mubr.bf16.mxu1 %v6746_v5  ;;  %v1999_v5 = vld [vmem:[%s9478_s6 + $0x1a8] sm:$0xff] }
  0x88   :  { %6215 = vmatprep.mubr.msk.bf16.mxu0 %vm888_vm2, %v6737_v8  ;;  %v1979_v8 = vld [vmem:[%s9478_s6 + $0x108] sm:$0xff] }
  0x89   :  { %v7665_v13 = vpop.permute.xlu1 %1365  ;;  %v7667_v14 = vpop.permute.xlu0 %1360 }
  0x8a   :  { %2037 = vperm.xlu1 %6678, %v1951_v11   ;;  %2032 = vperm.xlu0 %6677, %v1950_v12   ;;  %v1978_v11 = vld [vmem:[%s9478_s6 + $0x100] sm:$0xff]  ;;  %v1981_v12 = vld [vmem:[%s9478_s6 + $0x118] sm:$0xff] }
  0x8d   :  { %v7681_v19 = vpop.permute.xlu1 %1375  ;;  %v7683_v20 = vpop.permute.xlu0 %1370 }
  0x8e   :  { %2047 = vperm.xlu1 %6678, %v1953_v15   ;;  %2042 = vperm.xlu0 %6677, %v1952_v16   ;;  %v1980_v16 = vld [vmem:[%s9478_s6 + $0x110] sm:$0xff] }
  0x8f   :  { %6216 = vmatmul.mubr.msk.bf16.gmra.mrb[56].mxu0 %vm888_vm2, %v6739_v17 }
  0x90   :  { %6219 = vmatprep.mubr.msk.bf16.mxu0 %vm888_vm2, %v6741_v18  ;;  %v1983_v18 = vld [vmem:[%s9478_s6 + $0x128] sm:$0xff] }
  0x91   :  { %v7693_v23 = vpop.permute.xlu1 %1385  ;;  %v7695_v24 = vpop.permute.xlu0 %1380 }
  0x92   :  { %2057 = vperm.xlu1 %6678, %v1955_v21   ;;  %2052 = vperm.xlu0 %6677, %v1954_v22   ;;  %v1982_v21 = vld [vmem:[%s9478_s6 + $0x120] sm:$0xff] }
  0x95   :  { %v7706_v28 = vpop.permute.xlu1 %1395  ;;  %v7708_v29 = vpop.permute.xlu0 %1390 }
  0x96   :  { %2067 = vperm.xlu1 %6678, %v1957_v25   ;;  %2062 = vperm.xlu0 %6677, %v1956_v26   ;;  %v1985_v26 = vld [vmem:[%s9478_s6 + $0x138] sm:$0xff] }
  0x97   :  { %6220 = vmatmul.mubr.msk.bf16.gmra.mrb[60].mxu0 %vm888_vm2, %v6743_v27  ;;  %v1984_v27 = vld [vmem:[%s9478_s6 + $0x130] sm:$0xff] }
  0x99   :  { %v7717_v32 = vpop.permute.xlu1 %1405  ;;  %v7719_v33 = vpop.permute.xlu0 %1400 }
  0x9a   :  { %2077 = vperm.xlu1 %6678, %v1959_v30   ;;  %2072 = vperm.xlu0 %6677, %v1958_v31   ;;  %v1987_v30 = vld [vmem:[%s9478_s6 + $0x148] sm:$0xff]  ;;  %v1986_v31 = vld [vmem:[%s9478_s6 + $0x140] sm:$0xff] }
  0x9d   :  { %v7727_v36 = vpop.permute.xlu1 %1415  ;;  %v7729_v37 = vpop.permute.xlu0 %1410 }
  0x9e   :  { %2087 = vperm.xlu1 %6678, %v1961_v34   ;;  %2082 = vperm.xlu0 %6677, %v1960_v35  }
  0xa1   :  { %v7737_v40 = vpop.permute.xlu1 %1425  ;;  %v7739_v41 = vpop.permute.xlu0 %1420 }
  0xa2   :  { %2097 = vperm.xlu1 %6678, %v1963_v38   ;;  %2092 = vperm.xlu0 %6677, %v1962_v39   ;;  %v1989_v38 = vld [vmem:[%s9478_s6 + $0x158] sm:$0xff]  ;;  %v1988_v39 = vld [vmem:[%s9478_s6 + $0x150] sm:$0xff] }
  0xa5   :  { %v7747_v44 = vpop.permute.xlu1 %1435  ;;  %v7749_v45 = vpop.permute.xlu0 %1430 }
  0xa6   :  { %2107 = vperm.xlu1 %6678, %v1965_v42   ;;  %2102 = vperm.xlu0 %6677, %v1964_v43  }
  0xa9   :  { %v7757_v48 = vpop.permute.xlu1 %1445  ;;  %v7759_v49 = vpop.permute.xlu0 %1440 }
  0xaa   :  { %2117 = vperm.xlu1 %6678, %v1967_v46   ;;  %2112 = vperm.xlu0 %6677, %v1966_v47   ;;  %v1991_v46 = vld [vmem:[%s9478_s6 + $0x168] sm:$0xff]  ;;  %v1990_v47 = vld [vmem:[%s9478_s6 + $0x160] sm:$0xff] }
  0xad   :  { %v7767_v52 = vpop.permute.xlu1 %1455  ;;  %v7769_v53 = vpop.permute.xlu0 %1450 }
  0xae   :  { %2127 = vperm.xlu1 %6678, %v1969_v50   ;;  %2122 = vperm.xlu0 %6677, %v1968_v51   ;;  %v1993_v50 = vld [vmem:[%s9478_s6 + $0x178] sm:$0xff] }
  0xb1   :  { %v7777_v56 = vpop.permute.xlu0 %1460  ;;  %v7779_v57 = vpop.permute.xlu1 %1465 }
  0xb2   :  { %2137 = vperm.xlu1 %6678, %v1971_v54   ;;  %2132 = vperm.xlu0 %6677, %v1970_v55   ;;  %v1992_v54 = vld [vmem:[%s9478_s6 + $0x170] sm:$0xff] }
  0xb5   :  { %v7787_v60 = vpop.permute.xlu0 %1470  ;;  %v7795_v63 = vpop.permute.xlu1 %1475 }
  0xb6   :  { %2147 = vperm.xlu1 %6678, %v1973_v58   ;;  %2142 = vperm.xlu0 %6677, %v1972_v59   ;;  %v1995_v58 = vld [vmem:[%s9478_s6 + $0x188] sm:$0xff]  ;;  %v1994_v59 = vld [vmem:[%s9478_s6 + $0x180] sm:$0xff] }
  0xb9   :  { %v7806_v6 = vpop.permute.xlu0 %1480  ;;  %v7808_v7 = vpop.permute.xlu1 %1485 }
  0xba   :  { %2157 = vperm.xlu1 %6678, %v1975_v61   ;;  %2152 = vperm.xlu0 %6677, %v1974_v62  }
  0xbd   :  { %v7819_v15 = vpop.permute.xlu0 %1490  ;;  %v7824_v17 = vpop.permute.xlu1 %1495 }
  0xbe   :  { %2167 = vperm.xlu1 %6678, %v1977_v1   ;;  %2162 = vperm.xlu0 %6677, %v1976_v2   ;;  %v1997_v1 = vld [vmem:[%s9478_s6 + $0x198] sm:$0xff]  ;;  %v1996_v2 = vld [vmem:[%s9478_s6 + $0x190] sm:$0xff] }
  0xc1   :  { %v7832_v22 = vpop.permute.xlu0 %1500  ;;  %v7834_v25 = vpop.permute.xlu1 %1505 }
  0xc2   :  { %2177 = vperm.xlu1 %6678, %v1979_v8   ;;  %2172 = vperm.xlu0 %6677, %v1978_v11   ;;  %v1998_v8 = vld [vmem:[%s9478_s6 + $0x1a0] sm:$0xff] }
  0xc5   :  { %v7848_v34 = vpop.permute.xlu0 %1510  ;;  %v7850_v35 = vpop.permute.xlu1 %1515 }
  0xc6   :  { %2187 = vperm.xlu1 %6678, %v1981_v12   ;;  %2182 = vperm.xlu0 %6677, %v1980_v16   ;;  %v2001_v16 = vld [vmem:[%s9478_s6 + $0x1b8] sm:$0xff] }
  0xc9   :  { %v7858_v42 = vpop.permute.xlu0 %1520  ;;  %v7860_v43 = vpop.permute.xlu1 %1525 }
  0xca   :  { %2197 = vperm.xlu1 %6678, %v1983_v18   ;;  %2192 = vperm.xlu0 %6677, %v1982_v21   ;;  %v2000_v18 = vld [vmem:[%s9478_s6 + $0x1b0] sm:$0xff] }
  0xcd   :  { %v7871_v51 = vpop.permute.xlu0 %1530  ;;  %v7876_v55 = vpop.permute.xlu1 %1535 }
  0xce   :  { %2207 = vperm.xlu1 %6678, %v1985_v26   ;;  %2202 = vperm.xlu0 %6677, %v1984_v27   ;;  %v2003_v27 = vld [vmem:[%s9478_s6 + $0x1c8] sm:$0xff] }
  0xd1   :  { %v7884_v61 = vpop.permute.xlu0 %1540  ;;  %v7886_v62 = vpop.permute.xlu1 %1545 }
  0xd2   :  { %2217 = vperm.xlu1 %6678, %v1987_v30   ;;  %2212 = vperm.xlu0 %6677, %v1986_v31   ;;  %v2002_v30 = vld [vmem:[%s9478_s6 + $0x1c0] sm:$0xff] }
  0xd5   :  { %v7900_v11 = vpop.permute.xlu0 %1550  ;;  %v7902_v12 = vpop.permute.xlu1 %1555 }
  0xd6   :  { %2227 = vperm.xlu1 %6678, %v1989_v38   ;;  %2222 = vperm.xlu0 %6677, %v1988_v39  }
  0xd9   :  { %v7910_v21 = vpop.permute.xlu0 %1560  ;;  %v7912_v26 = vpop.permute.xlu1 %1565 }
  0xda   :  { %2237 = vperm.xlu1 %6678, %v1991_v46   ;;  %2232 = vperm.xlu0 %6677, %v1990_v47   ;;  %9487 = vst [vmem:[#allocation3_spill] sm:$0xff] %v7910_v21  ;;  %9488 = vst [vmem:[#allocation4_spill] sm:$0xff] %v7912_v26  ;;  %v2005_v47 = vld [vmem:[%s9478_s6 + $0x1d8] sm:$0xff] }
  0xde   :  { %2247 = vperm.xlu1 %6678, %v1993_v50   ;;  %2242 = vperm.xlu0 %6677, %v1992_v54   ;;  %v7920_v31 = vpop.f32.mrb[0].mxu1  ;;  %v7931_v54 = vpop.permute.xlu0 %1570 }
  0xdf   :  { %v7922_v38 = vpop.f32.mrb[1].mxu1  ;;  %9489 = vst [vmem:[#allocation5_spill] sm:$0xff] %v7931_v54 }
  0xe0   :  { %v7924_v39 = vpop.f32.mrb[2].mxu1 }
  0xe1   :  { %v7929_v50 = vpop.f32.mrb[3].mxu1 }
  0xe2   :  { %2257 = vperm.xlu1 %6678, %v1995_v58   ;;  %2252 = vperm.xlu0 %6677, %v1994_v59  }
  0xe6   :  { %2267 = vperm.xlu1 %6678, %v1997_v1   ;;  %2262 = vperm.xlu0 %6677, %v1996_v2   ;;  %v2004_v1 = vld [vmem:[%s9478_s6 + $0x1d0] sm:$0xff]  ;;  %v7937_v2 = vpop.permute.xlu1 %1575 }
  0xe7   :  { %9490 = vst [vmem:[#allocation6_spill] sm:$0xff] %v7937_v2  ;;  %v16_v2 = vstv %s9480_s10 }
  0xe8   :  { %17 = vst [vmem:[#allocation2] sm:$0x1] %v16_v2 }
  0xea   :  { %2277 = vperm.xlu1 %6678, %v1999_v5   ;;  %2272 = vperm.xlu0 %6677, %v1998_v8  }
  0xee   :  { %2287 = vperm.xlu1 %6678, %v2001_v16   ;;  %2282 = vperm.xlu0 %6677, %v2000_v18  }
  0xf2   :  { %v6161_v46 = vpop.f32.mrb[0].mxu0  ;;  %2297 = vperm.xlu1 %6678, %v2003_v27   ;;  %2292 = vperm.xlu0 %6677, %v2002_v30   ;;  %v7942_v30 = vpop.f32.mrb[4].mxu1 }
  0xf3   :  { %v1660_v58 = vadd.f32 %v6161_v46, %v7637_v3  ;;  %v1019_v59 = vpop.f32.mrb[1].mxu0 }
  0xf4   :  { %v1658_v5 = vadd.f32 %v7639_v4, %v1019_v59  ;;  %v6162_v8 = vpop.f32.mrb[2].mxu0  ;;  %v2006_v4 = vld [vmem:[%s9478_s6 + $0x1e0] sm:$0xff]  ;;  %v7950_v59 = vpop.f32.mrb[5].mxu1 }
  0xf5   :  { %v1661_v16 = vadd.f32 %v6162_v8, %v7653_v9  ;;  %v1022_v18 = vpop.f32.mrb[3].mxu0  ;;  %v1724_v3 = vmax.f32 %v1660_v58, 0.0  ;;  %v7952_v26 = vpop.f32.mrb[6].mxu1 }
  0xf6   :  { %v1659_v27 = vadd.f32 %v7655_v10, %v1022_v18  ;;  %2307 = vperm.xlu1 %6678, %v2005_v47   ;;  %2302 = vperm.xlu0 %6677, %v2004_v1   ;;  %v1722_v9 = vmax.f32 %v1658_v5, 0.0  ;;  %v7954_v10 = vpop.permute.xlu0 %1580  ;;  %v7956_v1 = vpop.f32.mrb[7].mxu1 }
  0xf7   :  { %v1725_v46 = vmax.f32 %v1661_v16, 0.0  ;;  %9491 = vst [vmem:[#allocation7_spill] sm:$0xff] %v7954_v10  ;;  %v7958_v58 = vpop.permute.xlu1 %1585  ;;  %v2009_v10 = vld [vmem:[%s9478_s6 + $0x1f8] sm:$0xff] }
  0xf8   :  { %v1723_v8 = vmax.f32 %v1659_v27, 0.0  ;;  %9492 = vst [vmem:[#allocation8_spill] sm:$0xff] %v7958_v58 }
  0xf9   :  { %v1915_v47 = vpack.c.bf16 %v1725_v46, %v1724_v3  ;;  %v2008_v3 = vld [vmem:[%s9478_s6 + $0x1f0] sm:$0xff] }
  0xfa   :  { %v1914_v16 = vpack.c.bf16 %v1723_v8, %v1722_v9  ;;  %v6165_v18 = vpop.f32.mrb[4].mxu0  ;;  %2317 = vperm.xlu1 %6678, %v2007_v0   ;;  %2312 = vperm.xlu0 %6677, %v2006_v4   ;;  %v9493_v8 = vmov 0   ;;  %v7976_v58 = vpop.permute.xlu0 %1590 }
  0xfb   :  { %v1664_v5 = vadd.f32 %v6165_v18, %v7683_v20  ;;  %v1035_v27 = vpop.f32.mrb[5].mxu0  ;;  %v7974_v18 = vpop.f32.mrb[8].mxu1  ;;  %9494 = vst [vmem:[#allocation9_spill] sm:$0xff] %v7976_v58 }
  0xfc   :  { %v1662_v46 = vadd.f32 %v7667_v14, %v1035_v27  ;;  %v6166_v0 = vpop.f32.mrb[6].mxu0  ;;  %2971 = vmatpush1.bf16.msra.mxu1 %v1914_v16  ;;  %v3789_v14 = vld [vmem:[%s9481_s8 + $0x88] sm:$0xff]  ;;  %v7984_v2 = vpop.f32.mrb[9].mxu1 }
  0xfd   :  { %v1665_v4 = vadd.f32 %v6166_v0, %v7681_v19  ;;  %v1038_v9 = vpop.f32.mrb[7].mxu0  ;;  %2972 = vmatprep.subr.bf16.mxu1 %v9493_v8  ;;  %v1728_v21 = vmax.f32 %v1664_v5, 0.0  ;;  %v3788_v19 = vld [vmem:[%s9481_s8 + $0x80] sm:$0xff]  ;;  %v7986_v16 = vpop.permute.xlu1 %1595 }
  0xfe   :  { %v1663_v20 = vadd.f32 %v7665_v13, %v1038_v9  ;;  %2327 = vperm.xlu1 %6678, %v2009_v10   ;;  %2322 = vperm.xlu0 %6677, %v2008_v3   ;;  %9495 = vst [vmem:[#allocation10_spill] sm:$0xff] %v7986_v16  ;;  %v1726_v13 = vmax.f32 %v1662_v46, 0.0  ;;  %v7988_v27 = vpop.f32.mrb[10].mxu1  ;;  %v3773_v46 = vld [vmem:[%s9481_s8 + $0x8] sm:$0xff] }
  0xff   :  { %v1729_v54 = vmax.f32 %v1665_v4, 0.0  ;;  %v7991_v5 = vpop.f32.mrb[11].mxu1 }
 0x100   :  { %v1727_v10 = vmax.f32 %v1663_v20, 0.0  ;;  %2973 = vmatpush1.bf16.msra.mxu1 %v1915_v47  ;;  %v3772_v47 = vld [vmem:[%s9481_s8] sm:$0xff]  ;;  %v8001_v20 = vpop.permute.xlu0 %1600 }
 0x101   :  { %v1917_v3 = vpack.c.bf16 %v1729_v54, %v1728_v21  ;;  %2974 = vmatprep.subr.bf16.mxu1 %v9493_v8  ;;  %9496 = vst [vmem:[#allocation11_spill] sm:$0xff] %v8001_v20 }
 0x102   :  { %v1916_v0 = vpack.c.bf16 %v1727_v10, %v1726_v13  ;;  %v6169_v4 = vpop.f32.mrb[8].mxu0  ;;  %3923 = vperm.xlu1 %6678, %v3789_v14   ;;  %3918 = vperm.xlu0 %6677, %v3788_v19   ;;  %v8008_v10 = vpop.f32.mrb[12].mxu1 }
 0x103   :  { %v1668_v9 = vadd.f32 %v6169_v4, %v7708_v29  ;;  %v1051_v58 = vpop.f32.mrb[9].mxu0  ;;  %v8005_v29 = vpop.permute.xlu1 %1605 }
 0x104   :  { %v1666_v21 = vadd.f32 %v7695_v24, %v1051_v58  ;;  %v6170_v54 = vpop.f32.mrb[10].mxu0  ;;  %2975 = vmatpush1.bf16.msra.mxu1 %v1916_v0  ;;  %9497 = vst [vmem:[#allocation12_spill] sm:$0xff] %v8005_v29  ;;  %v3791_v24 = vld [vmem:[%s9481_s8 + $0x98] sm:$0xff]  ;;  %v8016_v58 = vpop.f32.mrb[13].mxu1 }
 0x105   :  { %v1669_v14 = vadd.f32 %v6170_v54, %v7706_v28  ;;  %v1054_v19 = vpop.f32.mrb[11].mxu0  ;;  %2976 = vmatprep.subr.bf16.mxu1 %v9493_v8  ;;  %v1732_v4 = vmax.f32 %v1668_v9, 0.0  ;;  %v3790_v28 = vld [vmem:[%s9481_s8 + $0x90] sm:$0xff] }
 0x106   :  { %v1667_v13 = vadd.f32 %v7693_v23, %v1054_v19  ;;  %3843 = vperm.xlu1 %6678, %v3773_v46   ;;  %3838 = vperm.xlu0 %6677, %v3772_v47   ;;  %v1730_v0 = vmax.f32 %v1666_v21, 0.0  ;;  %v8018_v23 = vpop.f32.mrb[14].mxu1  ;;  %v8023_v19 = vpop.permute.xlu0 %1610 }
 0x107   :  { %v1733_v16 = vmax.f32 %v1669_v14, 0.0  ;;  %v8021_v9 = vpop.f32.mrb[15].mxu1  ;;  %v8032_v21 = vpop.permute.xlu1 %1615 }
 0x108   :  { %v1731_v54 = vmax.f32 %v1667_v13, 0.0  ;;  %2977 = vmatpush1.bf16.msra.mxu1 %v1917_v3  ;;  %v3775_v3 = vld [vmem:[%s9481_s8 + $0x18] sm:$0xff]  ;;  %9498 = vst [vmem:[#allocation13_spill] sm:$0xff] %v8032_v21 }
 0x109   :  { %v1919_v46 = vpack.c.bf16 %v1733_v16, %v1732_v4  ;;  %2978 = vmatprep.subr.bf16.mxu1 %v9493_v8  ;;  %v3774_v16 = vld [vmem:[%s9481_s8 + $0x10] sm:$0xff] }
 0x10a   :  { %v1918_v47 = vpack.c.bf16 %v1731_v54, %v1730_v0  ;;  %v6173_v14 = vpop.f32.mrb[12].mxu0  ;;  %3933 = vperm.xlu1 %6678, %v3791_v24   ;;  %3928 = vperm.xlu0 %6677, %v3790_v28  }
 0x10b   :  { %v1076_v29 = vadd.f32 %v6173_v14, %v7920_v31  ;;  %v1067_v20 = vpop.f32.mrb[13].mxu0  ;;  %v8040_v14 = vpop.f32.mrb[16].mxu1 }
 0x10c   :  { %v1068_v13 = vadd.f32 %v1067_v20, %v7922_v38  ;;  %v6174_v4 = vpop.f32.mrb[14].mxu0  ;;  %2979 = vmatpush1.bf16.msra.mxu1 %v1918_v47  ;;  %v3793_v38 = vld [vmem:[%s9481_s8 + $0xa8] sm:$0xff]  ;;  %v8054_v20 = vpop.permute.xlu0 %1620 }
 0x10d   :  { %v1672_v24 = vadd.f32 %v7729_v37, %v1076_v29  ;;  %v1079_v28 = vadd.f32 %v6174_v4, %v7924_v39  ;;  %v1070_v31 = vpop.f32.mrb[15].mxu0  ;;  %2980 = vmatprep.subr.bf16.mxu1 %v9493_v8  ;;  %v3792_v37 = vld [vmem:[%s9481_s8 + $0xa0] sm:$0xff]  ;;  %v8049_v39 = vpop.f32.mrb[17].mxu1 }
 0x10e   :  { %v1670_v0 = vadd.f32 %v7719_v33, %v1068_v13  ;;  %v1071_v54 = vadd.f32 %v1070_v31, %v7929_v50  ;;  %3853 = vperm.xlu1 %6678, %v3775_v3   ;;  %3848 = vperm.xlu0 %6677, %v3774_v16   ;;  %v8052_v50 = vpop.f32.mrb[18].mxu1  ;;  %v8059_v3 = vpop.permute.xlu1 %1625 }
 0x10f   :  { %v1673_v21 = vadd.f32 %v7727_v36, %v1079_v28  ;;  %v1736_v29 = vmax.f32 %v1672_v24, 0.0  ;;  %v8057_v36 = vpop.f32.mrb[19].mxu1  ;;  %v3777_v24 = vld [vmem:[%s9481_s8 + $0x28] sm:$0xff] }
 0x110   :  { %v1671_v33 = vadd.f32 %v7717_v32, %v1071_v54  ;;  %2981 = vmatpush1.bf16.msra.mxu1 %v1919_v46  ;;  %v1734_v16 = vmax.f32 %v1670_v0, 0.0  ;;  %v3776_v0 = vld [vmem:[%s9481_s8 + $0x20] sm:$0xff] }
 0x111   :  { %v1737_v47 = vmax.f32 %v1673_v21, 0.0  ;;  %2982 = vmatprep.subr.bf16.mxu1 %v9493_v8 }
 0x112   :  { %v1735_v13 = vmax.f32 %v1671_v33, 0.0  ;;  %v6177_v4 = vpop.f32.mrb[16].mxu0  ;;  %3943 = vperm.xlu1 %6678, %v3793_v38   ;;  %3938 = vperm.xlu0 %6677, %v3792_v37  }
 0x113   :  { %v1921_v28 = vpack.c.bf16 %v1737_v47, %v1736_v29  ;;  %v1092_v32 = vadd.f32 %v6177_v4, %v7942_v30  ;;  %v1083_v46 = vpop.f32.mrb[17].mxu0  ;;  %v8073_v47 = vpop.f32.mrb[20].mxu1 }
 0x114   :  { %v1920_v21 = vpack.c.bf16 %v1735_v13, %v1734_v16  ;;  %v1084_v31 = vadd.f32 %v1083_v46, %v7950_v59  ;;  %v6178_v54 = vpop.f32.mrb[18].mxu0  ;;  %v8075_v16 = vpop.permute.xlu0 %1630  ;;  %v3794_v13 = vld [vmem:[%s9481_s8 + $0xb0] sm:$0xff] }
 0x115   :  { %v1676_v33 = vadd.f32 %v7749_v45, %v1092_v32  ;;  %v1095_v38 = vadd.f32 %v6178_v54, %v7952_v26  ;;  %v1086_v37 = vpop.f32.mrb[19].mxu0  ;;  %v3795_v45 = vld [vmem:[%s9481_s8 + $0xb8] sm:$0xff]  ;;  %v8082_v26 = vpop.f32.mrb[21].mxu1 }
 0x116   :  { %v1674_v30 = vadd.f32 %v7739_v41, %v1084_v31  ;;  %v1087_v29 = vadd.f32 %v1086_v37, %v7956_v1  ;;  %2983 = vmatpush1.bf16.msra.mxu1 %v1920_v21  ;;  %3863 = vperm.xlu1 %6678, %v3777_v24   ;;  %v8084_v41 = vpop.permute.xlu1 %1635  ;;  %v8090_v4 = vpop.f32.mrb[22].mxu1 }
 0x117   :  { %v1677_v59 = vadd.f32 %v7747_v44, %v1095_v38  ;;  %3858 = vperm.xlu0 %6677, %v3776_v0   ;;  %2984 = vmatprep.subr.bf16.mxu1 %v9493_v8  ;;  %v1740_v44 = vmax.f32 %v1676_v33, 0.0  ;;  %v8092_v46 = vpop.f32.mrb[23].mxu1  ;;  %v3779_v38 = vld [vmem:[%s9481_s8 + $0x38] sm:$0xff] }
 0x118   :  { %v1675_v1 = vadd.f32 %v7737_v40, %v1087_v29  ;;  %v1738_v24 = vmax.f32 %v1674_v30, 0.0  ;;  %v8103_v30 = vpop.permute.xlu0 %1640 }
 0x119   :  { %v1741_v32 = vmax.f32 %v1677_v59, 0.0 }
 0x11a   :  { %v1739_v21 = vmax.f32 %v1675_v1, 0.0  ;;  %v6181_v31 = vpop.f32.mrb[20].mxu0  ;;  %2985 = vmatpush1.bf16.msra.mxu1 %v1921_v28  ;;  %3953 = vperm.xlu1 %6678, %v3795_v45   ;;  %v3778_v28 = vld [vmem:[%s9481_s8 + $0x30] sm:$0xff]  ;;  %v8107_v1 = vpop.permute.xlu1 %1645 }
 0x11b   :  { %v1923_v54 = vpack.c.bf16 %v1741_v32, %v1740_v44  ;;  %v1108_v0 = vadd.f32 %v6181_v31, %v7974_v18  ;;  %3948 = vperm.xlu0 %6677, %v3794_v13   ;;  %v1099_v40 = vpop.f32.mrb[21].mxu0  ;;  %2986 = vmatprep.subr.bf16.mxu1 %v9493_v8 }
 0x11c   :  { %v1922_v33 = vpack.c.bf16 %v1739_v21, %v1738_v24  ;;  %v1100_v37 = vadd.f32 %v1099_v40, %v7984_v2  ;;  %v6182_v29 = vpop.f32.mrb[22].mxu0  ;;  %v8111_v2 = vpop.f32.mrb[24].mxu1 }
 0x11d   :  { %v1680_v18 = vadd.f32 %v7769_v53, %v1108_v0  ;;  %v1111_v59 = vadd.f32 %v6182_v29, %v7988_v27  ;;  %v1102_v45 = vpop.f32.mrb[23].mxu0  ;;  %v3797_v53 = vld [vmem:[%s9481_s8 + $0xc8] sm:$0xff]  ;;  %v8118_v27 = vpop.f32.mrb[25].mxu1 }
 0x11e   :  { %v1678_v13 = vadd.f32 %v7759_v49, %v1100_v37  ;;  %v1103_v44 = vadd.f32 %v1102_v45, %v7991_v5  ;;  %2987 = vmatpush1.bf16.msra.mxu1 %v1922_v33  ;;  %3873 = vperm.xlu1 %6678, %v3779_v38   ;;  %v3796_v49 = vld [vmem:[%s9481_s8 + $0xc0] sm:$0xff]  ;;  %v8124_v5 = vpop.f32.mrb[26].mxu1  ;;  %v8128_v33 = vpop.permute.xlu0 %1650 }
 0x11f   :  { %v1681_v32 = vadd.f32 %v7767_v52, %v1111_v59  ;;  %3868 = vperm.xlu0 %6677, %v3778_v28   ;;  %2988 = vmatprep.subr.bf16.mxu1 %v9493_v8  ;;  %v1744_v21 = vmax.f32 %v1680_v18, 0.0  ;;  %v8126_v52 = vpop.f32.mrb[27].mxu1  ;;  %v3781_v28 = vld [vmem:[%s9481_s8 + $0x48] sm:$0xff]  ;;  %v8135_v18 = vpop.permute.xlu1 %1655 }
 0x120   :  { %v1679_v24 = vadd.f32 %v7757_v48, %v1103_v44  ;;  %v1742_v0 = vmax.f32 %v1678_v13, 0.0  ;;  %v3780_v13 = vld [vmem:[%s9481_s8 + $0x40] sm:$0xff] }
 0x121   :  { %v1745_v31 = vmax.f32 %v1681_v32, 0.0 }
 0x122   :  { %v1743_v40 = vmax.f32 %v1679_v24, 0.0  ;;  %v6185_v38 = vpop.f32.mrb[24].mxu0  ;;  %2989 = vmatpush1.bf16.msra.mxu1 %v1923_v54  ;;  %3963 = vperm.xlu1 %6678, %v3797_v53  }
 0x123   :  { %v1925_v37 = vpack.c.bf16 %v1745_v31, %v1744_v21  ;;  %v1124_v48 = vadd.f32 %v6185_v38, %v8008_v10  ;;  %3958 = vperm.xlu0 %6677, %v3796_v49   ;;  %v1115_v29 = vpop.f32.mrb[25].mxu0  ;;  %2990 = vmatprep.subr.bf16.mxu1 %v9493_v8  ;;  %v8145_v49 = vpop.f32.mrb[28].mxu1 }
 0x124   :  { %v1924_v59 = vpack.c.bf16 %v1743_v40, %v1742_v0  ;;  %v1116_v45 = vadd.f32 %v1115_v29, %v8016_v58  ;;  %v6186_v54 = vpop.f32.mrb[26].mxu0  ;;  %v8152_v21 = vpop.f32.mrb[29].mxu1 }
 0x125   :  { %v1684_v10 = vadd.f32 %v7787_v60, %v1124_v48  ;;  %v1127_v44 = vadd.f32 %v6186_v54, %v8018_v23  ;;  %v1118_v32 = vpop.f32.mrb[27].mxu0  ;;  %v3799_v60 = vld [vmem:[%s9481_s8 + $0xd8] sm:$0xff]  ;;  %v8160_v31 = vpop.permute.xlu0 %2012 }
 0x126   :  { %v1682_v53 = vadd.f32 %v7777_v56, %v1116_v45  ;;  %v1119_v24 = vadd.f32 %v1118_v32, %v8021_v9  ;;  %2991 = vmatpush1.bf16.msra.mxu1 %v1924_v59  ;;  %3883 = vperm.xlu1 %6678, %v3781_v28   ;;  %v3798_v56 = vld [vmem:[%s9481_s8 + $0xd0] sm:$0xff]  ;;  %v8158_v9 = vpop.f32.mrb[30].mxu1  ;;  %v8164_v38 = vpop.permute.xlu1 %2017  ;;  %v3783_v54 = vld [vmem:[%s9481_s8 + $0x58] sm:$0xff] }
 0x127   :  { %v1685_v58 = vadd.f32 %v7795_v63, %v1127_v44  ;;  %3878 = vperm.xlu0 %6677, %v3780_v13   ;;  %2992 = vmatprep.subr.bf16.mxu1 %v9493_v8  ;;  %v1748_v63 = vmax.f32 %v1684_v10, 0.0  ;;  %v8162_v40 = vpop.f32.mrb[31].mxu1 }
 0x128   :  { %v1683_v23 = vadd.f32 %v7779_v57, %v1119_v24  ;;  %v1746_v48 = vmax.f32 %v1682_v53, 0.0 }
 0x129   :  { %v1749_v0 = vmax.f32 %v1685_v58, 0.0 }
 0x12a   :  { %v1747_v29 = vmax.f32 %v1683_v23, 0.0  ;;  %v6189_v28 = vpop.f32.mrb[28].mxu0  ;;  %2993 = vmatpush1.bf16.msra.mxu1 %v1925_v37  ;;  %3973 = vperm.xlu1 %6678, %v3799_v60   ;;  %v3782_v37 = vld [vmem:[%s9481_s8 + $0x50] sm:$0xff]  ;;  %v8179_v60 = vpop.f32.mrb[32].mxu1 }
 0x12b   :  { %v1927_v57 = vpack.c.bf16 %v1749_v0, %v1748_v63  ;;  %v1140_v59 = vadd.f32 %v6189_v28, %v8040_v14  ;;  %3968 = vperm.xlu0 %6677, %v3798_v56   ;;  %v1131_v45 = vpop.f32.mrb[29].mxu0  ;;  %2994 = vmatprep.subr.bf16.mxu1 %v9493_v8  ;;  %v8181_v23 = vpop.permute.xlu0 %2022  ;;  %v3800_v56 = vld [vmem:[%s9481_s8 + $0xe0] sm:$0xff] }
 0x12c   :  { %v1926_v13 = vpack.c.bf16 %v1747_v29, %v1746_v48  ;;  %v1132_v10 = vadd.f32 %v1131_v45, %v8049_v39  ;;  %v6190_v44 = vpop.f32.mrb[30].mxu0 }
 0x12d   :  { %v1688_v32 = vadd.f32 %v7819_v15, %v1140_v59  ;;  %v1143_v14 = vadd.f32 %v6190_v44, %v8052_v50  ;;  %v1134_v53 = vpop.f32.mrb[31].mxu0  ;;  %v3801_v15 = vld [vmem:[%s9481_s8 + $0xe8] sm:$0xff]  ;;  %v8188_v50 = vpop.f32.mrb[33].mxu1 }
 0x12e   :  { %v1686_v24 = vadd.f32 %v7806_v6, %v1132_v10  ;;  %v1135_v58 = vadd.f32 %v1134_v53, %v8057_v36  ;;  %2995 = vmatpush1.bf16.msra.mxu1 %v1926_v13  ;;  %3893 = vperm.xlu1 %6678, %v3783_v54   ;;  %v8190_v6 = vpop.permute.xlu1 %2027  ;;  %v8196_v63 = vpop.f32.mrb[34].mxu1  ;;  %v3785_v13 = vld [vmem:[%s9481_s8 + $0x68] sm:$0xff] }
 0x12f   :  { %v1689_v39 = vadd.f32 %v7824_v17, %v1143_v14  ;;  %3888 = vperm.xlu0 %6677, %v3782_v37   ;;  %2996 = vmatprep.subr.bf16.mxu1 %v9493_v8  ;;  %v1752_v17 = vmax.f32 %v1688_v32, 0.0  ;;  %v8198_v48 = vpop.f32.mrb[35].mxu1  ;;  %v8209_v32 = vpop.permute.xlu0 %2032 }
 0x130   :  { %v1687_v36 = vadd.f32 %v7808_v7, %v1135_v58  ;;  %v1750_v29 = vmax.f32 %v1686_v24, 0.0 }
 0x131   :  { %v1753_v0 = vmax.f32 %v1689_v39, 0.0 }
 0x132   :  { %v1751_v28 = vmax.f32 %v1687_v36, 0.0  ;;  %v6193_v59 = vpop.f32.mrb[32].mxu0  ;;  %2997 = vmatpush1.bf16.msra.mxu1 %v1927_v57  ;;  %3983 = vperm.xlu1 %6678, %v3801_v15   ;;  %v3784_v57 = vld [vmem:[%s9481_s8 + $0x60] sm:$0xff]  ;;  %v8213_v24 = vpop.permute.xlu1 %2037 }
 0x133   :  { %v1929_v45 = vpack.c.bf16 %v1753_v0, %v1752_v17  ;;  %v1156_v54 = vadd.f32 %v6193_v59, %v8073_v47  ;;  %3978 = vperm.xlu0 %6677, %v3800_v56   ;;  %v1147_v7 = vpop.f32.mrb[33].mxu0  ;;  %2998 = vmatprep.subr.bf16.mxu1 %v9493_v8 }
 0x134   :  { %v1928_v10 = vpack.c.bf16 %v1751_v28, %v1750_v29  ;;  %v1148_v44 = vadd.f32 %v1147_v7, %v8082_v26  ;;  %v6194_v37 = vpop.f32.mrb[34].mxu0  ;;  %v8217_v26 = vpop.f32.mrb[36].mxu1 }
 0x135   :  { %v1692_v47 = vadd.f32 %v7848_v34, %v1156_v54  ;;  %v1159_v14 = vadd.f32 %v6194_v37, %v8090_v4  ;;  %v1150_v53 = vpop.f32.mrb[35].mxu0  ;;  %v3803_v34 = vld [vmem:[%s9481_s8 + $0xf8] sm:$0xff]  ;;  %v8224_v4 = vpop.f32.mrb[37].mxu1 }
 0x136   :  { %v1690_v58 = vadd.f32 %v7832_v22, %v1148_v44  ;;  %v1151_v39 = vadd.f32 %v1150_v53, %v8092_v46  ;;  %2999 = vmatpush1.bf16.msra.mxu1 %v1928_v10  ;;  %3903 = vperm.xlu1 %6678, %v3785_v13   ;;  %v3802_v22 = vld [vmem:[%s9481_s8 + $0xf0] sm:$0xff]  ;;  %v8230_v46 = vpop.f32.mrb[38].mxu1  ;;  %v3787_v10 = vld [vmem:[%s9481_s8 + $0x78] sm:$0xff]  ;;  %v8244_v44 = vpop.permute.xlu1 %2047 }
 0x137   :  { %v1693_v15 = vadd.f32 %v7850_v35, %v1159_v14  ;;  %3898 = vperm.xlu0 %6677, %v3784_v57   ;;  %3000 = vmatprep.subr.bf16.mxu1 %v9493_v8  ;;  %v1756_v56 = vmax.f32 %v1692_v47, 0.0  ;;  %v6744_v35 = vld [vmem:[%s9479_s5] ss:$16 sps:$4 sm:$0xff]   ;;  %v8235_v0 = vpop.f32.mrb[39].mxu1 }
 0x138   :  { %v1691_v36 = vadd.f32 %v7834_v25, %v1151_v39  ;;  %v1754_v29 = vmax.f32 %v1690_v58, 0.0  ;;  %v8237_v25 = vpop.permute.xlu0 %2042  ;;  %v3786_v47 = vld [vmem:[%s9481_s8 + $0x70] sm:$0xff] }
 0x139   :  { %v1757_v17 = vmax.f32 %v1693_v15, 0.0 }
 0x13a   :  { %v1755_v28 = vmax.f32 %v1691_v36, 0.0  ;;  %v6197_v59 = vpop.f32.mrb[36].mxu0  ;;  %3001 = vmatpush1.bf16.msra.mxu1 %v1929_v45  ;;  %3993 = vperm.xlu1 %6678, %v3803_v34  }
 0x13b   :  { %v1931_v54 = vpack.c.bf16 %v1757_v17, %v1756_v56  ;;  %v1172_v7 = vadd.f32 %v6197_v59, %v8111_v2  ;;  %3988 = vperm.xlu0 %6677, %v3802_v22   ;;  %v1163_v13 = vpop.f32.mrb[37].mxu0  ;;  %3259 = vmatprep.subr.bf16.mxu1 %v9493_v8  ;;  %v6747_v2 = vld [vmem:[%s9479_s5 + $0x24] ss:$16 sps:$4 sm:$0xff]   ;;  %v6749_v17 = vld [vmem:[%s9479_s5 + $0x20] ss:$16 sps:$4 sm:$0xff]  }
 0x13c   :  { %v1930_v37 = vpack.c.bf16 %v1755_v28, %v1754_v29  ;;  %v1164_v57 = vadd.f32 %v1163_v13, %v8118_v27  ;;  %v6198_v45 = vpop.f32.mrb[38].mxu0  ;;  %v8257_v27 = vpop.f32.mrb[40].mxu1 }
 0x13d   :  { %v1696_v14 = vadd.f32 %v7871_v51, %v1172_v7  ;;  %v1175_v53 = vadd.f32 %v6198_v45, %v8124_v5  ;;  %v1166_v58 = vpop.f32.mrb[39].mxu0  ;;  %3003 = vmatmul.mubr.bf16.vlgmr.msra.gmra.mrb[52].mxu1 %v6744_v35  ;;  %v3821_v51 = vld [vmem:[%s9481_s8 + $0x188] sm:$0xff]  ;;  %v8264_v5 = vpop.f32.mrb[41].mxu1 }
 0x13e   :  { %v1694_v39 = vadd.f32 %v7858_v42, %v1164_v57  ;;  %v1167_v15 = vadd.f32 %v1166_v58, %v8126_v52  ;;  %3260 = vmatpush1.bf16.msra.mxu1 %v1930_v37  ;;  %3913 = vperm.xlu1 %6678, %v3787_v10   ;;  %v3820_v42 = vld [vmem:[%s9481_s8 + $0x180] sm:$0xff]  ;;  %v8270_v52 = vpop.f32.mrb[42].mxu1  ;;  %v8272_v22 = vpop.permute.xlu0 %2052  ;;  %v3805_v37 = vld [vmem:[%s9481_s8 + $0x108] sm:$0xff] }
 0x13f   :  { %v1697_v34 = vadd.f32 %v7876_v55, %v1175_v53  ;;  %3908 = vperm.xlu0 %6677, %v3786_v47   ;;  %3261 = vmatprep.subr.bf16.mxu1 %v9493_v8  ;;  %v1760_v55 = vmax.f32 %v1696_v14, 0.0  ;;  %v8277_v35 = vpop.f32.mrb[43].mxu1  ;;  %v8279_v29 = vpop.permute.xlu1 %2057 }
 0x140   :  { %v1695_v36 = vadd.f32 %v7860_v43, %v1167_v15  ;;  %3010 = vmatprep.mubr.bf16.mxu1 %v6747_v2  ;;  %v1758_v43 = vmax.f32 %v1694_v39, 0.0 }
 0x141   :  { %v1761_v56 = vmax.f32 %v1697_v34, 0.0 }
 0x142   :  { %v1759_v28 = vmax.f32 %v1695_v36, 0.0  ;;  %v6201_v59 = vpop.f32.mrb[40].mxu0  ;;  %3262 = vmatpush1.bf16.msra.mxu1 %v1931_v54  ;;  %4083 = vperm.xlu1 %6678, %v3821_v51   ;;  %v3804_v54 = vld [vmem:[%s9481_s8 + $0x100] sm:$0xff]  ;;  %v8299_v15 = vpop.permute.xlu0 %2062  ;;  %v3822_v51 = vld [vmem:[%s9481_s8 + $0x190] sm:$0xff] }
 0x143   :  { %v1933_v7 = vpack.c.bf16 %v1761_v56, %v1760_v55  ;;  %v1188_v13 = vadd.f32 %v6201_v59, %v8145_v49  ;;  %4078 = vperm.xlu0 %6677, %v3820_v42   ;;  %v1179_v10 = vpop.f32.mrb[41].mxu0  ;;  %3263 = vmatprep.subr.bf16.mxu1 %v9493_v8  ;;  %v6750_v49 = vld [vmem:[%s9479_s5 + $0x44] ss:$16 sps:$4 sm:$0xff]   ;;  %v6752_v55 = vld [vmem:[%s9479_s5 + $0x40] ss:$16 sps:$4 sm:$0xff]  }
 0x144   :  { %v1932_v57 = vpack.c.bf16 %v1759_v28, %v1758_v43  ;;  %v1180_v45 = vadd.f32 %v1179_v10, %v8152_v21  ;;  %v6202_v47 = vpop.f32.mrb[42].mxu0  ;;  %v8297_v21 = vpop.f32.mrb[44].mxu1  ;;  %v3807_v10 = vld [vmem:[%s9481_s8 + $0x118] sm:$0xff] }
 0x145   :  { %v1700_v2 = vadd.f32 %v7900_v11, %v1188_v13  ;;  %v1191_v14 = vadd.f32 %v6202_v47, %v8158_v9  ;;  %v1182_v53 = vpop.f32.mrb[43].mxu0  ;;  %3011 = vmatmul.mubr.bf16.gmra.mrb[56].mxu1 %v6749_v17  ;;  %v3823_v11 = vld [vmem:[%s9481_s8 + $0x198] sm:$0xff]  ;;  %v8306_v9 = vpop.f32.mrb[45].mxu1 }
 0x146   :  { %v1698_v58 = vadd.f32 %v7884_v61, %v1180_v45  ;;  %v1183_v39 = vadd.f32 %v1182_v53, %v8162_v40  ;;  %3264 = vmatpush1.bf16.msra.mxu1 %v1932_v57  ;;  %4003 = vperm.xlu1 %6678, %v3805_v37   ;;  %v8308_v61 = vpop.permute.xlu1 %2067  ;;  %v8314_v36 = vpop.f32.mrb[46].mxu1 }
 0x147   :  { %v1701_v34 = vadd.f32 %v7902_v12, %v1191_v14  ;;  %3998 = vperm.xlu0 %6677, %v3804_v54   ;;  %3265 = vmatprep.subr.bf16.mxu1 %v9493_v8  ;;  %v1764_v12 = vmax.f32 %v1700_v2, 0.0  ;;  %v8319_v56 = vpop.f32.mrb[47].mxu1  ;;  %v8333_v47 = vpop.permute.xlu0 %2072  ;;  %v9499_v54 = vld [vmem:[#allocation5_spill] sm:$0xff] }
 0x148   :  { %v1699_v40 = vadd.f32 %v7886_v62, %v1183_v39  ;;  %3018 = vmatprep.mubr.bf16.mxu1 %v6750_v49  ;;  %v1762_v17 = vmax.f32 %v1698_v58, 0.0 }
 0x149   :  { %v1765_v42 = vmax.f32 %v1701_v34, 0.0  ;;  %v8341_v34 = vpop.f32.mrb[48].mxu1 }
 0x14a   :  { %v1763_v43 = vmax.f32 %v1699_v40, 0.0  ;;  %v6205_v28 = vpop.f32.mrb[44].mxu0  ;;  %3266 = vmatpush1.bf16.msra.mxu1 %v1933_v7  ;;  %4093 = vperm.xlu1 %6678, %v3823_v11   ;;  %v3806_v7 = vld [vmem:[%s9481_s8 + $0x110] sm:$0xff]  ;;  %v8337_v53 = vpop.permute.xlu1 %2077  ;;  %v9501_v11 = vld [vmem:[#allocation6_spill] sm:$0xff] }
 0x14b   :  { %v1935_v62 = vpack.c.bf16 %v1765_v42, %v1764_v12  ;;  %v1204_v59 = vadd.f32 %v6205_v28, %v8179_v60  ;;  %4088 = vperm.xlu0 %6677, %v3822_v51   ;;  %v1195_v13 = vpop.f32.mrb[45].mxu0  ;;  %3267 = vmatprep.subr.bf16.mxu1 %v9493_v8  ;;  %v6753_v60 = vld [vmem:[%s9479_s5 + $0x64] ss:$16 sps:$4 sm:$0xff]   ;;  %v8348_v51 = vpop.f32.mrb[49].mxu1  ;;  %v9502_v12 = vld [vmem:[#allocation4_spill] sm:$0xff] }
 0x14c   :  { %v1934_v37 = vpack.c.bf16 %v1763_v43, %v1762_v17  ;;  %v1196_v57 = vadd.f32 %v1195_v13, %v8188_v50  ;;  %v6206_v45 = vpop.f32.mrb[46].mxu0  ;;  %v9500_v50 = vld [vmem:[#allocation3_spill] sm:$0xff] }
 0x14d   :  { %v1704_v49 = vadd.f32 %v9499_v54, %v1204_v59  ;;  %v1207_v2 = vadd.f32 %v6206_v45, %v8196_v63  ;;  %v1198_v14 = vpop.f32.mrb[47].mxu0  ;;  %3019 = vmatmul.mubr.bf16.gmra.mrb[60].mxu1 %v6752_v55  ;;  %v3825_v63 = vld [vmem:[%s9481_s8 + $0x1a8] sm:$0xff]  ;;  %v8354_v55 = vpop.f32.mrb[50].mxu1  ;;  %v6755_v28 = vld [vmem:[%s9479_s5 + $0x60] ss:$16 sps:$4 sm:$0xff]  }
 0x14e   :  { %v1702_v58 = vadd.f32 %v9500_v50, %v1196_v57  ;;  %v1199_v39 = vadd.f32 %v1198_v14, %v8198_v48  ;;  %3268 = vmatpush1.bf16.msra.mxu1 %v1934_v37  ;;  %4013 = vperm.xlu1 %6678, %v3807_v10   ;;  %v3824_v48 = vld [vmem:[%s9481_s8 + $0x1a0] sm:$0xff]  ;;  %v8359_v59 = vpop.f32.mrb[51].mxu1  ;;  %v8361_v57 = vpop.permute.xlu0 %2082  ;;  %v3809_v54 = vld [vmem:[%s9481_s8 + $0x128] sm:$0xff] }
 0x14f   :  { %v1705_v40 = vadd.f32 %v9501_v11, %v1207_v2  ;;  %4008 = vperm.xlu0 %6677, %v3806_v7   ;;  %3269 = vmatprep.subr.bf16.mxu1 %v9493_v8  ;;  %v1768_v17 = vmax.f32 %v1704_v49, 0.0  ;;  %v8368_v49 = vpop.permute.xlu1 %2087  ;;  %v3808_v50 = vld [vmem:[%s9481_s8 + $0x120] sm:$0xff] }
 0x150   :  { %v1703_v42 = vadd.f32 %v9502_v12, %v1199_v39  ;;  %3026 = vmatprep.mubr.bf16.mxu1 %v6753_v60  ;;  %v1766_v13 = vmax.f32 %v1702_v58, 0.0  ;;  %v9503_v58 = vld [vmem:[#allocation9_spill] sm:$0xff] }
 0x151   :  { %v1769_v43 = vmax.f32 %v1705_v40, 0.0 }
 0x152   :  { %v1767_v10 = vmax.f32 %v1703_v42, 0.0  ;;  %v6209_v37 = vpop.f32.mrb[48].mxu0  ;;  %3270 = vmatpush1.bf16.msra.mxu1 %v1935_v62  ;;  %4103 = vperm.xlu1 %6678, %v3825_v63   ;;  %v9504_v63 = vld [vmem:[#allocation7_spill] sm:$0xff] }
 0x153   :  { %v1937_v45 = vpack.c.bf16 %v1769_v43, %v1768_v17  ;;  %v1220_v7 = vadd.f32 %v6209_v37, %v8217_v26  ;;  %4098 = vperm.xlu0 %6677, %v3824_v48   ;;  %v1211_v60 = vpop.f32.mrb[49].mxu0  ;;  %3271 = vmatprep.subr.bf16.mxu1 %v9493_v8  ;;  %v6756_v26 = vld [vmem:[%s9479_s5 + $0x84] ss:$16 sps:$4 sm:$0xff]   ;;  %v3827_v17 = vld [vmem:[%s9481_s8 + $0x1b8] sm:$0xff]  ;;  %v9506_v43 = vld [vmem:[#allocation8_spill] sm:$0xff] }
 0x154   :  { %v1936_v2 = vpack.c.bf16 %v1767_v10, %v1766_v13  ;;  %v1212_v14 = vadd.f32 %v1211_v60, %v8224_v4  ;;  %v6210_v62 = vpop.f32.mrb[50].mxu0  ;;  %v9505_v4 = vld [vmem:[#allocation10_spill] sm:$0xff] }
 0x155   :  { %v1708_v39 = vadd.f32 %v9503_v58, %v1220_v7  ;;  %v1223_v11 = vadd.f32 %v6210_v62, %v8230_v46  ;;  %v1214_v40 = vpop.f32.mrb[51].mxu0  ;;  %3027 = vmatmul.mubr.bf16.gmra.mrb[64].mxu1 %v6755_v28  ;;  %v3826_v46 = vld [vmem:[%s9481_s8 + $0x1b0] sm:$0xff]  ;;  %v8390_v28 = vpop.permute.xlu0 %2092 }
 0x156   :  { %v1706_v12 = vadd.f32 %v9504_v63, %v1212_v14  ;;  %v1215_v42 = vadd.f32 %v1214_v40, %v8235_v0  ;;  %3272 = vmatpush1.bf16.msra.mxu1 %v1936_v2  ;;  %4023 = vperm.xlu1 %6678, %v3809_v54   ;;  %v6758_v37 = vld [vmem:[%s9479_s5 + $0x80] ss:$16 sps:$4 sm:$0xff]   ;;  %v8395_v7 = vpop.permute.xlu1 %2097 }
 0x157   :  { %v1709_v48 = vadd.f32 %v9505_v4, %v1223_v11  ;;  %4018 = vperm.xlu0 %6677, %v3808_v50   ;;  %3273 = vmatprep.subr.bf16.mxu1 %v9493_v8  ;;  %v1772_v0 = vmax.f32 %v1708_v39, 0.0 }
 0x158   :  { %v1707_v13 = vadd.f32 %v9506_v43, %v1215_v42  ;;  %3034 = vmatprep.mubr.bf16.mxu1 %v6756_v26  ;;  %v1770_v60 = vmax.f32 %v1706_v12, 0.0  ;;  %v3811_v26 = vld [vmem:[%s9481_s8 + $0x138] sm:$0xff]  ;;  %v9507_v42 = vld [vmem:[#allocation11_spill] sm:$0xff] }
 0x159   :  { %v1773_v10 = vmax.f32 %v1709_v48, 0.0 }
 0x15a   :  { %v1771_v54 = vmax.f32 %v1707_v13, 0.0  ;;  %v6213_v2 = vpop.f32.mrb[52].mxu0  ;;  %3274 = vmatpush1.bf16.msra.mxu1 %v1937_v45  ;;  %4113 = vperm.xlu1 %6678, %v3827_v17   ;;  %v3810_v45 = vld [vmem:[%s9481_s8 + $0x130] sm:$0xff] }
 0x15b   :  { %v1939_v14 = vpack.c.bf16 %v1773_v10, %v1772_v0  ;;  %v1236_v62 = vadd.f32 %v6213_v2, %v8257_v27  ;;  %4108 = vperm.xlu0 %6677, %v3826_v46   ;;  %v1227_v50 = vpop.f32.mrb[53].mxu0  ;;  %3275 = vmatprep.subr.bf16.mxu1 %v9493_v8  ;;  %v6759_v27 = vld [vmem:[%s9479_s5 + $0xa4] ss:$16 sps:$4 sm:$0xff]   ;;  %v9509_v13 = vld [vmem:[#allocation12_spill] sm:$0xff] }
 0x15c   :  { %v1938_v58 = vpack.c.bf16 %v1771_v54, %v1770_v60  ;;  %v1228_v39 = vadd.f32 %v1227_v50, %v8264_v5  ;;  %v6214_v11 = vpop.f32.mrb[54].mxu0  ;;  %v8413_v5 = vpop.permute.xlu0 %2102  ;;  %v9508_v17 = vld [vmem:[#allocation13_spill] sm:$0xff] }
 0x15d   :  { %v1712_v40 = vadd.f32 %v8023_v19, %v1236_v62  ;;  %v1239_v63 = vadd.f32 %v6214_v11, %v8270_v52  ;;  %v1230_v12 = vpop.f32.mrb[55].mxu0  ;;  %3035 = vmatmul.mubr.bf16.gmra.mrb[68].mxu1 %v6758_v37  ;;  %v3829_v19 = vld [vmem:[%s9481_s8 + $0x1c8] sm:$0xff]  ;;  %v8420_v52 = vpop.permute.xlu1 %2107  ;;  %v6761_v37 = vld [vmem:[%s9479_s5 + $0xa0] ss:$16 sps:$4 sm:$0xff]  }
 0x15e   :  { %v1710_v4 = vadd.f32 %v9507_v42, %v1228_v39  ;;  %v1231_v48 = vadd.f32 %v1230_v12, %v8277_v35  ;;  %3276 = vmatpush1.bf16.msra.mxu1 %v1938_v58  ;;  %4033 = vperm.xlu1 %6678, %v3811_v26   ;;  %v3828_v35 = vld [vmem:[%s9481_s8 + $0x1c0] sm:$0xff]  ;;  %v3813_v58 = vld [vmem:[%s9481_s8 + $0x148] sm:$0xff] }
 0x15f   :  { %v1713_v43 = vadd.f32 %v9508_v17, %v1239_v63  ;;  %4028 = vperm.xlu0 %6677, %v3810_v45   ;;  %3277 = vmatprep.subr.bf16.mxu1 %v9493_v8  ;;  %v1776_v0 = vmax.f32 %v1712_v40, 0.0  ;;  %v3830_v17 = vld [vmem:[%s9481_s8 + $0x1d0] sm:$0xff] }
 0x160   :  { %v1711_v46 = vadd.f32 %v9509_v13, %v1231_v48  ;;  %3042 = vmatprep.mubr.bf16.mxu1 %v6759_v27  ;;  %v1774_v60 = vmax.f32 %v1710_v4, 0.0  ;;  %v8441_v27 = vpop.permute.xlu0 %2112 }
 0x161   :  { %v1777_v10 = vmax.f32 %v1713_v43, 0.0  ;;  %v8445_v42 = vpop.permute.xlu1 %2117 }
 0x162   :  { %v1775_v54 = vmax.f32 %v1711_v46, 0.0  ;;  %v6217_v2 = vpop.f32.mrb[56].mxu0  ;;  %3278 = vmatpush1.bf16.msra.mxu1 %v1939_v14  ;;  %4123 = vperm.xlu1 %6678, %v3829_v19   ;;  %v3812_v14 = vld [vmem:[%s9481_s8 + $0x140] sm:$0xff] }
 0x163   :  { %v1941_v62 = vpack.c.bf16 %v1777_v10, %v1776_v0  ;;  %v1252_v50 = vadd.f32 %v6217_v2, %v8297_v21  ;;  %4118 = vperm.xlu0 %6677, %v3828_v35   ;;  %v1243_v26 = vpop.f32.mrb[57].mxu0  ;;  %3279 = vmatprep.subr.bf16.mxu1 %v9493_v8  ;;  %v6762_v21 = vld [vmem:[%s9479_s5 + $0xc4] ss:$16 sps:$4 sm:$0xff]   ;;  %v3815_v10 = vld [vmem:[%s9481_s8 + $0x158] sm:$0xff] }
 0x164   :  { %v1940_v39 = vpack.c.bf16 %v1775_v54, %v1774_v60  ;;  %v1244_v11 = vadd.f32 %v1243_v26, %v8306_v9  ;;  %v6218_v45 = vpop.f32.mrb[58].mxu0  ;;  %v8461_v46 = vpop.permute.xlu0 %2122 }
 0x165   :  { %v1716_v40 = vadd.f32 %v8075_v16, %v1252_v50  ;;  %v1255_v63 = vadd.f32 %v6218_v45, %v8314_v36  ;;  %v1246_v12 = vpop.f32.mrb[59].mxu0  ;;  %3043 = vmatmul.mubr.bf16.gmra.mrb[72].mxu1 %v6761_v37  ;;  %v3831_v16 = vld [vmem:[%s9481_s8 + $0x1d8] sm:$0xff]  ;;  %v8468_v37 = vpop.permute.xlu1 %2127  ;;  %v3833_v45 = vld [vmem:[%s9481_s8 + $0x1e8] sm:$0xff] }
 0x166   :  { %v1714_v9 = vadd.f32 %v8054_v20, %v1244_v11  ;;  %v1247_v4 = vadd.f32 %v1246_v12, %v8319_v56  ;;  %3280 = vmatpush1.bf16.msra.mxu1 %v1940_v39  ;;  %4043 = vperm.xlu1 %6678, %v3813_v58   ;;  %v3817_v12 = vld [vmem:[%s9481_s8 + $0x168] sm:$0xff] }
 0x167   :  { %v1717_v48 = vadd.f32 %v8084_v41, %v1255_v63  ;;  %4038 = vperm.xlu0 %6677, %v3812_v14   ;;  %3281 = vmatprep.subr.bf16.mxu1 %v9493_v8  ;;  %v1780_v20 = vmax.f32 %v1716_v40, 0.0  ;;  %v6764_v41 = vld [vmem:[%s9479_s5 + $0xc0] ss:$16 sps:$4 sm:$0xff]  }
 0x168   :  { %v1715_v36 = vadd.f32 %v8059_v3, %v1247_v4  ;;  %3050 = vmatprep.mubr.bf16.mxu1 %v6762_v21  ;;  %v1778_v43 = vmax.f32 %v1714_v9, 0.0  ;;  %v3816_v4 = vld [vmem:[%s9481_s8 + $0x160] sm:$0xff] }
 0x169   :  { %v1781_v56 = vmax.f32 %v1717_v48, 0.0  ;;  %v8495_v21 = vpop.permute.xlu1 %2137  ;;  %v6768_v48 = vld [vmem:[%s9479_s5 + $0x104] ss:$16 sps:$4 sm:$0xff]  }
 0x16a   :  { %v1779_v19 = vmax.f32 %v1715_v36, 0.0  ;;  %v6221_v13 = vpop.f32.mrb[60].mxu0  ;;  %3282 = vmatpush1.bf16.msra.mxu1 %v1941_v62  ;;  %4133 = vperm.xlu1 %6678, %v3831_v16   ;;  %v3814_v62 = vld [vmem:[%s9481_s8 + $0x150] sm:$0xff]  ;;  %v3835_v36 = vld [vmem:[%s9481_s8 + $0x1f8] sm:$0xff] }
 0x16b   :  { %v1943_v35 = vpack.c.bf16 %v1781_v56, %v1780_v20  ;;  %v1268_v3 = vadd.f32 %v6221_v13, %v8341_v34  ;;  %4128 = vperm.xlu0 %6677, %v3830_v17   ;;  %v1259_v0 = vpop.f32.mrb[61].mxu0  ;;  %3283 = vmatprep.subr.bf16.mxu1 %v9493_v8  ;;  %v6765_v34 = vld [vmem:[%s9479_s5 + $0xe4] ss:$16 sps:$4 sm:$0xff]   ;;  %v6770_v56 = vld [vmem:[%s9479_s5 + $0x100] ss:$16 sps:$4 sm:$0xff]  }
 0x16c   :  { %v1942_v60 = vpack.c.bf16 %v1779_v19, %v1778_v43  ;;  %v1260_v54 = vadd.f32 %v1259_v0, %v8348_v51  ;;  %v6222_v2 = vpop.f32.mrb[62].mxu0  ;;  %v3834_v20 = vld [vmem:[%s9481_s8 + $0x1f0] sm:$0xff]  ;;  %v3819_v43 = vld [vmem:[%s9481_s8 + $0x178] sm:$0xff] }
 0x16d   :  { %v1720_v50 = vadd.f32 %v8128_v33, %v1268_v3  ;;  %v1271_v26 = vadd.f32 %v6222_v2, %v8354_v55  ;;  %v1262_v58 = vpop.f32.mrb[63].mxu0  ;;  %3051 = vmatmul.mubr.bf16.gmra.mrb[76].mxu1 %v6764_v41  ;;  %v3832_v55 = vld [vmem:[%s9481_s8 + $0x1e0] sm:$0xff]  ;;  %v8513_v17 = vpop.permute.xlu1 %2147  ;;  %v3818_v19 = vld [vmem:[%s9481_s8 + $0x170] sm:$0xff] }
 0x16e   :  { %v1718_v39 = vadd.f32 %v8103_v30, %v1260_v54  ;;  %v1263_v11 = vadd.f32 %v1262_v58, %v8359_v59  ;;  %3284 = vmatpush1.bf16.msra.mxu1 %v1942_v60  ;;  %4053 = vperm.xlu1 %6678, %v3815_v10   ;;  %v8490_v30 = vpop.permute.xlu0 %2132  ;;  %v6771_v41 = vld [vmem:[%s9479_s5 + $0x124] ss:$16 sps:$4 sm:$0xff]   ;;  %v5471_v3 = vld [vmem:[#allocation2] sm:$0x1] }
 0x16f   :  { %v1721_v51 = vadd.f32 %v8135_v18, %v1271_v26  ;;  %4048 = vperm.xlu0 %6677, %v3814_v62   ;;  %3285 = vmatprep.subr.bf16.mxu1 %v9493_v8  ;;  %v1784_v59 = vmax.f32 %v1720_v50, 0.0  ;;  %v6767_v18 = vld [vmem:[%s9479_s5 + $0xe0] ss:$16 sps:$4 sm:$0xff]   ;;  %v6774_v10 = vld [vmem:[%s9479_s5 + $0x144] ss:$16 sps:$4 sm:$0xff]  }
 0x170   :  { %v1719_v33 = vadd.f32 %v8107_v1, %v1263_v11  ;;  %3058 = vmatprep.mubr.bf16.mxu1 %v6765_v34  ;;  %v1782_v40 = vmax.f32 %v1718_v39, 0.0  ;;  %v6773_v0 = vld [vmem:[%s9479_s5 + $0x120] ss:$16 sps:$4 sm:$0xff]   ;;  %v6777_v2 = vld [vmem:[%s9479_s5 + $0x164] ss:$16 sps:$4 sm:$0xff]  }
 0x171   :  { %v1785_v14 = vmax.f32 %v1721_v51, 0.0  ;;  %v6776_v54 = vld [vmem:[%s9479_s5 + $0x140] ss:$16 sps:$4 sm:$0xff]   ;;  %v6780_v34 = vld [vmem:[%s9479_s5 + $0x184] ss:$16 sps:$4 sm:$0xff]  }
 0x172   :  { %v1783_v63 = vmax.f32 %v1719_v33, 0.0  ;;  %3286 = vmatpush1.bf16.msra.mxu1 %v1943_v35  ;;  %4143 = vperm.xlu1 %6678, %v3833_v45   ;;  %v8507_v16 = vpop.permute.xlu0 %2142  ;;  %v8532_v35 = vpop.permute.xlu1 %2157  ;;  %v6779_v62 = vld [vmem:[%s9479_s5 + $0x160] ss:$16 sps:$4 sm:$0xff]   ;;  %v6783_v26 = vld [vmem:[%s9479_s5 + $0x1a4] ss:$16 sps:$4 sm:$0xff]  }
 0x173   :  { %v1945_v1 = vpack.c.bf16 %v1785_v14, %v1784_v59  ;;  %4138 = vperm.xlu0 %6677, %v3832_v55   ;;  %3287 = vmatprep.subr.bf16.mxu1 %v9493_v8  ;;  %v6782_v50 = vld [vmem:[%s9479_s5 + $0x180] ss:$16 sps:$4 sm:$0xff]   ;;  %v6786_v39 = vld [vmem:[%s9479_s5 + $0x1c4] ss:$16 sps:$4 sm:$0xff]  }
 0x174   :  { %v1944_v9 = vpack.c.bf16 %v1783_v63, %v1782_v40  ;;  %v6785_v58 = vld [vmem:[%s9479_s5 + $0x1a0] ss:$16 sps:$4 sm:$0xff]   ;;  %v6789_v51 = vld [vmem:[%s9479_s5 + $0x1e4] ss:$16 sps:$4 sm:$0xff]  }
 0x175   :  { %3059 = vmatmul.mubr.bf16.gmra.mrb[80].mxu1 %v6767_v18  ;;  %v6788_v11 = vld [vmem:[%s9479_s5 + $0x1c0] ss:$16 sps:$4 sm:$0xff]   ;;  %v6792_v33 = vld [vmem:[%s9479_s5 + $0x204] ss:$16 sps:$4 sm:$0xff]  }
 0x176   :  { %3288 = vmatpush1.bf16.msra.mxu1 %v1944_v9  ;;  %4063 = vperm.xlu1 %6678, %v3817_v12   ;;  %v8530_v13 = vpop.permute.xlu0 %2152  ;;  %v6791_v45 = vld [vmem:[%s9479_s5 + $0x1e0] ss:$16 sps:$4 sm:$0xff]   ;;  %v6795_v59 = vld [vmem:[%s9479_s5 + $0x224] ss:$16 sps:$4 sm:$0xff]  }
 0x177   :  { %4058 = vperm.xlu0 %6677, %v3816_v4   ;;  %3289 = vmatprep.subr.bf16.mxu1 %v9493_v8  ;;  %v6794_v55 = vld [vmem:[%s9479_s5 + $0x200] ss:$16 sps:$4 sm:$0xff]   ;;  %v6798_v18 = vld [vmem:[%s9479_s5 + $0x244] ss:$16 sps:$4 sm:$0xff]  }
 0x178   :  { %3066 = vmatprep.mubr.bf16.mxu1 %v6768_v48  ;;  %v6797_v14 = vld [vmem:[%s9479_s5 + $0x220] ss:$16 sps:$4 sm:$0xff]   ;;  %v6801_v63 = vld [vmem:[%s9479_s5 + $0x264] ss:$16 sps:$4 sm:$0xff]  }
 0x179   :  { %v6800_v40 = vld [vmem:[%s9479_s5 + $0x240] ss:$16 sps:$4 sm:$0xff]   ;;  %v6804_v12 = vld [vmem:[%s9479_s5 + $0x284] ss:$16 sps:$4 sm:$0xff]  }
 0x17a   :  { %3290 = vmatpush1.bf16.msra.mxu1 %v1945_v1  ;;  %4153 = vperm.xlu1 %6678, %v3835_v36   ;;  %v8540_v60 = vpop.permute.xlu0 %2162  ;;  %v6803_v1 = vld [vmem:[%s9479_s5 + $0x260] ss:$16 sps:$4 sm:$0xff]   ;;  %v6807_v4 = vld [vmem:[%s9479_s5 + $0x2a4] ss:$16 sps:$4 sm:$0xff]  }
 0x17b   :  { %4148 = vperm.xlu0 %6677, %v3834_v20   ;;  %v6806_v9 = vld [vmem:[%s9479_s5 + $0x280] ss:$16 sps:$4 sm:$0xff]   ;;  %v6810_v36 = vld [vmem:[%s9479_s5 + $0x2c4] ss:$16 sps:$4 sm:$0xff]  }
 0x17c   :  { %v6809_v48 = vld [vmem:[%s9479_s5 + $0x2a0] ss:$16 sps:$4 sm:$0xff]  }
 0x17d   :  { %3067 = vmatmul.mubr.bf16.gmra.mrb[84].mxu1 %v6770_v56  ;;  %v6812_v20 = vld [vmem:[%s9479_s5 + $0x2c0] ss:$16 sps:$4 sm:$0xff]   ;;  %v6813_v56 = vld [vmem:[%s9479_s5 + $0x2e4] ss:$16 sps:$4 sm:$0xff]  }
 0x17e   :  { %4073 = vperm.xlu1 %6678, %v3819_v43   ;;  %3074 = vmatprep.mubr.bf16.mxu1 %v6771_v41  ;;  %v6815_v41 = vld [vmem:[%s9479_s5 + $0x2e0] ss:$16 sps:$4 sm:$0xff]   ;;  %v6816_v43 = vld [vmem:[%s9479_s5 + $0x304] ss:$16 sps:$4 sm:$0xff]  }
 0x17f   :  { %4068 = vperm.xlu0 %6677, %v3818_v19   ;;  %v6818_v19 = vld [vmem:[%s9479_s5 + $0x300] ss:$16 sps:$4 sm:$0xff]  }
 0x183   :  { %5474 = vperm.xlu0 %6677, %v5471_v3   ;;  %v6819_v3 = vld [vmem:[%s9479_s5 + $0x324] ss:$16 sps:$4 sm:$0xff]  }
 0x185   :  { %3075 = vmatmul.mubr.bf16.gmra.mrb[88].mxu1 %v6773_v0  ;;  %v6821_v0 = vld [vmem:[%s9479_s5 + $0x320] ss:$16 sps:$4 sm:$0xff]  }
 0x186   :  { %3082 = vmatprep.mubr.bf16.mxu1 %v6774_v10  ;;  %v6822_v10 = vld [vmem:[%s9479_s5 + $0x344] ss:$16 sps:$4 sm:$0xff]  }
 0x18d   :  { %3083 = vmatmul.mubr.bf16.gmra.mrb[92].mxu1 %v6776_v54  ;;  %v6824_v54 = vld [vmem:[%s9479_s5 + $0x340] ss:$16 sps:$4 sm:$0xff]  }
 0x18e   :  { %3090 = vmatprep.mubr.bf16.mxu1 %v6777_v2  ;;  %v6825_v2 = vld [vmem:[%s9479_s5 + $0x364] ss:$16 sps:$4 sm:$0xff]  }
 0x195   :  { %3091 = vmatmul.mubr.bf16.gmra.mrb[96].mxu1 %v6779_v62  ;;  %v6827_v62 = vld [vmem:[%s9479_s5 + $0x360] ss:$16 sps:$4 sm:$0xff]  }
 0x196   :  { %3098 = vmatprep.mubr.bf16.mxu1 %v6780_v34  ;;  %v6828_v34 = vld [vmem:[%s9479_s5 + $0x384] ss:$16 sps:$4 sm:$0xff]  }
 0x19d   :  { %3099 = vmatmul.mubr.bf16.gmra.mrb[100].mxu1 %v6782_v50  ;;  %v6830_v50 = vld [vmem:[%s9479_s5 + $0x380] ss:$16 sps:$4 sm:$0xff]  }
 0x19e   :  { %3106 = vmatprep.mubr.bf16.mxu1 %v6783_v26  ;;  %v6831_v26 = vld [vmem:[%s9479_s5 + $0x3a4] ss:$16 sps:$4 sm:$0xff]  }
 0x1a5   :  { %3107 = vmatmul.mubr.bf16.gmra.mrb[104].mxu1 %v6785_v58  ;;  %v6833_v58 = vld [vmem:[%s9479_s5 + $0x3a0] ss:$16 sps:$4 sm:$0xff]  }
 0x1a6   :  { %3114 = vmatprep.mubr.bf16.mxu1 %v6786_v39  ;;  %v6834_v39 = vld [vmem:[%s9479_s5 + $0x3c4] ss:$16 sps:$4 sm:$0xff]  }
 0x1ad   :  { %3115 = vmatmul.mubr.bf16.gmra.mrb[108].mxu1 %v6788_v11  ;;  %v6836_v11 = vld [vmem:[%s9479_s5 + $0x3c0] ss:$16 sps:$4 sm:$0xff]  }
 0x1ae   :  { %3122 = vmatprep.mubr.bf16.mxu1 %v6789_v51  ;;  %v6837_v51 = vld [vmem:[%s9479_s5 + $0x3e4] ss:$16 sps:$4 sm:$0xff]  }
 0x1b5   :  { %3123 = vmatmul.mubr.bf16.gmra.mrb[112].mxu1 %v6791_v45  ;;  %v6839_v45 = vld [vmem:[%s9479_s5 + $0x3e0] ss:$16 sps:$4 sm:$0xff]  }
 0x1b6   :  { %3130 = vmatprep.mubr.bf16.mxu1 %v6792_v33  ;;  %v6842_v33 = vld [vmem:[%s9479_s5 + $0xc] ss:$16 sps:$4 sm:$0xff]  }
 0x1bd   :  { %3131 = vmatmul.mubr.bf16.gmra.mrb[116].mxu1 %v6794_v55  ;;  %v6840_v55 = vld [vmem:[%s9479_s5 + $0x8] ss:$16 sps:$4 sm:$0xff]  }
 0x1be   :  { %3138 = vmatprep.mubr.bf16.mxu1 %v6795_v59  ;;  %v6843_v59 = vld [vmem:[%s9479_s5 + $0x2c] ss:$16 sps:$4 sm:$0xff]  }
 0x1c5   :  { %3139 = vmatmul.mubr.bf16.gmra.mrb[120].mxu1 %v6797_v14  ;;  %v6845_v14 = vld [vmem:[%s9479_s5 + $0x28] ss:$16 sps:$4 sm:$0xff]  }
 0x1c6   :  { %3146 = vmatprep.mubr.bf16.mxu1 %v6798_v18  ;;  %v6846_v18 = vld [vmem:[%s9479_s5 + $0x4c] ss:$16 sps:$4 sm:$0xff]  }
 0x1cd   :  { %3147 = vmatmul.mubr.bf16.gmra.mrb[124].mxu1 %v6800_v40  ;;  %v6848_v40 = vld [vmem:[%s9479_s5 + $0x48] ss:$16 sps:$4 sm:$0xff]  }
 0x1ce   :  { %3154 = vmatprep.mubr.bf16.mxu1 %v6801_v63  ;;  %v6849_v63 = vld [vmem:[%s9479_s5 + $0x6c] ss:$16 sps:$4 sm:$0xff]  }
 0x1d5   :  { %3155 = vmatmul.mubr.bf16.gmra.mrb[128].mxu1 %v6803_v1  ;;  %v6851_v1 = vld [vmem:[%s9479_s5 + $0x68] ss:$16 sps:$4 sm:$0xff]  }
 0x1d6   :  { %3162 = vmatprep.mubr.bf16.mxu1 %v6804_v12  ;;  %v6852_v12 = vld [vmem:[%s9479_s5 + $0x8c] ss:$16 sps:$4 sm:$0xff]  }
 0x1dd   :  { %3163 = vmatmul.mubr.bf16.gmra.mrb[132].mxu1 %v6806_v9  ;;  %v6854_v9 = vld [vmem:[%s9479_s5 + $0x88] ss:$16 sps:$4 sm:$0xff]  }
 0x1de   :  { %3170 = vmatprep.mubr.bf16.mxu1 %v6807_v4  ;;  %v6855_v4 = vld [vmem:[%s9479_s5 + $0xac] ss:$16 sps:$4 sm:$0xff]  }
 0x1e5   :  { %3171 = vmatmul.mubr.bf16.gmra.mrb[136].mxu1 %v6809_v48  ;;  %v6857_v48 = vld [vmem:[%s9479_s5 + $0xa8] ss:$16 sps:$4 sm:$0xff]  }
 0x1e6   :  { %3178 = vmatprep.mubr.bf16.mxu1 %v6810_v36  ;;  %v6858_v36 = vld [vmem:[%s9479_s5 + $0xcc] ss:$16 sps:$4 sm:$0xff]  }
 0x1ed   :  { %3179 = vmatmul.mubr.bf16.gmra.mrb[140].mxu1 %v6812_v20  ;;  %v6860_v20 = vld [vmem:[%s9479_s5 + $0xc8] ss:$16 sps:$4 sm:$0xff]  }
 0x1ee   :  { %3186 = vmatprep.mubr.bf16.mxu1 %v6813_v56  ;;  %v6861_v56 = vld [vmem:[%s9479_s5 + $0xec] ss:$16 sps:$4 sm:$0xff]  }
 0x1f5   :  { %3187 = vmatmul.mubr.bf16.gmra.mrb[144].mxu1 %v6815_v41  ;;  %v6863_v41 = vld [vmem:[%s9479_s5 + $0xe8] ss:$16 sps:$4 sm:$0xff]  }
 0x1f6   :  { %3194 = vmatprep.mubr.bf16.mxu1 %v6816_v43  ;;  %v6864_v43 = vld [vmem:[%s9479_s5 + $0x10c] ss:$16 sps:$4 sm:$0xff]  }
 0x1fd   :  { %3195 = vmatmul.mubr.bf16.gmra.mrb[148].mxu1 %v6818_v19  ;;  %v6866_v19 = vld [vmem:[%s9479_s5 + $0x108] ss:$16 sps:$4 sm:$0xff]  }
 0x1fe   :  { %3202 = vmatprep.mubr.bf16.mxu1 %v6819_v3  ;;  %v6867_v3 = vld [vmem:[%s9479_s5 + $0x12c] ss:$16 sps:$4 sm:$0xff]  }
 0x205   :  { %3203 = vmatmul.mubr.bf16.gmra.mrb[152].mxu1 %v6821_v0  ;;  %v6869_v0 = vld [vmem:[%s9479_s5 + $0x128] ss:$16 sps:$4 sm:$0xff]  }
 0x206   :  { %3210 = vmatprep.mubr.bf16.mxu1 %v6822_v10  ;;  %v6870_v10 = vld [vmem:[%s9479_s5 + $0x14c] ss:$16 sps:$4 sm:$0xff]  }
 0x20d   :  { %3211 = vmatmul.mubr.bf16.gmra.mrb[156].mxu1 %v6824_v54  ;;  %v6872_v54 = vld [vmem:[%s9479_s5 + $0x148] ss:$16 sps:$4 sm:$0xff]  }
 0x20e   :  { %3218 = vmatprep.mubr.bf16.mxu1 %v6825_v2  ;;  %v6873_v2 = vld [vmem:[%s9479_s5 + $0x16c] ss:$16 sps:$4 sm:$0xff]  }
 0x215   :  { %3219 = vmatmul.mubr.bf16.gmra.mrb[160].mxu1 %v6827_v62  ;;  %v6875_v62 = vld [vmem:[%s9479_s5 + $0x168] ss:$16 sps:$4 sm:$0xff]  }
 0x216   :  { %3226 = vmatprep.mubr.bf16.mxu1 %v6828_v34  ;;  %v6876_v34 = vld [vmem:[%s9479_s5 + $0x18c] ss:$16 sps:$4 sm:$0xff]  }
 0x21d   :  { %3227 = vmatmul.mubr.bf16.gmra.mrb[164].mxu1 %v6830_v50  ;;  %v6878_v50 = vld [vmem:[%s9479_s5 + $0x188] ss:$16 sps:$4 sm:$0xff]  }
 0x21e   :  { %3234 = vmatprep.mubr.bf16.mxu1 %v6831_v26  ;;  %v6879_v26 = vld [vmem:[%s9479_s5 + $0x1ac] ss:$16 sps:$4 sm:$0xff]  }
 0x225   :  { %3235 = vmatmul.mubr.bf16.gmra.mrb[168].mxu1 %v6833_v58  ;;  %v6881_v58 = vld [vmem:[%s9479_s5 + $0x1a8] ss:$16 sps:$4 sm:$0xff]  }
 0x226   :  { %3242 = vmatprep.mubr.bf16.mxu1 %v6834_v39  ;;  %v6882_v39 = vld [vmem:[%s9479_s5 + $0x1cc] ss:$16 sps:$4 sm:$0xff]  }
 0x22d   :  { %3243 = vmatmul.mubr.bf16.gmra.mrb[172].mxu1 %v6836_v11  ;;  %v6884_v11 = vld [vmem:[%s9479_s5 + $0x1c8] ss:$16 sps:$4 sm:$0xff]  }
 0x22e   :  { %3250 = vmatprep.mubr.bf16.mxu1 %v6837_v51  ;;  %v6885_v51 = vld [vmem:[%s9479_s5 + $0x1ec] ss:$16 sps:$4 sm:$0xff]  }
 0x235   :  { %3251 = vmatmul.mubr.bf16.gmra.mrb[176].mxu1 %v6839_v45  ;;  %v6887_v45 = vld [vmem:[%s9479_s5 + $0x1e8] ss:$16 sps:$4 sm:$0xff]  }
 0x236   :  { %3291 = vmatprep.mubr.bf16.mxu1 %v6842_v33  ;;  %v6888_v33 = vld [vmem:[%s9479_s5 + $0x20c] ss:$16 sps:$4 sm:$0xff]  }
 0x23d   :  { %3292 = vmatmul.mubr.bf16.vlgmr.msra.gmra.mrb[52].mxu1 %v6840_v55  ;;  %v6890_v55 = vld [vmem:[%s9479_s5 + $0x208] ss:$16 sps:$4 sm:$0xff]  }
 0x23e   :  { %3299 = vmatprep.mubr.bf16.mxu1 %v6843_v59  ;;  %v6891_v59 = vld [vmem:[%s9479_s5 + $0x22c] ss:$16 sps:$4 sm:$0xff]  }
 0x245   :  { %3300 = vmatmul.mubr.bf16.gmra.mrb[56].mxu1 %v6845_v14  ;;  %v6893_v14 = vld [vmem:[%s9479_s5 + $0x228] ss:$16 sps:$4 sm:$0xff]  }
 0x246   :  { %3307 = vmatprep.mubr.bf16.mxu1 %v6846_v18  ;;  %v6894_v18 = vld [vmem:[%s9479_s5 + $0x24c] ss:$16 sps:$4 sm:$0xff]  }
 0x24d   :  { %3308 = vmatmul.mubr.bf16.gmra.mrb[60].mxu1 %v6848_v40  ;;  %v6896_v40 = vld [vmem:[%s9479_s5 + $0x248] ss:$16 sps:$4 sm:$0xff]  }
 0x24e   :  { %3315 = vmatprep.mubr.bf16.mxu1 %v6849_v63  ;;  %v6897_v63 = vld [vmem:[%s9479_s5 + $0x26c] ss:$16 sps:$4 sm:$0xff]  }
 0x255   :  { %3316 = vmatmul.mubr.bf16.gmra.mrb[64].mxu1 %v6851_v1  ;;  %v6899_v1 = vld [vmem:[%s9479_s5 + $0x268] ss:$16 sps:$4 sm:$0xff]  }
 0x256   :  { %3323 = vmatprep.mubr.bf16.mxu1 %v6852_v12  ;;  %v6900_v12 = vld [vmem:[%s9479_s5 + $0x28c] ss:$16 sps:$4 sm:$0xff]  }
 0x25d   :  { %3324 = vmatmul.mubr.bf16.gmra.mrb[68].mxu1 %v6854_v9  ;;  %v6902_v9 = vld [vmem:[%s9479_s5 + $0x288] ss:$16 sps:$4 sm:$0xff]  }
 0x25e   :  { %3331 = vmatprep.mubr.bf16.mxu1 %v6855_v4  ;;  %v6903_v4 = vld [vmem:[%s9479_s5 + $0x2ac] ss:$16 sps:$4 sm:$0xff]  }
 0x265   :  { %3332 = vmatmul.mubr.bf16.gmra.mrb[72].mxu1 %v6857_v48  ;;  %v6905_v48 = vld [vmem:[%s9479_s5 + $0x2a8] ss:$16 sps:$4 sm:$0xff]  }
 0x266   :  { %3339 = vmatprep.mubr.bf16.mxu1 %v6858_v36  ;;  %v6906_v36 = vld [vmem:[%s9479_s5 + $0x2cc] ss:$16 sps:$4 sm:$0xff]  }
 0x26d   :  { %3340 = vmatmul.mubr.bf16.gmra.mrb[76].mxu1 %v6860_v20  ;;  %v6908_v20 = vld [vmem:[%s9479_s5 + $0x2c8] ss:$16 sps:$4 sm:$0xff]  }
 0x26e   :  { %3347 = vmatprep.mubr.bf16.mxu1 %v6861_v56  ;;  %v6909_v56 = vld [vmem:[%s9479_s5 + $0x2ec] ss:$16 sps:$4 sm:$0xff]  }
 0x275   :  { %3348 = vmatmul.mubr.bf16.gmra.mrb[80].mxu1 %v6863_v41  ;;  %v6911_v41 = vld [vmem:[%s9479_s5 + $0x2e8] ss:$16 sps:$4 sm:$0xff]  }
 0x276   :  { %3355 = vmatprep.mubr.bf16.mxu1 %v6864_v43  ;;  %v6912_v43 = vld [vmem:[%s9479_s5 + $0x30c] ss:$16 sps:$4 sm:$0xff]  }
 0x27d   :  { %3356 = vmatmul.mubr.bf16.gmra.mrb[84].mxu1 %v6866_v19  ;;  %v6914_v19 = vld [vmem:[%s9479_s5 + $0x308] ss:$16 sps:$4 sm:$0xff]  }
 0x27e   :  { %3363 = vmatprep.mubr.bf16.mxu1 %v6867_v3  ;;  %v6915_v3 = vld [vmem:[%s9479_s5 + $0x32c] ss:$16 sps:$4 sm:$0xff]  }
 0x285   :  { %3364 = vmatmul.mubr.bf16.gmra.mrb[88].mxu1 %v6869_v0  ;;  %v6917_v0 = vld [vmem:[%s9479_s5 + $0x328] ss:$16 sps:$4 sm:$0xff]  }
 0x286   :  { %3371 = vmatprep.mubr.bf16.mxu1 %v6870_v10  ;;  %v6918_v10 = vld [vmem:[%s9479_s5 + $0x34c] ss:$16 sps:$4 sm:$0xff]  }
 0x28d   :  { %3372 = vmatmul.mubr.bf16.gmra.mrb[92].mxu1 %v6872_v54  ;;  %v6920_v54 = vld [vmem:[%s9479_s5 + $0x348] ss:$16 sps:$4 sm:$0xff]  }
 0x28e   :  { %3379 = vmatprep.mubr.bf16.mxu1 %v6873_v2  ;;  %v6921_v2 = vld [vmem:[%s9479_s5 + $0x36c] ss:$16 sps:$4 sm:$0xff]  }
 0x295   :  { %3380 = vmatmul.mubr.bf16.gmra.mrb[96].mxu1 %v6875_v62 }
 0x296   :  { %3387 = vmatprep.mubr.bf16.mxu1 %v6876_v34  ;;  %v6923_v34 = vld [vmem:[%s9479_s5 + $0x368] ss:$16 sps:$4 sm:$0xff]  }
 0x29d   :  { %3388 = vmatmul.mubr.bf16.gmra.mrb[100].mxu1 %v6878_v50 }
 0x29e   :  { %3395 = vmatprep.mubr.bf16.mxu1 %v6879_v26 }
 0x2a5   :  { %3396 = vmatmul.mubr.bf16.gmra.mrb[104].mxu1 %v6881_v58  ;;  %v6938_v58 = vld [vmem:[%s9482_s7 + $0x4] ss:$16 sps:$4 sm:$0xff]  }
 0x2a6   :  { %3403 = vmatprep.mubr.bf16.mxu1 %v6882_v39  ;;  %4828 = vmatprep.mubr.bf16.mxu0 %v6938_v58 }
 0x2ad   :  { %3404 = vmatmul.mubr.bf16.gmra.mrb[108].mxu1 %v6884_v11  ;;  %v6924_v11 = vld [vmem:[%s9479_s5 + $0x38c] ss:$16 sps:$4 sm:$0xff]  }
 0x2ae   :  { %3411 = vmatprep.mubr.bf16.mxu1 %v6885_v51 }
 0x2b5   :  { %3412 = vmatmul.mubr.bf16.gmra.mrb[112].mxu1 %v6887_v45 }
 0x2b6   :  { %3419 = vmatprep.mubr.bf16.mxu1 %v6888_v33 }
 0x2bd   :  { %3420 = vmatmul.mubr.bf16.gmra.mrb[116].mxu1 %v6890_v55 }
 0x2be   :  { %3427 = vmatprep.mubr.bf16.mxu1 %v6891_v59 }
 0x2c5   :  { %3428 = vmatmul.mubr.bf16.gmra.mrb[120].mxu1 %v6893_v14 }
 0x2c6   :  { %3435 = vmatprep.mubr.bf16.mxu1 %v6894_v18 }
 0x2cd   :  { %3436 = vmatmul.mubr.bf16.gmra.mrb[124].mxu1 %v6896_v40  ;;  %v6926_v40 = vld [vmem:[%s9479_s5 + $0x388] ss:$16 sps:$4 sm:$0xff]  }
 0x2ce   :  { %3443 = vmatprep.mubr.bf16.mxu1 %v6897_v63 }
 0x2d5   :  { %3444 = vmatmul.mubr.bf16.gmra.mrb[128].mxu1 %v6899_v1 }
 0x2d6   :  { %3451 = vmatprep.mubr.bf16.mxu1 %v6900_v12 }
 0x2dd   :  { %3452 = vmatmul.mubr.bf16.gmra.mrb[132].mxu1 %v6902_v9 }
 0x2de   :  { %3459 = vmatprep.mubr.bf16.mxu1 %v6903_v4 }
 0x2e5   :  { %3460 = vmatmul.mubr.bf16.gmra.mrb[136].mxu1 %v6905_v48 }
 0x2e6   :  { %3467 = vmatprep.mubr.bf16.mxu1 %v6906_v36 }
 0x2ed   :  { %3468 = vmatmul.mubr.bf16.gmra.mrb[140].mxu1 %v6908_v20 }
 0x2ee   :  { %3475 = vmatprep.mubr.bf16.mxu1 %v6909_v56  ;;  %v6929_v56 = vld [vmem:[%s9479_s5 + $0x3a8] ss:$16 sps:$4 sm:$0xff]  }
 0x2f5   :  { %3476 = vmatmul.mubr.bf16.gmra.mrb[144].mxu1 %v6911_v41 }
 0x2f6   :  { %3483 = vmatprep.mubr.bf16.mxu1 %v6912_v43 }
 0x2fd   :  { %3484 = vmatmul.mubr.bf16.gmra.mrb[148].mxu1 %v6914_v19 }
 0x2fe   :  { %3491 = vmatprep.mubr.bf16.mxu1 %v6915_v3 }
 0x305   :  { %3492 = vmatmul.mubr.bf16.gmra.mrb[152].mxu1 %v6917_v0 }
 0x306   :  { %3499 = vmatprep.mubr.bf16.mxu1 %v6918_v10 }
 0x30d   :  { %3500 = vmatmul.mubr.bf16.gmra.mrb[156].mxu1 %v6920_v54 }
 0x30e   :  { %3507 = vmatprep.mubr.bf16.mxu1 %v6921_v2 }
 0x310   :  { %v3293_v62 = vpop.f32.mrb[52].mxu1 }
 0x311   :  { %v6277_v50 = vadd.f32 %v3293_v62, %v8160_v31  ;;  %v3295_v26 = vpop.f32.mrb[53].mxu1  ;;  %v6932_v62 = vld [vmem:[%s9479_s5 + $0x3c8] ss:$16 sps:$4 sm:$0xff]  }
 0x312   :  { %v3296_v39 = vpop.f32.mrb[54].mxu1 }
 0x313   :  { %v6278_v51 = vadd.f32 %v3296_v39, %v8164_v38  ;;  %v3298_v45 = vpop.f32.mrb[55].mxu1  ;;  %v3548_v33 = vmax.f32 %v6277_v50, 0.0  ;;  %v6927_v38 = vld [vmem:[%s9479_s5 + $0x3ac] ss:$16 sps:$4 sm:$0xff]  }
 0x315   :  { %v3549_v55 = vmax.f32 %v6278_v51, 0.0  ;;  %3508 = vmatmul.mubr.bf16.gmra.mrb[160].mxu1 %v6923_v34 }
 0x316   :  { %3515 = vmatprep.mubr.bf16.mxu1 %v6924_v11 }
 0x317   :  { %v3740_v59 = vpack.c.bf16 %v3549_v55, %v3548_v33  ;;  %v6935_v33 = vld [vmem:[%s9479_s5 + $0x3e8] ss:$16 sps:$4 sm:$0xff]  }
 0x318   :  { %v3301_v31 = vpop.f32.mrb[56].mxu1 }
 0x319   :  { %v6279_v14 = vadd.f32 %v3301_v31, %v8181_v23  ;;  %v3303_v18 = vpop.f32.mrb[57].mxu1  ;;  %4797 = vmatpush1.bf16.msra.mxu0 %v3740_v59 }
 0x31a   :  { %v3304_v63 = vpop.f32.mrb[58].mxu1  ;;  %4798 = vmatprep.subr.bf16.mxu0 %v9493_v8 }
 0x31b   :  { %v6280_v1 = vadd.f32 %v3304_v63, %v8190_v6  ;;  %v3306_v12 = vpop.f32.mrb[59].mxu1  ;;  %v3550_v9 = vmax.f32 %v6279_v14, 0.0  ;;  %v6930_v6 = vld [vmem:[%s9479_s5 + $0x3cc] ss:$16 sps:$4 sm:$0xff]  }
 0x31d   :  { %v3551_v4 = vmax.f32 %v6280_v1, 0.0  ;;  %3516 = vmatmul.mubr.bf16.gmra.mrb[164].mxu1 %v6926_v40 }
 0x31e   :  { %3523 = vmatprep.mubr.bf16.mxu1 %v6927_v38 }
 0x31f   :  { %v3741_v23 = vpack.c.bf16 %v3551_v4, %v3550_v9 }
 0x320   :  { %v3309_v48 = vpop.f32.mrb[60].mxu1 }
 0x321   :  { %v6281_v36 = vadd.f32 %v3309_v48, %v8209_v32  ;;  %v3311_v20 = vpop.f32.mrb[61].mxu1  ;;  %4799 = vmatpush1.bf16.msra.mxu0 %v3741_v23 }
 0x322   :  { %v3312_v41 = vpop.f32.mrb[62].mxu1  ;;  %4800 = vmatprep.subr.bf16.mxu0 %v9493_v8 }
 0x323   :  { %v6282_v43 = vadd.f32 %v3312_v41, %v8213_v24  ;;  %v3314_v19 = vpop.f32.mrb[63].mxu1  ;;  %v3552_v3 = vmax.f32 %v6281_v36, 0.0  ;;  %v6933_v24 = vld [vmem:[%s9479_s5 + $0x3ec] ss:$16 sps:$4 sm:$0xff]  }
 0x325   :  { %v3553_v0 = vmax.f32 %v6282_v43, 0.0  ;;  %3524 = vmatmul.mubr.bf16.gmra.mrb[168].mxu1 %v6929_v56 }
 0x326   :  { %3531 = vmatprep.mubr.bf16.mxu1 %v6930_v6 }
 0x327   :  { %v3742_v32 = vpack.c.bf16 %v3553_v0, %v3552_v3 }
 0x328   :  { %v3317_v10 = vpop.f32.mrb[64].mxu1 }
 0x329   :  { %v6283_v54 = vadd.f32 %v3317_v10, %v8237_v25  ;;  %v3319_v2 = vpop.f32.mrb[65].mxu1  ;;  %4801 = vmatpush1.bf16.msra.mxu0 %v3742_v32 }
 0x32a   :  { %v3320_v34 = vpop.f32.mrb[66].mxu1  ;;  %4802 = vmatprep.subr.bf16.mxu0 %v9493_v8 }
 0x32b   :  { %v6284_v50 = vadd.f32 %v3320_v34, %v8244_v44  ;;  %v3322_v26 = vpop.f32.mrb[67].mxu1  ;;  %v3554_v58 = vmax.f32 %v6283_v54, 0.0 }
 0x32d   :  { %v3555_v39 = vmax.f32 %v6284_v50, 0.0  ;;  %3532 = vmatmul.mubr.bf16.gmra.mrb[172].mxu1 %v6932_v62 }
 0x32e   :  { %3539 = vmatprep.mubr.bf16.mxu1 %v6933_v24 }
 0x32f   :  { %v3743_v25 = vpack.c.bf16 %v3555_v39, %v3554_v58 }
 0x330   :  { %v3325_v11 = vpop.f32.mrb[68].mxu1 }
 0x331   :  { %v6285_v51 = vadd.f32 %v3325_v11, %v8272_v22  ;;  %v3327_v45 = vpop.f32.mrb[69].mxu1  ;;  %4803 = vmatpush1.bf16.msra.mxu0 %v3743_v25 }
 0x332   :  { %v3328_v55 = vpop.f32.mrb[70].mxu1  ;;  %4804 = vmatprep.subr.bf16.mxu0 %v9493_v8 }
 0x333   :  { %v6286_v44 = vadd.f32 %v3328_v55, %v8279_v29  ;;  %v3330_v59 = vpop.f32.mrb[71].mxu1  ;;  %v3556_v31 = vmax.f32 %v6285_v51, 0.0 }
 0x335   :  { %v3557_v14 = vmax.f32 %v6286_v44, 0.0  ;;  %3540 = vmatmul.mubr.bf16.gmra.mrb[176].mxu1 %v6935_v33 }
 0x337   :  { %v3744_v18 = vpack.c.bf16 %v3557_v14, %v3556_v31 }
 0x338   :  { %v3333_v40 = vpop.f32.mrb[72].mxu1 }
 0x339   :  { %v6287_v63 = vadd.f32 %v3333_v40, %v8299_v15  ;;  %v3335_v22 = vpop.f32.mrb[73].mxu1  ;;  %4805 = vmatpush1.bf16.msra.mxu0 %v3744_v18 }
 0x33a   :  { %v3336_v38 = vpop.f32.mrb[74].mxu1  ;;  %4806 = vmatprep.subr.bf16.mxu0 %v9493_v8 }
 0x33b   :  { %v6288_v1 = vadd.f32 %v3336_v38, %v8308_v61  ;;  %v3338_v12 = vpop.f32.mrb[75].mxu1  ;;  %v3558_v9 = vmax.f32 %v6287_v63, 0.0 }
 0x33d   :  { %v3559_v4 = vmax.f32 %v6288_v1, 0.0 }
 0x33f   :  { %v3745_v23 = vpack.c.bf16 %v3559_v4, %v3558_v9 }
 0x340   :  { %v3341_v29 = vpop.f32.mrb[76].mxu1 }
 0x341   :  { %v6289_v48 = vadd.f32 %v3341_v29, %v8333_v47  ;;  %v3343_v36 = vpop.f32.mrb[77].mxu1  ;;  %4807 = vmatpush1.bf16.msra.mxu0 %v3745_v23 }
 0x342   :  { %v3344_v20 = vpop.f32.mrb[78].mxu1  ;;  %4808 = vmatprep.subr.bf16.mxu0 %v9493_v8 }
 0x343   :  { %v6290_v15 = vadd.f32 %v3344_v20, %v8337_v53  ;;  %v3346_v56 = vpop.f32.mrb[79].mxu1  ;;  %v3560_v41 = vmax.f32 %v6289_v48, 0.0 }
 0x345   :  { %v3561_v6 = vmax.f32 %v6290_v15, 0.0 }
 0x347   :  { %v3746_v43 = vpack.c.bf16 %v3561_v6, %v3560_v41 }
 0x348   :  { %v3349_v19 = vpop.f32.mrb[80].mxu1 }
 0x349   :  { %v6291_v61 = vadd.f32 %v3349_v19, %v8361_v57  ;;  %v3351_v3 = vpop.f32.mrb[81].mxu1  ;;  %4809 = vmatpush1.bf16.msra.mxu0 %v3746_v43 }
 0x34a   :  { %v3352_v0 = vpop.f32.mrb[82].mxu1  ;;  %4810 = vmatprep.subr.bf16.mxu0 %v9493_v8 }
 0x34b   :  { %v6292_v47 = vadd.f32 %v3352_v0, %v8368_v49  ;;  %v3354_v32 = vpop.f32.mrb[83].mxu1  ;;  %v3562_v10 = vmax.f32 %v6291_v61, 0.0 }
 0x34d   :  { %v3563_v54 = vmax.f32 %v6292_v47, 0.0 }
 0x34f   :  { %v3747_v2 = vpack.c.bf16 %v3563_v54, %v3562_v10 }
 0x350   :  { %v3357_v62 = vpop.f32.mrb[84].mxu1 }
 0x351   :  { %v6293_v53 = vadd.f32 %v3357_v62, %v8390_v28  ;;  %v3359_v34 = vpop.f32.mrb[85].mxu1  ;;  %4811 = vmatpush1.bf16.msra.mxu0 %v3747_v2 }
 0x352   :  { %v3360_v24 = vpop.f32.mrb[86].mxu1  ;;  %4812 = vmatprep.subr.bf16.mxu0 %v9493_v8 }
 0x353   :  { %v6294_v57 = vadd.f32 %v3360_v24, %v8395_v7  ;;  %v3362_v50 = vpop.f32.mrb[87].mxu1  ;;  %v3564_v26 = vmax.f32 %v6293_v53, 0.0 }
 0x355   :  { %v3565_v58 = vmax.f32 %v6294_v57, 0.0 }
 0x357   :  { %v3748_v39 = vpack.c.bf16 %v3565_v58, %v3564_v26  ;;  %v2168_v26 = vpop.permute.xlu1 %2167 }
 0x358   :  { %v3365_v25 = vpop.f32.mrb[88].mxu1 }
 0x359   :  { %v6295_v49 = vadd.f32 %v3365_v25, %v8413_v5  ;;  %v3367_v11 = vpop.f32.mrb[89].mxu1  ;;  %4813 = vmatpush1.bf16.msra.mxu0 %v3748_v39 }
 0x35a   :  { %v3368_v51 = vpop.f32.mrb[90].mxu1  ;;  %4814 = vmatprep.subr.bf16.mxu0 %v9493_v8 }
 0x35b   :  { %v6296_v28 = vadd.f32 %v3368_v51, %v8420_v52  ;;  %v3370_v45 = vpop.f32.mrb[91].mxu1  ;;  %v3566_v33 = vmax.f32 %v6295_v49, 0.0  ;;  %v2173_v51 = vpop.permute.xlu0 %2172 }
 0x35d   :  { %v3567_v55 = vmax.f32 %v6296_v28, 0.0  ;;  %v6936_v28 = vld [vmem:[%s9482_s7] ss:$16 sps:$4 sm:$0xff]  }
 0x35f   :  { %v3749_v44 = vpack.c.bf16 %v3567_v55, %v3566_v33  ;;  %v2178_v55 = vpop.permute.xlu1 %2177 }
 0x360   :  { %v3373_v59 = vpop.f32.mrb[92].mxu1 }
 0x361   :  { %v6297_v7 = vadd.f32 %v3373_v59, %v8441_v27  ;;  %v3375_v31 = vpop.f32.mrb[93].mxu1  ;;  %4815 = vmatpush1.bf16.msra.mxu0 %v3749_v44 }
 0x362   :  { %v3376_v14 = vpop.f32.mrb[94].mxu1  ;;  %4816 = vmatprep.subr.bf16.mxu0 %v9493_v8 }
 0x363   :  { %v6298_v5 = vadd.f32 %v3376_v14, %v8445_v42  ;;  %v3378_v18 = vpop.f32.mrb[95].mxu1  ;;  %v3568_v40 = vmax.f32 %v6297_v7, 0.0 }
 0x364   :  { %v2183_v18 = vpop.permute.xlu0 %2182 }
 0x365   :  { %v3569_v63 = vmax.f32 %v6298_v5, 0.0 }
 0x367   :  { %v3750_v22 = vpack.c.bf16 %v3569_v63, %v3568_v40  ;;  %v6941_v63 = vld [vmem:[%s9482_s7 + $0x20] ss:$16 sps:$4 sm:$0xff]  }
 0x368   :  { %v3381_v38 = vpop.f32.mrb[96].mxu1 }
 0x369   :  { %v6299_v52 = vadd.f32 %v3381_v38, %v8461_v46  ;;  %v3383_v1 = vpop.f32.mrb[97].mxu1  ;;  %4817 = vmatpush1.bf16.msra.mxu0 %v3750_v22 }
 0x36a   :  { %v3384_v12 = vpop.f32.mrb[98].mxu1  ;;  %4818 = vmatprep.subr.bf16.mxu0 %v9493_v8  ;;  %v2188_v1 = vpop.permute.xlu1 %2187 }
 0x36b   :  { %v6300_v27 = vadd.f32 %v3384_v12, %v8468_v37  ;;  %v3386_v9 = vpop.f32.mrb[99].mxu1  ;;  %v3570_v4 = vmax.f32 %v6299_v52, 0.0  ;;  %v6942_v52 = vld [vmem:[%s9482_s7 + $0x44] ss:$16 sps:$4 sm:$0xff]  }
 0x36d   :  { %v3571_v23 = vmax.f32 %v6300_v27, 0.0 }
 0x36f   :  { %v3751_v29 = vpack.c.bf16 %v3571_v23, %v3570_v4 }
 0x370   :  { %v3389_v48 = vpop.f32.mrb[100].mxu1 }
 0x371   :  { %v6301_v42 = vadd.f32 %v3389_v48, %v8490_v30  ;;  %v3391_v36 = vpop.f32.mrb[101].mxu1  ;;  %4819 = vmatpush1.bf16.msra.mxu0 %v3751_v29  ;;  %v2193_v48 = vpop.permute.xlu0 %2192 }
 0x372   :  { %v3392_v20 = vpop.f32.mrb[102].mxu1  ;;  %4820 = vmatprep.subr.bf16.mxu0 %v9493_v8  ;;  %v6944_v36 = vld [vmem:[%s9482_s7 + $0x40] ss:$16 sps:$4 sm:$0xff]  }
 0x373   :  { %v6302_v46 = vadd.f32 %v3392_v20, %v8495_v21  ;;  %v3394_v15 = vpop.f32.mrb[103].mxu1  ;;  %v3572_v56 = vmax.f32 %v6301_v42, 0.0 }
 0x374   :  { %v6945_v15 = vld [vmem:[%s9482_s7 + $0x64] ss:$16 sps:$4 sm:$0xff]  }
 0x375   :  { %v3573_v41 = vmax.f32 %v6302_v46, 0.0 }
 0x377   :  { %v3752_v6 = vpack.c.bf16 %v3573_v41, %v3572_v56  ;;  %v2198_v56 = vpop.permute.xlu1 %2197 }
 0x378   :  { %v3397_v43 = vpop.f32.mrb[104].mxu1 }
 0x379   :  { %v6303_v37 = vadd.f32 %v3397_v43, %v8507_v16  ;;  %v3399_v19 = vpop.f32.mrb[105].mxu1  ;;  %4821 = vmatpush1.bf16.msra.mxu0 %v3752_v6 }
 0x37a   :  { %v3400_v61 = vpop.f32.mrb[106].mxu1  ;;  %4822 = vmatprep.subr.bf16.mxu0 %v9493_v8 }
 0x37b   :  { %v6304_v30 = vadd.f32 %v3400_v61, %v8513_v17  ;;  %v3402_v3 = vpop.f32.mrb[107].mxu1  ;;  %v3574_v0 = vmax.f32 %v6303_v37, 0.0 }
 0x37d   :  { %v3575_v47 = vmax.f32 %v6304_v30, 0.0  ;;  %v2203_v30 = vpop.permute.xlu0 %2202 }
 0x37f   :  { %v3753_v32 = vpack.c.bf16 %v3575_v47, %v3574_v0  ;;  %v6947_v0 = vld [vmem:[%s9482_s7 + $0x60] ss:$16 sps:$4 sm:$0xff]  }
 0x380   :  { %v3405_v10 = vpop.f32.mrb[108].mxu1 }
 0x381   :  { %v6305_v21 = vadd.f32 %v3405_v10, %v8530_v13  ;;  %v3407_v54 = vpop.f32.mrb[109].mxu1  ;;  %4823 = vmatpush1.bf16.msra.mxu0 %v3753_v32  ;;  %v6948_v10 = vld [vmem:[%s9482_s7 + $0x84] ss:$16 sps:$4 sm:$0xff]  }
 0x382   :  { %v3408_v2 = vpop.f32.mrb[110].mxu1  ;;  %4824 = vmatprep.subr.bf16.mxu0 %v9493_v8 }
 0x383   :  { %v6306_v16 = vadd.f32 %v3408_v2, %v8532_v35  ;;  %v3410_v62 = vpop.f32.mrb[111].mxu1  ;;  %v3576_v53 = vmax.f32 %v6305_v21, 0.0  ;;  %v2208_v21 = vpop.permute.xlu1 %2207 }
 0x385   :  { %v3577_v34 = vmax.f32 %v6306_v16, 0.0 }
 0x387   :  { %v3754_v24 = vpack.c.bf16 %v3577_v34, %v3576_v53 }
 0x388   :  { %v3413_v57 = vpop.f32.mrb[112].mxu1 }
 0x389   :  { %v6307_v17 = vadd.f32 %v3413_v57, %v8540_v60  ;;  %v3415_v50 = vpop.f32.mrb[113].mxu1  ;;  %4825 = vmatpush1.bf16.msra.mxu0 %v3754_v24  ;;  %v6939_v60 = vld [vmem:[%s9482_s7 + $0x24] ss:$16 sps:$4 sm:$0xff]   ;;  %v2213_v24 = vpop.permute.xlu0 %2212 }
 0x38a   :  { %v3416_v58 = vpop.f32.mrb[114].mxu1  ;;  %4826 = vmatprep.subr.bf16.mxu0 %v9493_v8 }
 0x38b   :  { %v6308_v13 = vadd.f32 %v3416_v58, %v2168_v26  ;;  %v3418_v39 = vpop.f32.mrb[115].mxu1  ;;  %v3578_v25 = vmax.f32 %v6307_v17, 0.0  ;;  %v6950_v17 = vld [vmem:[%s9482_s7 + $0x80] ss:$16 sps:$4 sm:$0xff]   ;;  %v6951_v58 = vld [vmem:[%s9482_s7 + $0xa4] ss:$16 sps:$4 sm:$0xff]  }
 0x38d   :  { %v3579_v49 = vmax.f32 %v6308_v13, 0.0  ;;  %v2218_v13 = vpop.permute.xlu1 %2217 }
 0x38f   :  { %v3755_v11 = vpack.c.bf16 %v3579_v49, %v3578_v25 }
 0x390   :  { %v3421_v35 = vpop.f32.mrb[116].mxu1 }
 0x391   :  { %v6309_v45 = vadd.f32 %v3421_v35, %v2173_v51  ;;  %v3423_v33 = vpop.f32.mrb[117].mxu1  ;;  %4827 = vmatpush1.bf16.msra.mxu0 %v3755_v11 }
 0x392   :  { %v3424_v44 = vpop.f32.mrb[118].mxu1  ;;  %5085 = vmatprep.subr.bf16.mxu0 %v9493_v8  ;;  %v6953_v33 = vld [vmem:[%s9482_s7 + $0xa0] ss:$16 sps:$4 sm:$0xff]  }
 0x393   :  { %v6310_v59 = vadd.f32 %v3424_v44, %v2178_v55  ;;  %v3426_v7 = vpop.f32.mrb[119].mxu1  ;;  %v3580_v31 = vmax.f32 %v6309_v45, 0.0  ;;  %v6954_v44 = vld [vmem:[%s9482_s7 + $0xc4] ss:$16 sps:$4 sm:$0xff]  }
 0x394   :  { %4829 = vmatmul.mubr.bf16.vlgmr.msra.gmra.mrb[64].mxu0 %v6936_v28  ;;  %v2223_v28 = vpop.permute.xlu0 %2222 }
 0x395   :  { %v3581_v14 = vmax.f32 %v6310_v59, 0.0  ;;  %4836 = vmatprep.mubr.bf16.mxu0 %v6939_v60  ;;  %v2228_v59 = vpop.permute.xlu1 %2227 }
 0x397   :  { %v3756_v5 = vpack.c.bf16 %v3581_v14, %v3580_v31 }
 0x398   :  { %v3429_v40 = vpop.f32.mrb[120].mxu1 }
 0x399   :  { %v6311_v22 = vadd.f32 %v3429_v40, %v2183_v18  ;;  %v3431_v38 = vpop.f32.mrb[121].mxu1  ;;  %5086 = vmatpush1.bf16.msra.mxu0 %v3756_v5 }
 0x39a   :  { %v3432_v12 = vpop.f32.mrb[122].mxu1  ;;  %5087 = vmatprep.subr.bf16.mxu0 %v9493_v8  ;;  %v6956_v38 = vld [vmem:[%s9482_s7 + $0xc0] ss:$16 sps:$4 sm:$0xff]  }
 0x39b   :  { %v6312_v27 = vadd.f32 %v3432_v12, %v2188_v1  ;;  %v3434_v9 = vpop.f32.mrb[123].mxu1  ;;  %v3582_v4 = vmax.f32 %v6311_v22, 0.0  ;;  %v6957_v12 = vld [vmem:[%s9482_s7 + $0xe4] ss:$16 sps:$4 sm:$0xff]  }
 0x39c   :  { %4837 = vmatmul.mubr.bf16.gmra.mrb[68].mxu0 %v6941_v63  ;;  %v2233_v63 = vpop.permute.xlu0 %2232 }
 0x39d   :  { %v3583_v23 = vmax.f32 %v6312_v27, 0.0  ;;  %4844 = vmatprep.mubr.bf16.mxu0 %v6942_v52  ;;  %v2238_v27 = vpop.permute.xlu1 %2237 }
 0x39f   :  { %v3757_v29 = vpack.c.bf16 %v3583_v23, %v3582_v4 }
 0x3a0   :  { %v3437_v42 = vpop.f32.mrb[124].mxu1 }
 0x3a1   :  { %v6313_v20 = vadd.f32 %v3437_v42, %v2193_v48  ;;  %v3439_v46 = vpop.f32.mrb[125].mxu1  ;;  %5088 = vmatpush1.bf16.msra.mxu0 %v3757_v29 }
 0x3a2   :  { %v3440_v41 = vpop.f32.mrb[126].mxu1  ;;  %5089 = vmatprep.subr.bf16.mxu0 %v9493_v8  ;;  %v6959_v46 = vld [vmem:[%s9482_s7 + $0xe0] ss:$16 sps:$4 sm:$0xff]  }
 0x3a3   :  { %v6314_v6 = vadd.f32 %v3440_v41, %v2198_v56  ;;  %v3442_v43 = vpop.f32.mrb[127].mxu1  ;;  %v3584_v37 = vmax.f32 %v6313_v20, 0.0  ;;  %v6960_v41 = vld [vmem:[%s9482_s7 + $0x104] ss:$16 sps:$4 sm:$0xff]  }
 0x3a4   :  { %4845 = vmatmul.mubr.bf16.gmra.mrb[72].mxu0 %v6944_v36  ;;  %v2243_v36 = vpop.permute.xlu0 %2242 }
 0x3a5   :  { %v3585_v19 = vmax.f32 %v6314_v6, 0.0  ;;  %4852 = vmatprep.mubr.bf16.mxu0 %v6945_v15  ;;  %v2248_v6 = vpop.permute.xlu1 %2247 }
 0x3a7   :  { %v3758_v61 = vpack.c.bf16 %v3585_v19, %v3584_v37 }
 0x3a8   :  { %v3445_v3 = vpop.f32.mrb[128].mxu1 }
 0x3a9   :  { %v6315_v47 = vadd.f32 %v3445_v3, %v2203_v30  ;;  %v3447_v32 = vpop.f32.mrb[129].mxu1  ;;  %5090 = vmatpush1.bf16.msra.mxu0 %v3758_v61 }
 0x3aa   :  { %v3448_v54 = vpop.f32.mrb[130].mxu1  ;;  %5091 = vmatprep.subr.bf16.mxu0 %v9493_v8  ;;  %v6962_v32 = vld [vmem:[%s9482_s7 + $0x100] ss:$16 sps:$4 sm:$0xff]  }
 0x3ab   :  { %v6316_v2 = vadd.f32 %v3448_v54, %v2208_v21  ;;  %v3450_v16 = vpop.f32.mrb[131].mxu1  ;;  %v3586_v62 = vmax.f32 %v6315_v47, 0.0  ;;  %v6963_v54 = vld [vmem:[%s9482_s7 + $0x124] ss:$16 sps:$4 sm:$0xff]  }
 0x3ac   :  { %4853 = vmatmul.mubr.bf16.gmra.mrb[76].mxu0 %v6947_v0  ;;  %v2253_v0 = vpop.permute.xlu0 %2252 }
 0x3ad   :  { %v3587_v53 = vmax.f32 %v6316_v2, 0.0  ;;  %4860 = vmatprep.mubr.bf16.mxu0 %v6948_v10  ;;  %v2258_v2 = vpop.permute.xlu1 %2257 }
 0x3af   :  { %v3759_v34 = vpack.c.bf16 %v3587_v53, %v3586_v62 }
 0x3b0   :  { %v3453_v57 = vpop.f32.mrb[132].mxu1 }
 0x3b1   :  { %v6317_v50 = vadd.f32 %v3453_v57, %v2213_v24  ;;  %v3455_v26 = vpop.f32.mrb[133].mxu1  ;;  %5092 = vmatpush1.bf16.msra.mxu0 %v3759_v34 }
 0x3b2   :  { %v3456_v39 = vpop.f32.mrb[134].mxu1  ;;  %5093 = vmatprep.subr.bf16.mxu0 %v9493_v8  ;;  %v6965_v26 = vld [vmem:[%s9482_s7 + $0x120] ss:$16 sps:$4 sm:$0xff]  }
 0x3b3   :  { %v6318_v25 = vadd.f32 %v3456_v39, %v2218_v13  ;;  %v3458_v49 = vpop.f32.mrb[135].mxu1  ;;  %v3588_v11 = vmax.f32 %v6317_v50, 0.0  ;;  %v6966_v39 = vld [vmem:[%s9482_s7 + $0x144] ss:$16 sps:$4 sm:$0xff]  }
 0x3b4   :  { %4861 = vmatmul.mubr.bf16.gmra.mrb[80].mxu0 %v6950_v17  ;;  %v2263_v17 = vpop.permute.xlu0 %2262 }
 0x3b5   :  { %v3589_v51 = vmax.f32 %v6318_v25, 0.0  ;;  %4868 = vmatprep.mubr.bf16.mxu0 %v6951_v58  ;;  %v2268_v25 = vpop.permute.xlu1 %2267 }
 0x3b7   :  { %v3760_v35 = vpack.c.bf16 %v3589_v51, %v3588_v11 }
 0x3b8   :  { %v3461_v45 = vpop.f32.mrb[136].mxu1 }
 0x3b9   :  { %v6319_v60 = vadd.f32 %v3461_v45, %v2223_v28  ;;  %v3463_v55 = vpop.f32.mrb[137].mxu1  ;;  %5094 = vmatpush1.bf16.msra.mxu0 %v3760_v35 }
 0x3ba   :  { %v3464_v7 = vpop.f32.mrb[138].mxu1  ;;  %5095 = vmatprep.subr.bf16.mxu0 %v9493_v8  ;;  %v6968_v55 = vld [vmem:[%s9482_s7 + $0x140] ss:$16 sps:$4 sm:$0xff]  }
 0x3bb   :  { %v6320_v31 = vadd.f32 %v3464_v7, %v2228_v59  ;;  %v3466_v14 = vpop.f32.mrb[139].mxu1  ;;  %v3590_v5 = vmax.f32 %v6319_v60, 0.0  ;;  %v6969_v7 = vld [vmem:[%s9482_s7 + $0x164] ss:$16 sps:$4 sm:$0xff]  }
 0x3bc   :  { %4869 = vmatmul.mubr.bf16.gmra.mrb[84].mxu0 %v6953_v33  ;;  %v2273_v33 = vpop.permute.xlu0 %2272 }
 0x3bd   :  { %v3591_v18 = vmax.f32 %v6320_v31, 0.0  ;;  %4876 = vmatprep.mubr.bf16.mxu0 %v6954_v44  ;;  %v2278_v31 = vpop.permute.xlu1 %2277 }
 0x3bf   :  { %v3761_v40 = vpack.c.bf16 %v3591_v18, %v3590_v5 }
 0x3c0   :  { %v3469_v22 = vpop.f32.mrb[140].mxu1 }
 0x3c1   :  { %v6321_v52 = vadd.f32 %v3469_v22, %v2233_v63  ;;  %v3471_v1 = vpop.f32.mrb[141].mxu1  ;;  %5096 = vmatpush1.bf16.msra.mxu0 %v3761_v40 }
 0x3c2   :  { %v3472_v9 = vpop.f32.mrb[142].mxu1  ;;  %5097 = vmatprep.subr.bf16.mxu0 %v9493_v8  ;;  %v6971_v1 = vld [vmem:[%s9482_s7 + $0x160] ss:$16 sps:$4 sm:$0xff]  }
 0x3c3   :  { %v6322_v4 = vadd.f32 %v3472_v9, %v2238_v27  ;;  %v3474_v23 = vpop.f32.mrb[143].mxu1  ;;  %v3592_v29 = vmax.f32 %v6321_v52, 0.0  ;;  %v6972_v9 = vld [vmem:[%s9482_s7 + $0x184] ss:$16 sps:$4 sm:$0xff]  }
 0x3c4   :  { %4877 = vmatmul.mubr.bf16.gmra.mrb[88].mxu0 %v6956_v38  ;;  %v2283_v38 = vpop.permute.xlu0 %2282 }
 0x3c5   :  { %v3593_v48 = vmax.f32 %v6322_v4, 0.0  ;;  %4884 = vmatprep.mubr.bf16.mxu0 %v6957_v12  ;;  %v2288_v4 = vpop.permute.xlu1 %2287 }
 0x3c7   :  { %v3762_v42 = vpack.c.bf16 %v3593_v48, %v3592_v29 }
 0x3c8   :  { %v3477_v20 = vpop.f32.mrb[144].mxu1 }
 0x3c9   :  { %v6323_v15 = vadd.f32 %v3477_v20, %v2243_v36  ;;  %v3479_v56 = vpop.f32.mrb[145].mxu1  ;;  %5098 = vmatpush1.bf16.msra.mxu0 %v3762_v42 }
 0x3ca   :  { %v3480_v43 = vpop.f32.mrb[146].mxu1  ;;  %5099 = vmatprep.subr.bf16.mxu0 %v9493_v8  ;;  %v6974_v56 = vld [vmem:[%s9482_s7 + $0x180] ss:$16 sps:$4 sm:$0xff]  }
 0x3cb   :  { %v6324_v37 = vadd.f32 %v3480_v43, %v2248_v6  ;;  %v3482_v19 = vpop.f32.mrb[147].mxu1  ;;  %v3594_v61 = vmax.f32 %v6323_v15, 0.0  ;;  %v6975_v43 = vld [vmem:[%s9482_s7 + $0x1a4] ss:$16 sps:$4 sm:$0xff]  }
 0x3cc   :  { %4885 = vmatmul.mubr.bf16.gmra.mrb[92].mxu0 %v6959_v46  ;;  %v2293_v46 = vpop.permute.xlu0 %2292 }
 0x3cd   :  { %v3595_v30 = vmax.f32 %v6324_v37, 0.0  ;;  %4892 = vmatprep.mubr.bf16.mxu0 %v6960_v41  ;;  %v2298_v37 = vpop.permute.xlu1 %2297 }
 0x3cf   :  { %v3763_v3 = vpack.c.bf16 %v3595_v30, %v3594_v61 }
 0x3d0   :  { %v3485_v47 = vpop.f32.mrb[148].mxu1 }
 0x3d1   :  { %v6325_v10 = vadd.f32 %v3485_v47, %v2253_v0  ;;  %v3487_v21 = vpop.f32.mrb[149].mxu1  ;;  %5100 = vmatpush1.bf16.msra.mxu0 %v3763_v3 }
 0x3d2   :  { %v3488_v16 = vpop.f32.mrb[150].mxu1  ;;  %5101 = vmatprep.subr.bf16.mxu0 %v9493_v8  ;;  %v6977_v21 = vld [vmem:[%s9482_s7 + $0x1a0] ss:$16 sps:$4 sm:$0xff]  }
 0x3d3   :  { %v6326_v62 = vadd.f32 %v3488_v16, %v2258_v2  ;;  %v3490_v53 = vpop.f32.mrb[151].mxu1  ;;  %v3596_v34 = vmax.f32 %v6325_v10, 0.0  ;;  %v6978_v16 = vld [vmem:[%s9482_s7 + $0x1c4] ss:$16 sps:$4 sm:$0xff]  }
 0x3d4   :  { %4893 = vmatmul.mubr.bf16.gmra.mrb[96].mxu0 %v6962_v32  ;;  %v2303_v32 = vpop.permute.xlu0 %2302 }
 0x3d5   :  { %v3597_v24 = vmax.f32 %v6326_v62, 0.0  ;;  %4900 = vmatprep.mubr.bf16.mxu0 %v6963_v54  ;;  %v2308_v62 = vpop.permute.xlu1 %2307 }
 0x3d7   :  { %v3764_v57 = vpack.c.bf16 %v3597_v24, %v3596_v34 }
 0x3d8   :  { %v3493_v50 = vpop.f32.mrb[152].mxu1 }
 0x3d9   :  { %v6327_v58 = vadd.f32 %v3493_v50, %v2263_v17  ;;  %v3495_v13 = vpop.f32.mrb[153].mxu1  ;;  %5102 = vmatpush1.bf16.msra.mxu0 %v3764_v57 }
 0x3da   :  { %v3496_v49 = vpop.f32.mrb[154].mxu1  ;;  %5103 = vmatprep.subr.bf16.mxu0 %v9493_v8  ;;  %v6980_v13 = vld [vmem:[%s9482_s7 + $0x1c0] ss:$16 sps:$4 sm:$0xff]  }
 0x3db   :  { %v6328_v11 = vadd.f32 %v3496_v49, %v2268_v25  ;;  %v3498_v51 = vpop.f32.mrb[155].mxu1  ;;  %v3598_v35 = vmax.f32 %v6327_v58, 0.0  ;;  %v6981_v49 = vld [vmem:[%s9482_s7 + $0x1e4] ss:$16 sps:$4 sm:$0xff]  }
 0x3dc   :  { %4901 = vmatmul.mubr.bf16.gmra.mrb[100].mxu0 %v6965_v26  ;;  %v2313_v26 = vpop.permute.xlu0 %2312 }
 0x3dd   :  { %v3599_v28 = vmax.f32 %v6328_v11, 0.0  ;;  %4908 = vmatprep.mubr.bf16.mxu0 %v6966_v39  ;;  %v2318_v11 = vpop.permute.xlu1 %2317 }
 0x3df   :  { %v3765_v45 = vpack.c.bf16 %v3599_v28, %v3598_v35 }
 0x3e0   :  { %v3501_v60 = vpop.f32.mrb[156].mxu1 }
 0x3e1   :  { %v6329_v44 = vadd.f32 %v3501_v60, %v2273_v33  ;;  %v3503_v59 = vpop.f32.mrb[157].mxu1  ;;  %5104 = vmatpush1.bf16.msra.mxu0 %v3765_v45 }
 0x3e2   :  { %v3504_v14 = vpop.f32.mrb[158].mxu1  ;;  %5105 = vmatprep.subr.bf16.mxu0 %v9493_v8  ;;  %v6983_v59 = vld [vmem:[%s9482_s7 + $0x1e0] ss:$16 sps:$4 sm:$0xff]  }
 0x3e3   :  { %v6330_v5 = vadd.f32 %v3504_v14, %v2278_v31  ;;  %v3506_v18 = vpop.f32.mrb[159].mxu1  ;;  %v3600_v40 = vmax.f32 %v6329_v44, 0.0  ;;  %v6984_v14 = vld [vmem:[%s9482_s7 + $0x204] ss:$16 sps:$4 sm:$0xff]  }
 0x3e4   :  { %4909 = vmatmul.mubr.bf16.gmra.mrb[104].mxu0 %v6968_v55  ;;  %v2323_v55 = vpop.permute.xlu0 %2322 }
 0x3e5   :  { %v3601_v63 = vmax.f32 %v6330_v5, 0.0  ;;  %4916 = vmatprep.mubr.bf16.mxu0 %v6969_v7  ;;  %v2328_v5 = vpop.permute.xlu1 %2327 }
 0x3e7   :  { %v3766_v22 = vpack.c.bf16 %v3601_v63, %v3600_v40 }
 0x3e8   :  { %v3509_v52 = vpop.f32.mrb[160].mxu1 }
 0x3e9   :  { %v6331_v12 = vadd.f32 %v3509_v52, %v2283_v38  ;;  %v3511_v27 = vpop.f32.mrb[161].mxu1  ;;  %5106 = vmatpush1.bf16.msra.mxu0 %v3766_v22 }
 0x3ea   :  { %v3512_v23 = vpop.f32.mrb[162].mxu1  ;;  %5107 = vmatprep.subr.bf16.mxu0 %v9493_v8  ;;  %v6990_v27 = vld [vmem:[%s9482_s7 + $0x244] ss:$16 sps:$4 sm:$0xff]  }
 0x3eb   :  { %v6332_v29 = vadd.f32 %v3512_v23, %v2288_v4  ;;  %v3514_v48 = vpop.f32.mrb[163].mxu1  ;;  %v3602_v42 = vmax.f32 %v6331_v12, 0.0  ;;  %v6987_v12 = vld [vmem:[%s9482_s7 + $0x224] ss:$16 sps:$4 sm:$0xff]   ;;  %v6995_v23 = vld [vmem:[%s9482_s7 + $0x260] ss:$16 sps:$4 sm:$0xff]  }
 0x3ec   :  { %4917 = vmatmul.mubr.bf16.gmra.mrb[108].mxu0 %v6971_v1  ;;  %v6986_v1 = vld [vmem:[%s9482_s7 + $0x200] ss:$16 sps:$4 sm:$0xff]   ;;  %v6993_v4 = vld [vmem:[%s9482_s7 + $0x264] ss:$16 sps:$4 sm:$0xff]  }
 0x3ed   :  { %v3603_v36 = vmax.f32 %v6332_v29, 0.0  ;;  %4924 = vmatprep.mubr.bf16.mxu0 %v6972_v9  ;;  %v6992_v9 = vld [vmem:[%s9482_s7 + $0x240] ss:$16 sps:$4 sm:$0xff]   ;;  %v6996_v29 = vld [vmem:[%s9482_s7 + $0x284] ss:$16 sps:$4 sm:$0xff]  }
 0x3ee   :  { %v6998_v48 = vld [vmem:[%s9482_s7 + $0x280] ss:$16 sps:$4 sm:$0xff]  }
 0x3ef   :  { %v3767_v20 = vpack.c.bf16 %v3603_v36, %v3602_v42  ;;  %v6999_v42 = vld [vmem:[%s9482_s7 + $0x2a4] ss:$16 sps:$4 sm:$0xff]   ;;  %v7001_v36 = vld [vmem:[%s9482_s7 + $0x2a0] ss:$16 sps:$4 sm:$0xff]  }
 0x3f0   :  { %v3517_v15 = vpop.f32.mrb[164].mxu1 }
 0x3f1   :  { %v6333_v41 = vadd.f32 %v3517_v15, %v2293_v46  ;;  %v3519_v6 = vpop.f32.mrb[165].mxu1  ;;  %5108 = vmatpush1.bf16.msra.mxu0 %v3767_v20  ;;  %v7002_v20 = vld [vmem:[%s9482_s7 + $0x2c4] ss:$16 sps:$4 sm:$0xff]   ;;  %v7004_v46 = vld [vmem:[%s9482_s7 + $0x2c0] ss:$16 sps:$4 sm:$0xff]  }
 0x3f2   :  { %v3520_v19 = vpop.f32.mrb[166].mxu1  ;;  %5109 = vmatprep.subr.bf16.mxu0 %v9493_v8  ;;  %v7005_v15 = vld [vmem:[%s9482_s7 + $0x2e4] ss:$16 sps:$4 sm:$0xff]   ;;  %v7010_v6 = vld [vmem:[%s9482_s7 + $0x300] ss:$16 sps:$4 sm:$0xff]  }
 0x3f3   :  { %v6334_v61 = vadd.f32 %v3520_v19, %v2298_v37  ;;  %v3522_v30 = vpop.f32.mrb[167].mxu1  ;;  %v3604_v3 = vmax.f32 %v6333_v41, 0.0  ;;  %v7008_v41 = vld [vmem:[%s9482_s7 + $0x304] ss:$16 sps:$4 sm:$0xff]   ;;  %v7013_v37 = vld [vmem:[%s9482_s7 + $0x320] ss:$16 sps:$4 sm:$0xff]  }
 0x3f4   :  { %4925 = vmatmul.mubr.bf16.gmra.mrb[112].mxu0 %v6974_v56  ;;  %v7007_v56 = vld [vmem:[%s9482_s7 + $0x2e0] ss:$16 sps:$4 sm:$0xff]   ;;  %v7014_v19 = vld [vmem:[%s9482_s7 + $0x344] ss:$16 sps:$4 sm:$0xff]  }
 0x3f5   :  { %v3605_v0 = vmax.f32 %v6334_v61, 0.0  ;;  %4932 = vmatprep.mubr.bf16.mxu0 %v6975_v43  ;;  %v7011_v43 = vld [vmem:[%s9482_s7 + $0x324] ss:$16 sps:$4 sm:$0xff]   ;;  %v7016_v61 = vld [vmem:[%s9482_s7 + $0x340] ss:$16 sps:$4 sm:$0xff]  }
 0x3f6   :  { %v7017_v30 = vld [vmem:[%s9482_s7 + $0x364] ss:$16 sps:$4 sm:$0xff]  }
 0x3f7   :  { %v3768_v47 = vpack.c.bf16 %v3605_v0, %v3604_v3  ;;  %v7019_v3 = vld [vmem:[%s9482_s7 + $0x360] ss:$16 sps:$4 sm:$0xff]   ;;  %v7020_v0 = vld [vmem:[%s9482_s7 + $0x384] ss:$16 sps:$4 sm:$0xff]  }
 0x3f8   :  { %v3525_v10 = vpop.f32.mrb[168].mxu1 }
 0x3f9   :  { %v6335_v54 = vadd.f32 %v3525_v10, %v2303_v32  ;;  %v3527_v2 = vpop.f32.mrb[169].mxu1  ;;  %5110 = vmatpush1.bf16.msra.mxu0 %v3768_v47  ;;  %v7022_v47 = vld [vmem:[%s9482_s7 + $0x380] ss:$16 sps:$4 sm:$0xff]   ;;  %v7023_v32 = vld [vmem:[%s9482_s7 + $0x3a4] ss:$16 sps:$4 sm:$0xff]  }
 0x3fa   :  { %v3528_v53 = vpop.f32.mrb[170].mxu1  ;;  %5111 = vmatprep.subr.bf16.mxu0 %v9493_v8  ;;  %v7025_v10 = vld [vmem:[%s9482_s7 + $0x3a0] ss:$16 sps:$4 sm:$0xff]   ;;  %v7029_v2 = vld [vmem:[%s9482_s7 + $0x3e4] ss:$16 sps:$4 sm:$0xff]  }
 0x3fb   :  { %v6336_v34 = vadd.f32 %v3528_v53, %v2308_v62  ;;  %v3530_v24 = vpop.f32.mrb[171].mxu1  ;;  %v3606_v57 = vmax.f32 %v6335_v54, 0.0  ;;  %v7028_v54 = vld [vmem:[%s9482_s7 + $0x3c0] ss:$16 sps:$4 sm:$0xff]   ;;  %v7034_v62 = vld [vmem:[%s9482_s7 + $0xc] ss:$16 sps:$4 sm:$0xff]  }
 0x3fc   :  { %4933 = vmatmul.mubr.bf16.gmra.mrb[116].mxu0 %v6977_v21  ;;  %v7026_v21 = vld [vmem:[%s9482_s7 + $0x3c4] ss:$16 sps:$4 sm:$0xff]   ;;  %v7032_v53 = vld [vmem:[%s9482_s7 + $0x8] ss:$16 sps:$4 sm:$0xff]  }
 0x3fd   :  { %v3607_v17 = vmax.f32 %v6336_v34, 0.0  ;;  %4940 = vmatprep.mubr.bf16.mxu0 %v6978_v16  ;;  %v7031_v16 = vld [vmem:[%s9482_s7 + $0x3e0] ss:$16 sps:$4 sm:$0xff]   ;;  %v7035_v34 = vld [vmem:[%s9482_s7 + $0x2c] ss:$16 sps:$4 sm:$0xff]  }
 0x3fe   :  { %v7037_v24 = vld [vmem:[%s9482_s7 + $0x28] ss:$16 sps:$4 sm:$0xff]  }
 0x3ff   :  { %v3769_v50 = vpack.c.bf16 %v3607_v17, %v3606_v57  ;;  %v7038_v57 = vld [vmem:[%s9482_s7 + $0x4c] ss:$16 sps:$4 sm:$0xff]   ;;  %v7040_v17 = vld [vmem:[%s9482_s7 + $0x48] ss:$16 sps:$4 sm:$0xff]  }
 0x400   :  { %v3533_v58 = vpop.f32.mrb[172].mxu1 }
 0x401   :  { %v6337_v39 = vadd.f32 %v3533_v58, %v2313_v26  ;;  %v3535_v25 = vpop.f32.mrb[173].mxu1  ;;  %5112 = vmatpush1.bf16.msra.mxu0 %v3769_v50  ;;  %v7041_v50 = vld [vmem:[%s9482_s7 + $0x6c] ss:$16 sps:$4 sm:$0xff]   ;;  %v7043_v26 = vld [vmem:[%s9482_s7 + $0x68] ss:$16 sps:$4 sm:$0xff]  }
 0x402   :  { %v3536_v51 = vpop.f32.mrb[174].mxu1  ;;  %5113 = vmatprep.subr.bf16.mxu0 %v9493_v8  ;;  %v7044_v58 = vld [vmem:[%s9482_s7 + $0x8c] ss:$16 sps:$4 sm:$0xff]   ;;  %v7049_v25 = vld [vmem:[%s9482_s7 + $0xa8] ss:$16 sps:$4 sm:$0xff]  }
 0x403   :  { %v6338_v35 = vadd.f32 %v3536_v51, %v2318_v11  ;;  %v3538_v28 = vpop.f32.mrb[175].mxu1  ;;  %v3608_v45 = vmax.f32 %v6337_v39, 0.0  ;;  %v7047_v39 = vld [vmem:[%s9482_s7 + $0xac] ss:$16 sps:$4 sm:$0xff]   ;;  %v7052_v11 = vld [vmem:[%s9482_s7 + $0xc8] ss:$16 sps:$4 sm:$0xff]  }
 0x404   :  { %4941 = vmatmul.mubr.bf16.gmra.mrb[120].mxu0 %v6980_v13  ;;  %v7046_v13 = vld [vmem:[%s9482_s7 + $0x88] ss:$16 sps:$4 sm:$0xff]   ;;  %v7053_v51 = vld [vmem:[%s9482_s7 + $0xec] ss:$16 sps:$4 sm:$0xff]  }
 0x405   :  { %v3609_v33 = vmax.f32 %v6338_v35, 0.0  ;;  %4948 = vmatprep.mubr.bf16.mxu0 %v6981_v49  ;;  %v7050_v49 = vld [vmem:[%s9482_s7 + $0xcc] ss:$16 sps:$4 sm:$0xff]   ;;  %v7055_v35 = vld [vmem:[%s9482_s7 + $0xe8] ss:$16 sps:$4 sm:$0xff]  }
 0x406   :  { %v7056_v28 = vld [vmem:[%s9482_s7 + $0x10c] ss:$16 sps:$4 sm:$0xff]  }
 0x407   :  { %v3770_v60 = vpack.c.bf16 %v3609_v33, %v3608_v45  ;;  %v7058_v45 = vld [vmem:[%s9482_s7 + $0x108] ss:$16 sps:$4 sm:$0xff]   ;;  %v7059_v33 = vld [vmem:[%s9482_s7 + $0x12c] ss:$16 sps:$4 sm:$0xff]  }
 0x408   :  { %v3541_v44 = vpop.f32.mrb[176].mxu1 }
 0x409   :  { %v6339_v7 = vadd.f32 %v3541_v44, %v2323_v55  ;;  %v3543_v31 = vpop.f32.mrb[177].mxu1  ;;  %5114 = vmatpush1.bf16.msra.mxu0 %v3770_v60  ;;  %v7061_v60 = vld [vmem:[%s9482_s7 + $0x128] ss:$16 sps:$4 sm:$0xff]   ;;  %v7062_v55 = vld [vmem:[%s9482_s7 + $0x14c] ss:$16 sps:$4 sm:$0xff]  }
 0x40a   :  { %v3544_v18 = vpop.f32.mrb[178].mxu1  ;;  %5115 = vmatprep.subr.bf16.mxu0 %v9493_v8  ;;  %v6989_v8 = vld [vmem:[%s9482_s7 + $0x220] ss:$16 sps:$4 sm:$0xff]   ;;  %v7064_v44 = vld [vmem:[%s9482_s7 + $0x148] ss:$16 sps:$4 sm:$0xff]  }
 0x40b   :  { %v6340_v40 = vadd.f32 %v3544_v18, %v2328_v5  ;;  %v3546_v63 = vpop.f32.mrb[179].mxu1  ;;  %v3610_v22 = vmax.f32 %v6339_v7, 0.0  ;;  %v7067_v7 = vld [vmem:[%s9482_s7 + $0x168] ss:$16 sps:$4 sm:$0xff]   ;;  %v7068_v31 = vld [vmem:[%s9482_s7 + $0x18c] ss:$16 sps:$4 sm:$0xff]  }
 0x40c   :  { %4949 = vmatmul.mubr.bf16.gmra.mrb[124].mxu0 %v6983_v59  ;;  %v7065_v59 = vld [vmem:[%s9482_s7 + $0x16c] ss:$16 sps:$4 sm:$0xff]   ;;  %v7073_v18 = vld [vmem:[%s9482_s7 + $0x1a8] ss:$16 sps:$4 sm:$0xff]  }
 0x40d   :  { %v3611_v38 = vmax.f32 %v6340_v40, 0.0  ;;  %4956 = vmatprep.mubr.bf16.mxu0 %v6984_v14  ;;  %v7070_v14 = vld [vmem:[%s9482_s7 + $0x188] ss:$16 sps:$4 sm:$0xff]   ;;  %v7071_v5 = vld [vmem:[%s9482_s7 + $0x1ac] ss:$16 sps:$4 sm:$0xff]  }
 0x40e   :  { %v7074_v40 = vld [vmem:[%s9482_s7 + $0x1cc] ss:$16 sps:$4 sm:$0xff]   ;;  %v7076_v63 = vld [vmem:[%s9482_s7 + $0x1c8] ss:$16 sps:$4 sm:$0xff]  }
 0x40f   :  { %v3771_v52 = vpack.c.bf16 %v3611_v38, %v3610_v22  ;;  %v7077_v22 = vld [vmem:[%s9482_s7 + $0x1ec] ss:$16 sps:$4 sm:$0xff]   ;;  %v7079_v38 = vld [vmem:[%s9482_s7 + $0x1e8] ss:$16 sps:$4 sm:$0xff]  }
 0x411   :  { %5116 = vmatpush1.bf16.msra.mxu0 %v3771_v52  ;;  %v7080_v52 = vld [vmem:[%s9482_s7 + $0x20c] ss:$16 sps:$4 sm:$0xff]  }
 0x414   :  { %4957 = vmatmul.mubr.bf16.gmra.mrb[128].mxu0 %v6986_v1  ;;  %v7082_v1 = vld [vmem:[%s9482_s7 + $0x208] ss:$16 sps:$4 sm:$0xff]  }
 0x415   :  { %4964 = vmatprep.mubr.bf16.mxu0 %v6987_v12  ;;  %v7083_v12 = vld [vmem:[%s9482_s7 + $0x22c] ss:$16 sps:$4 sm:$0xff]  }
 0x41c   :  { %4965 = vmatmul.mubr.bf16.gmra.mrb[132].mxu0 %v6989_v8  ;;  %v7085_v8 = vld [vmem:[%s9482_s7 + $0x228] ss:$16 sps:$4 sm:$0xff]  }
 0x41d   :  { %4972 = vmatprep.mubr.bf16.mxu0 %v6990_v27  ;;  %v7086_v27 = vld [vmem:[%s9482_s7 + $0x24c] ss:$16 sps:$4 sm:$0xff]  }
 0x424   :  { %4973 = vmatmul.mubr.bf16.gmra.mrb[136].mxu0 %v6992_v9  ;;  %v7088_v9 = vld [vmem:[%s9482_s7 + $0x248] ss:$16 sps:$4 sm:$0xff]  }
 0x425   :  { %4980 = vmatprep.mubr.bf16.mxu0 %v6993_v4  ;;  %v7089_v4 = vld [vmem:[%s9482_s7 + $0x26c] ss:$16 sps:$4 sm:$0xff]  }
 0x42c   :  { %4981 = vmatmul.mubr.bf16.gmra.mrb[140].mxu0 %v6995_v23  ;;  %v7091_v23 = vld [vmem:[%s9482_s7 + $0x268] ss:$16 sps:$4 sm:$0xff]  }
 0x42d   :  { %4988 = vmatprep.mubr.bf16.mxu0 %v6996_v29  ;;  %v7092_v29 = vld [vmem:[%s9482_s7 + $0x28c] ss:$16 sps:$4 sm:$0xff]  }
 0x434   :  { %4989 = vmatmul.mubr.bf16.gmra.mrb[144].mxu0 %v6998_v48  ;;  %v7094_v48 = vld [vmem:[%s9482_s7 + $0x288] ss:$16 sps:$4 sm:$0xff]  }
 0x435   :  { %4996 = vmatprep.mubr.bf16.mxu0 %v6999_v42  ;;  %v7095_v42 = vld [vmem:[%s9482_s7 + $0x2ac] ss:$16 sps:$4 sm:$0xff]  }
 0x43c   :  { %4997 = vmatmul.mubr.bf16.gmra.mrb[148].mxu0 %v7001_v36  ;;  %v7097_v36 = vld [vmem:[%s9482_s7 + $0x2a8] ss:$16 sps:$4 sm:$0xff]  }
 0x43d   :  { %5004 = vmatprep.mubr.bf16.mxu0 %v7002_v20  ;;  %v7098_v20 = vld [vmem:[%s9482_s7 + $0x2cc] ss:$16 sps:$4 sm:$0xff]  }
 0x444   :  { %5005 = vmatmul.mubr.bf16.gmra.mrb[152].mxu0 %v7004_v46  ;;  %v7100_v46 = vld [vmem:[%s9482_s7 + $0x2c8] ss:$16 sps:$4 sm:$0xff]  }
 0x445   :  { %5012 = vmatprep.mubr.bf16.mxu0 %v7005_v15  ;;  %v7101_v15 = vld [vmem:[%s9482_s7 + $0x2ec] ss:$16 sps:$4 sm:$0xff]  }
 0x44c   :  { %5013 = vmatmul.mubr.bf16.gmra.mrb[156].mxu0 %v7007_v56  ;;  %v9258_v56 = vpop.permute.xlu0 %3918 }
 0x44d   :  { %5020 = vmatprep.mubr.bf16.mxu0 %v7008_v41  ;;  %v9260_v41 = vpop.permute.xlu1 %3923 }
 0x454   :  { %5021 = vmatmul.mubr.bf16.gmra.mrb[160].mxu0 %v7010_v6  ;;  %v7103_v6 = vld [vmem:[%s9482_s7 + $0x2e8] ss:$16 sps:$4 sm:$0xff]  }
 0x455   :  { %5028 = vmatprep.mubr.bf16.mxu0 %v7011_v43  ;;  %v7104_v43 = vld [vmem:[%s9482_s7 + $0x30c] ss:$16 sps:$4 sm:$0xff]  }
 0x45c   :  { %5029 = vmatmul.mubr.bf16.gmra.mrb[164].mxu0 %v7013_v37  ;;  %v3839_v37 = vpop.permute.xlu0 %3838 }
 0x45d   :  { %5036 = vmatprep.mubr.bf16.mxu0 %v7014_v19  ;;  %v3844_v19 = vpop.permute.xlu1 %3843 }
 0x464   :  { %5037 = vmatmul.mubr.bf16.gmra.mrb[168].mxu0 %v7016_v61  ;;  %v7106_v61 = vld [vmem:[%s9482_s7 + $0x308] ss:$16 sps:$4 sm:$0xff]  }
 0x465   :  { %5044 = vmatprep.mubr.bf16.mxu0 %v7017_v30  ;;  %v9271_v30 = vpop.permute.xlu0 %3928 }
 0x46c   :  { %5045 = vmatmul.mubr.bf16.gmra.mrb[172].mxu0 %v7019_v3  ;;  %v7107_v3 = vld [vmem:[%s9482_s7 + $0x32c] ss:$16 sps:$4 sm:$0xff]  }
 0x46d   :  { %5052 = vmatprep.mubr.bf16.mxu0 %v7020_v0  ;;  %v9276_v0 = vpop.permute.xlu1 %3933 }
 0x474   :  { %5053 = vmatmul.mubr.bf16.gmra.mrb[176].mxu0 %v7022_v47  ;;  %v3849_v47 = vpop.permute.xlu0 %3848 }
 0x475   :  { %5060 = vmatprep.mubr.bf16.mxu0 %v7023_v32  ;;  %v7109_v32 = vld [vmem:[%s9482_s7 + $0x328] ss:$16 sps:$4 sm:$0xff]  }
 0x47c   :  { %5061 = vmatmul.mubr.bf16.gmra.mrb[180].mxu0 %v7025_v10  ;;  %v3854_v10 = vpop.permute.xlu1 %3853 }
 0x47d   :  { %5068 = vmatprep.mubr.bf16.mxu0 %v7026_v21  ;;  %v7110_v21 = vld [vmem:[%s9482_s7 + $0x34c] ss:$16 sps:$4 sm:$0xff]  }
 0x484   :  { %5069 = vmatmul.mubr.bf16.gmra.mrb[184].mxu0 %v7028_v54  ;;  %v9284_v54 = vpop.permute.xlu0 %3938 }
 0x485   :  { %5076 = vmatprep.mubr.bf16.mxu0 %v7029_v2  ;;  %v9286_v2 = vpop.permute.xlu1 %3943 }
 0x48c   :  { %5077 = vmatmul.mubr.bf16.gmra.mrb[188].mxu0 %v7031_v16  ;;  %v7112_v16 = vld [vmem:[%s9482_s7 + $0x348] ss:$16 sps:$4 sm:$0xff]  }
 0x48d   :  { %5117 = vmatprep.mubr.bf16.mxu0 %v7034_v62  ;;  %v5477_v62 = vlaneseq }
 0x494   :  { %5118 = vmatmul.mubr.bf16.vlgmr.msra.gmra.mrb[64].mxu0 %v7032_v53  ;;  %v7113_v53 = vld [vmem:[%s9482_s7 + $0x36c] ss:$16 sps:$4 sm:$0xff]  }
 0x495   :  { %5125 = vmatprep.mubr.bf16.mxu0 %v7035_v34  ;;  %v3859_v34 = vpop.permute.xlu0 %3858 }
 0x49c   :  { %5126 = vmatmul.mubr.bf16.gmra.mrb[68].mxu0 %v7037_v24  ;;  %v7129_v24 = vmov 1966171168  }
 0x49d   :  { %5133 = vmatprep.mubr.bf16.mxu0 %v7038_v57  ;;  %v5491_v57 = vunpack.c.l.s4 %v7129_v24 }
 0x4a4   :  { %5134 = vmatmul.mubr.bf16.gmra.mrb[72].mxu0 %v7040_v17  ;;  %v3864_v17 = vpop.permute.xlu1 %3863 }
 0x4a5   :  { %5141 = vmatprep.mubr.bf16.mxu0 %v7041_v50  ;;  %v9294_v50 = vshrl.u32 %v5477_v62, 7 }
 0x4ac   :  { %5142 = vmatmul.mubr.bf16.gmra.mrb[76].mxu0 %v7043_v26  ;;  %v5492_v26 = vunpack.c.0.s8 %v5491_v57 }
 0x4ad   :  { %5149 = vmatprep.mubr.bf16.mxu0 %v7044_v58  ;;  %v5980_v58 = vld.sshfl [vmem:[%s9483_s9] sm:$0x33 pattern:$0x75316420] }
 0x4b4   :  { %5150 = vmatmul.mubr.bf16.gmra.mrb[80].mxu0 %v7046_v13 }
 0x4b5   :  { %5157 = vmatprep.mubr.bf16.mxu0 %v7047_v39  ;;  %v5489_v39 = vcombine.high %v5980_v58, %v5980_v58 }
 0x4bc   :  { %5158 = vmatmul.mubr.bf16.gmra.mrb[84].mxu0 %v7049_v25  ;;  %v5495_v25 = vsub.s32 %v5492_v26, %v9294_v50 }
 0x4bd   :  { %5165 = vmatprep.mubr.bf16.mxu0 %v7050_v49 }
 0x4c4   :  { %5166 = vmatmul.mubr.bf16.gmra.mrb[88].mxu0 %v7052_v11 }
 0x4c5   :  { %5173 = vmatprep.mubr.bf16.mxu0 %v7053_v51  ;;  %v7115_v51 = vld [vmem:[%s9482_s7 + $0x368] ss:$16 sps:$4 sm:$0xff]  }
 0x4cc   :  { %5174 = vmatmul.mubr.bf16.gmra.mrb[92].mxu0 %v7055_v35  ;;  %v9303_v35 = vpop.permute.xlu0 %3948 }
 0x4cd   :  { %5181 = vmatprep.mubr.bf16.mxu0 %v7056_v28 }
 0x4d4   :  { %5182 = vmatmul.mubr.bf16.gmra.mrb[96].mxu0 %v7058_v45  ;;  %v7116_v45 = vld [vmem:[%s9482_s7 + $0x38c] ss:$16 sps:$4 sm:$0xff]  }
 0x4d5   :  { %5189 = vmatprep.mubr.bf16.mxu0 %v7059_v33  ;;  %v9308_v33 = vrot.slane %v5489_v39, %v5495_v25 }
 0x4d7   :  { %5542 = vmatprep.mubr.bf16.mxu1 %v9308_v33 }
 0x4dc   :  { %5190 = vmatmul.mubr.bf16.gmra.mrb[100].mxu0 %v7061_v60 }
 0x4dd   :  { %5197 = vmatprep.mubr.bf16.mxu0 %v7062_v55 }
 0x4e4   :  { %5198 = vmatmul.mubr.bf16.gmra.mrb[104].mxu0 %v7064_v44  ;;  %v9310_v44 = vrot.slane %v5980_v58, %v5495_v25 }
 0x4e5   :  { %5205 = vmatprep.mubr.bf16.mxu0 %v7065_v59  ;;  %v9312_v59 = vpop.permute.xlu1 %3953 }
 0x4ec   :  { %5206 = vmatmul.mubr.bf16.gmra.mrb[108].mxu0 %v7067_v7 }
 0x4ed   :  { %5213 = vmatprep.mubr.bf16.mxu0 %v7068_v31 }
 0x4f4   :  { %5214 = vmatmul.mubr.bf16.gmra.mrb[112].mxu0 %v7070_v14 }
 0x4f5   :  { %5221 = vmatprep.mubr.bf16.mxu0 %v7071_v5  ;;  %v3869_v5 = vpop.permute.xlu0 %3868 }
 0x4fc   :  { %5222 = vmatmul.mubr.bf16.gmra.mrb[116].mxu0 %v7073_v18 }
 0x4fd   :  { %5229 = vmatprep.mubr.bf16.mxu0 %v7074_v40 }
 0x504   :  { %5230 = vmatmul.mubr.bf16.gmra.mrb[120].mxu0 %v7076_v63 }
 0x505   :  { %5237 = vmatprep.mubr.bf16.mxu0 %v7077_v22  ;;  %v7118_v22 = vld [vmem:[%s9482_s7 + $0x388] ss:$16 sps:$4 sm:$0xff]  }
 0x50c   :  { %5238 = vmatmul.mubr.bf16.gmra.mrb[124].mxu0 %v7079_v38  ;;  %v3874_v38 = vpop.permute.xlu1 %3873 }
 0x50d   :  { %5245 = vmatprep.mubr.bf16.mxu0 %v7080_v52 }
 0x514   :  { %5246 = vmatmul.mubr.bf16.gmra.mrb[128].mxu0 %v7082_v1  ;;  %v7119_v1 = vld [vmem:[%s9482_s7 + $0x3ac] ss:$16 sps:$4 sm:$0xff]  }
 0x515   :  { %5253 = vmatprep.mubr.bf16.mxu0 %v7083_v12 }
 0x51c   :  { %5254 = vmatmul.mubr.bf16.gmra.mrb[132].mxu0 %v7085_v8 }
 0x51d   :  { %5261 = vmatprep.mubr.bf16.mxu0 %v7086_v27 }
 0x524   :  { %5262 = vmatmul.mubr.bf16.gmra.mrb[136].mxu0 %v7088_v9 }
 0x525   :  { %5269 = vmatprep.mubr.bf16.mxu0 %v7089_v4  ;;  %v9323_v4 = vpop.permute.xlu0 %3958 }
 0x52c   :  { %5270 = vmatmul.mubr.bf16.gmra.mrb[140].mxu0 %v7091_v23 }
 0x52d   :  { %5277 = vmatprep.mubr.bf16.mxu0 %v7092_v29  ;;  %v9327_v29 = vpop.permute.xlu1 %3963 }
 0x534   :  { %5278 = vmatmul.mubr.bf16.gmra.mrb[144].mxu0 %v7094_v48 }
 0x535   :  { %5285 = vmatprep.mubr.bf16.mxu0 %v7095_v42 }
 0x53c   :  { %5286 = vmatmul.mubr.bf16.gmra.mrb[148].mxu0 %v7097_v36 }
 0x53d   :  { %5293 = vmatprep.mubr.bf16.mxu0 %v7098_v20  ;;  %v7121_v20 = vld [vmem:[%s9482_s7 + $0x3a8] ss:$16 sps:$4 sm:$0xff]  }
 0x544   :  { %5294 = vmatmul.mubr.bf16.gmra.mrb[152].mxu0 %v7100_v46 }
 0x545   :  { %5301 = vmatprep.mubr.bf16.mxu0 %v7101_v15  ;;  %v7122_v15 = vld [vmem:[%s9482_s7 + $0x3cc] ss:$16 sps:$4 sm:$0xff]  }
 0x54c   :  { %5302 = vmatmul.mubr.bf16.gmra.mrb[156].mxu0 %v7103_v6 }
 0x54d   :  { %5309 = vmatprep.mubr.bf16.mxu0 %v7104_v43 }
 0x554   :  { %5310 = vmatmul.mubr.bf16.gmra.mrb[160].mxu0 %v7106_v61 }
 0x555   :  { %5317 = vmatprep.mubr.bf16.mxu0 %v7107_v3  ;;  %v3884_v3 = vpop.permute.xlu1 %3883 }
 0x55c   :  { %5318 = vmatmul.mubr.bf16.gmra.mrb[164].mxu0 %v7109_v32 }
 0x55d   :  { %5325 = vmatprep.mubr.bf16.mxu0 %v7110_v21 }
 0x564   :  { %5326 = vmatmul.mubr.bf16.gmra.mrb[168].mxu0 %v7112_v16  ;;  %v7124_v16 = vld [vmem:[%s9482_s7 + $0x3c8] ss:$16 sps:$4 sm:$0xff]  }
 0x565   :  { %5333 = vmatprep.mubr.bf16.mxu0 %v7113_v53 }
 0x567   :  { %v5119_v13 = vpop.f32.mrb[64].mxu0 }
 0x568   :  { %v6341_v49 = vadd.f32 %v5119_v13, %v3839_v37  ;;  %v5121_v11 = vpop.f32.mrb[65].mxu0  ;;  %v3879_v37 = vpop.permute.xlu0 %3878 }
 0x569   :  { %v5122_v28 = vpop.f32.mrb[66].mxu0 }
 0x56a   :  { %v6342_v60 = vadd.f32 %v5122_v28, %v3844_v19  ;;  %v5124_v55 = vpop.f32.mrb[67].mxu0  ;;  %v5374_v7 = vmax.f32 %v6341_v49, 0.0 }
 0x56c   :  { %v5375_v31 = vmax.f32 %v6342_v60, 0.0  ;;  %5334 = vmatmul.mubr.bf16.gmra.mrb[172].mxu0 %v7115_v51  ;;  %v9340_v62 = vpop.permute.xlu0 %3968  ;;  %v7127_v51 = vld [vmem:[%s9482_s7 + $0x3e8] ss:$16 sps:$4 sm:$0xff]  }
 0x56d   :  { %5341 = vmatprep.mubr.bf16.mxu0 %v7116_v45 }
 0x56e   :  { %v9315_v14 = vpack.c.bf16 %v5375_v31, %v5374_v7 }
 0x56f   :  { %v5127_v18 = vpop.f32.mrb[68].mxu0 }
 0x570   :  { %v6343_v40 = vadd.f32 %v5127_v18, %v3849_v47  ;;  %v5129_v63 = vpop.f32.mrb[69].mxu0  ;;  %v3889_v39 = vpop.permute.xlu0 %3888 }
 0x571   :  { %v5130_v52 = vpop.f32.mrb[70].mxu0 }
 0x572   :  { %v6344_v12 = vadd.f32 %v5130_v52, %v3854_v10  ;;  %v5132_v8 = vpop.f32.mrb[71].mxu0  ;;  %v5376_v27 = vmax.f32 %v6343_v40, 0.0 }
 0x574   :  { %v5377_v9 = vmax.f32 %v6344_v12, 0.0  ;;  %5342 = vmatmul.mubr.bf16.gmra.mrb[176].mxu0 %v7118_v22 }
 0x575   :  { %5349 = vmatprep.mubr.bf16.mxu0 %v7119_v1 }
 0x576   :  { %v9325_v23 = vpack.c.bf16 %v5377_v9, %v5376_v27 }
 0x577   :  { %v5135_v48 = vpop.f32.mrb[72].mxu0 }
 0x578   :  { %v6345_v42 = vadd.f32 %v5135_v48, %v3859_v34  ;;  %v5137_v36 = vpop.f32.mrb[73].mxu0  ;;  %v7125_v34 = vld [vmem:[%s9482_s7 + $0x3ec] ss:$16 sps:$4 sm:$0xff]  }
 0x579   :  { %v5138_v46 = vpop.f32.mrb[74].mxu0 }
 0x57a   :  { %v6346_v6 = vadd.f32 %v5138_v46, %v3864_v17  ;;  %v5140_v43 = vpop.f32.mrb[75].mxu0  ;;  %v5378_v19 = vmax.f32 %v6345_v42, 0.0  ;;  %v9345_v17 = vpop.permute.xlu1 %3973 }
 0x57c   :  { %v5379_v61 = vmax.f32 %v6346_v6, 0.0  ;;  %5350 = vmatmul.mubr.bf16.gmra.mrb[180].mxu0 %v7121_v20 }
 0x57d   :  { %5357 = vmatprep.mubr.bf16.mxu0 %v7122_v15 }
 0x57e   :  { %v9335_v47 = vpack.c.bf16 %v5379_v61, %v5378_v19  ;;  %v3894_v28 = vpop.permute.xlu1 %3893 }
 0x57f   :  { %v5143_v32 = vpop.f32.mrb[76].mxu0 }
 0x580   :  { %v6347_v10 = vadd.f32 %v5143_v32, %v3869_v5  ;;  %v5145_v21 = vpop.f32.mrb[77].mxu0  ;;  %v9352_v5 = vpop.permute.xlu0 %3978 }
 0x581   :  { %v5146_v53 = vpop.f32.mrb[78].mxu0 }
 0x582   :  { %v6348_v24 = vadd.f32 %v5146_v53, %v3874_v38  ;;  %v5148_v57 = vpop.f32.mrb[79].mxu0  ;;  %v5380_v26 = vmax.f32 %v6347_v10, 0.0  ;;  %v9356_v40 = vpop.permute.xlu1 %3983 }
 0x584   :  { %v5381_v58 = vmax.f32 %v6348_v24, 0.0  ;;  %5358 = vmatmul.mubr.bf16.gmra.mrb[184].mxu0 %v7124_v16  ;;  %v3899_v8 = vpop.permute.xlu0 %3898 }
 0x585   :  { %5365 = vmatprep.mubr.bf16.mxu0 %v7125_v34 }
 0x586   :  { %v9347_v13 = vpack.c.bf16 %v5381_v58, %v5380_v26  ;;  %v3904_v48 = vpop.permute.xlu1 %3903 }
 0x587   :  { %v5151_v25 = vpop.f32.mrb[80].mxu0 }
 0x588   :  { %v6349_v49 = vadd.f32 %v5151_v25, %v3879_v37  ;;  %v5153_v11 = vpop.f32.mrb[81].mxu0  ;;  %v9360_v15 = vpop.permute.xlu0 %3988 }
 0x589   :  { %v5154_v45 = vpop.f32.mrb[82].mxu0 }
 0x58a   :  { %v6350_v60 = vadd.f32 %v5154_v45, %v3884_v3  ;;  %v5156_v55 = vpop.f32.mrb[83].mxu0  ;;  %v5382_v7 = vmax.f32 %v6349_v49, 0.0  ;;  %v9362_v19 = vpop.permute.xlu1 %3993 }
 0x58c   :  { %v5383_v31 = vmax.f32 %v6350_v60, 0.0  ;;  %5366 = vmatmul.mubr.bf16.gmra.mrb[188].mxu0 %v7127_v51  ;;  %v3909_v10 = vpop.permute.xlu0 %3908 }
 0x58e   :  { %v9354_v18 = vpack.c.bf16 %v5383_v31, %v5382_v7  ;;  %v3914_v34 = vpop.permute.xlu1 %3913 }
 0x58f   :  { %v5159_v63 = vpop.f32.mrb[84].mxu0 }
 0x590   :  { %v6351_v22 = vadd.f32 %v5159_v63, %v3889_v39  ;;  %v5161_v38 = vpop.f32.mrb[85].mxu0 }
 0x591   :  { %v5162_v52 = vpop.f32.mrb[86].mxu0 }
 0x592   :  { %v6352_v1 = vadd.f32 %v5162_v52, %v3894_v28  ;;  %v5164_v12 = vpop.f32.mrb[87].mxu0  ;;  %v5384_v27 = vmax.f32 %v6351_v22, 0.0 }
 0x594   :  { %v5385_v9 = vmax.f32 %v6352_v1, 0.0 }
 0x596   :  { %v9358_v42 = vpack.c.bf16 %v5385_v9, %v5384_v27 }
 0x597   :  { %v5167_v36 = vpop.f32.mrb[88].mxu0 }
 0x598   :  { %v6353_v20 = vadd.f32 %v5167_v36, %v3899_v8  ;;  %v5169_v46 = vpop.f32.mrb[89].mxu0 }
 0x599   :  { %v5170_v6 = vpop.f32.mrb[90].mxu0 }
 0x59a   :  { %v6354_v43 = vadd.f32 %v5170_v6, %v3904_v48  ;;  %v5172_v37 = vpop.f32.mrb[91].mxu0  ;;  %v5386_v61 = vmax.f32 %v6353_v20, 0.0 }
 0x59c   :  { %v5387_v3 = vmax.f32 %v6354_v43, 0.0 }
 0x59e   :  { %v9364_v32 = vpack.c.bf16 %v5387_v3, %v5386_v61 }
 0x59f   :  { %v5175_v21 = vpop.f32.mrb[92].mxu0 }
 0x5a0   :  { %v6355_v16 = vadd.f32 %v5175_v21, %v3909_v10  ;;  %v5177_v53 = vpop.f32.mrb[93].mxu0 }
 0x5a1   :  { %v5178_v24 = vpop.f32.mrb[94].mxu0 }
 0x5a2   :  { %v6356_v57 = vadd.f32 %v5178_v24, %v3914_v34  ;;  %v5180_v26 = vpop.f32.mrb[95].mxu0  ;;  %v5388_v58 = vmax.f32 %v6355_v16, 0.0  ;;  %v9381_v16 = vpop.permute.xlu1 %4083 }
 0x5a4   :  { %v5389_v39 = vmax.f32 %v6356_v57, 0.0 }
 0x5a6   :  { %v9366_v25 = vpack.c.bf16 %v5389_v39, %v5388_v58  ;;  %v4004_v39 = vpop.permute.xlu1 %4003 }
 0x5a7   :  { %v5183_v49 = vpop.f32.mrb[96].mxu0 }
 0x5a8   :  { %v6357_v11 = vadd.f32 %v5183_v49, %v9258_v56  ;;  %v5185_v51 = vpop.f32.mrb[97].mxu0 }
 0x5a9   :  { %v5186_v28 = vpop.f32.mrb[98].mxu0 }
 0x5aa   :  { %v6358_v45 = vadd.f32 %v5186_v28, %v9260_v41  ;;  %v5188_v60 = vpop.f32.mrb[99].mxu0  ;;  %v5390_v55 = vmax.f32 %v6357_v11, 0.0 }
 0x5ac   :  { %v5391_v7 = vmax.f32 %v6358_v45, 0.0 }
 0x5ae   :  { %v5447_v31 = vpack.c.bf16 %v5391_v7, %v5390_v55 }
 0x5af   :  { %v5191_v63 = vpop.f32.mrb[100].mxu0 }
 0x5b0   :  { %v6359_v22 = vadd.f32 %v5191_v63, %v9271_v30  ;;  %v5193_v38 = vpop.f32.mrb[101].mxu0  ;;  %6047 = vmatprep.subr.bf16.mxu1 %v5447_v31 }
 0x5b1   :  { %v5194_v52 = vpop.f32.mrb[102].mxu0  ;;  %6048 = vmatpush3.bf16.msra.mxu1 %v9315_v14 }
 0x5b2   :  { %v6360_v1 = vadd.f32 %v5194_v52, %v9276_v0  ;;  %v5196_v12 = vpop.f32.mrb[103].mxu0  ;;  %v5392_v56 = vmax.f32 %v6359_v22, 0.0 }
 0x5b4   :  { %v5393_v8 = vmax.f32 %v6360_v1, 0.0 }
 0x5b6   :  { %v5448_v27 = vpack.c.bf16 %v5393_v8, %v5392_v56 }
 0x5b7   :  { %v5199_v9 = vpop.f32.mrb[104].mxu0 }
 0x5b8   :  { %v6361_v41 = vadd.f32 %v5199_v9, %v9284_v54  ;;  %v5201_v48 = vpop.f32.mrb[105].mxu0  ;;  %6049 = vmatprep.subr.bf16.mxu1 %v5448_v27 }
 0x5b9   :  { %v5202_v36 = vpop.f32.mrb[106].mxu0  ;;  %6050 = vmatpush3.bf16.msra.mxu1 %v9325_v23  ;;  %v9379_v23 = vpop.permute.xlu0 %4078 }
 0x5ba   :  { %v6362_v30 = vadd.f32 %v5202_v36, %v9286_v2  ;;  %v5204_v20 = vpop.f32.mrb[107].mxu0  ;;  %v5394_v46 = vmax.f32 %v6361_v41, 0.0 }
 0x5bc   :  { %v5395_v6 = vmax.f32 %v6362_v30, 0.0 }
 0x5be   :  { %v5449_v14 = vpack.c.bf16 %v5395_v6, %v5394_v46 }
 0x5bf   :  { %v5207_v43 = vpop.f32.mrb[108].mxu0 }
 0x5c0   :  { %v6363_v0 = vadd.f32 %v5207_v43, %v9303_v35  ;;  %v5209_v37 = vpop.f32.mrb[109].mxu0  ;;  %6051 = vmatprep.subr.bf16.mxu1 %v5449_v14 }
 0x5c1   :  { %v5210_v61 = vpop.f32.mrb[110].mxu0  ;;  %6052 = vmatpush3.bf16.msra.mxu1 %v9335_v47 }
 0x5c2   :  { %v6364_v54 = vadd.f32 %v5210_v61, %v9312_v59  ;;  %v5212_v3 = vpop.f32.mrb[111].mxu0  ;;  %v5396_v10 = vmax.f32 %v6363_v0, 0.0  ;;  %v3999_v59 = vpop.permute.xlu0 %3998 }
 0x5c4   :  { %v5397_v21 = vmax.f32 %v6364_v54, 0.0 }
 0x5c6   :  { %v5450_v2 = vpack.c.bf16 %v5397_v21, %v5396_v10  ;;  %v9387_v45 = vpop.permute.xlu0 %4088 }
 0x5c7   :  { %v5215_v53 = vpop.f32.mrb[112].mxu0 }
 0x5c8   :  { %v6365_v34 = vadd.f32 %v5215_v53, %v9323_v4  ;;  %v5217_v24 = vpop.f32.mrb[113].mxu0  ;;  %6053 = vmatprep.subr.bf16.mxu1 %v5450_v2 }
 0x5c9   :  { %v5218_v35 = vpop.f32.mrb[114].mxu0  ;;  %6054 = vmatpush3.bf16.msra.mxu1 %v9347_v13 }
 0x5ca   :  { %v6366_v47 = vadd.f32 %v5218_v35, %v9327_v29  ;;  %v5220_v57 = vpop.f32.mrb[115].mxu0  ;;  %v5398_v26 = vmax.f32 %v6365_v34, 0.0  ;;  %v9391_v29 = vpop.permute.xlu1 %4093 }
 0x5cb   :  { %v4009_v63 = vpop.permute.xlu0 %4008 }
 0x5cc   :  { %v5399_v58 = vmax.f32 %v6366_v47, 0.0 }
 0x5ce   :  { %v5451_v49 = vpack.c.bf16 %v5399_v58, %v5398_v26  ;;  %v4014_v52 = vpop.permute.xlu1 %4013 }
 0x5cf   :  { %v5223_v11 = vpop.f32.mrb[116].mxu0  ;;  %v9396_v8 = vpop.permute.xlu0 %4098 }
 0x5d0   :  { %v6367_v51 = vadd.f32 %v5223_v11, %v9340_v62  ;;  %v5225_v28 = vpop.f32.mrb[117].mxu0  ;;  %6055 = vmatprep.subr.bf16.mxu1 %v5451_v49 }
 0x5d1   :  { %v5226_v4 = vpop.f32.mrb[118].mxu0  ;;  %6056 = vmatpush3.bf16.msra.mxu1 %v9354_v18 }
 0x5d2   :  { %v6368_v13 = vadd.f32 %v5226_v4, %v9345_v17  ;;  %v5228_v60 = vpop.f32.mrb[119].mxu0  ;;  %v5400_v55 = vmax.f32 %v6367_v51, 0.0  ;;  %v9398_v9 = vpop.permute.xlu1 %4103 }
 0x5d4   :  { %v5401_v7 = vmax.f32 %v6368_v13, 0.0 }
 0x5d6   :  { %v5452_v31 = vpack.c.bf16 %v5401_v7, %v5400_v55  ;;  %v4024_v6 = vpop.permute.xlu1 %4023 }
 0x5d7   :  { %v5231_v22 = vpop.f32.mrb[120].mxu0 }
 0x5d8   :  { %v6369_v38 = vadd.f32 %v5231_v22, %v9352_v5  ;;  %v5233_v62 = vpop.f32.mrb[121].mxu0  ;;  %6057 = vmatprep.subr.bf16.mxu1 %v5452_v31 }
 0x5d9   :  { %v5234_v1 = vpop.f32.mrb[122].mxu0  ;;  %6058 = vmatpush3.bf16.msra.mxu1 %v9358_v42 }
 0x5da   :  { %v6370_v18 = vadd.f32 %v5234_v1, %v9356_v40  ;;  %v5236_v12 = vpop.f32.mrb[123].mxu0  ;;  %v5402_v17 = vmax.f32 %v6369_v38, 0.0  ;;  %v4019_v40 = vpop.permute.xlu0 %4018 }
 0x5db   :  { %v9408_v3 = vpop.permute.xlu1 %4113 }
 0x5dc   :  { %v5403_v56 = vmax.f32 %v6370_v18, 0.0 }
 0x5de   :  { %v5453_v27 = vpack.c.bf16 %v5403_v56, %v5402_v17  ;;  %v9403_v61 = vpop.permute.xlu0 %4108 }
 0x5df   :  { %v5239_v41 = vpop.f32.mrb[124].mxu0  ;;  %v4034_v47 = vpop.permute.xlu1 %4033 }
 0x5e0   :  { %v6371_v48 = vadd.f32 %v5239_v41, %v9360_v15  ;;  %v5241_v5 = vpop.f32.mrb[125].mxu0  ;;  %6059 = vmatprep.subr.bf16.mxu1 %v5453_v27 }
 0x5e1   :  { %v5242_v36 = vpop.f32.mrb[126].mxu0  ;;  %6060 = vmatpush3.bf16.msra.mxu1 %v9364_v32  ;;  %v5505_v32 = vcombine.high %v9308_v33, %v9308_v33 }
 0x5e2   :  { %v6372_v42 = vadd.f32 %v5242_v36, %v9362_v19  ;;  %v5244_v30 = vpop.f32.mrb[127].mxu0  ;;  %v5404_v20 = vmax.f32 %v6371_v48, 0.0  ;;  %v4029_v53 = vpop.permute.xlu0 %4028 }
 0x5e3   :  { %v9417_v49 = vpop.permute.xlu1 %4123 }
 0x5e4   :  { %v5405_v46 = vmax.f32 %v6372_v42, 0.0 }
 0x5e6   :  { %v5454_v14 = vpack.c.bf16 %v5405_v46, %v5404_v20  ;;  %v9413_v58 = vpop.permute.xlu0 %4118 }
 0x5e7   :  { %v5247_v43 = vpop.f32.mrb[128].mxu0 }
 0x5e8   :  { %v6373_v0 = vadd.f32 %v5247_v43, %v3999_v59  ;;  %v5249_v37 = vpop.f32.mrb[129].mxu0  ;;  %6061 = vmatprep.subr.bf16.mxu1 %v5454_v14 }
 0x5e9   :  { %v5250_v15 = vpop.f32.mrb[130].mxu0  ;;  %6062 = vmatpush3.bf16.msra.mxu1 %v9366_v25 }
 0x5ea   :  { %v6374_v54 = vadd.f32 %v5250_v15, %v4004_v39  ;;  %v5252_v19 = vpop.f32.mrb[131].mxu0  ;;  %v5406_v10 = vmax.f32 %v6373_v0, 0.0  ;;  %v4039_v55 = vpop.permute.xlu0 %4038 }
 0x5ec   :  { %v5407_v21 = vmax.f32 %v6374_v54, 0.0  ;;  %5543 = vmatmul.mubr.bf16.vlgmr.msra.gmra.mrb[180].mxu1 %v9310_v44 }
 0x5ed   :  { %5582 = vmatprep.mubr.bf16.mxu1 %v5505_v32 }
 0x5ee   :  { %v9411_v2 = vpack.c.bf16 %v5407_v21, %v5406_v10  ;;  %v9421_v1 = vpop.permute.xlu0 %4128 }
 0x5ef   :  { %v5255_v34 = vpop.f32.mrb[132].mxu0 }
 0x5f0   :  { %v6375_v24 = vadd.f32 %v5255_v34, %v4009_v63  ;;  %v5257_v35 = vpop.f32.mrb[133].mxu0  ;;  %v4044_v63 = vpop.permute.xlu1 %4043 }
 0x5f1   :  { %v5258_v25 = vpop.f32.mrb[134].mxu0 }
 0x5f2   :  { %v6376_v57 = vadd.f32 %v5258_v25, %v4014_v52  ;;  %v5260_v59 = vpop.f32.mrb[135].mxu0  ;;  %v5408_v33 = vmax.f32 %v6375_v24, 0.0  ;;  %v4049_v5 = vpop.permute.xlu0 %4048 }
 0x5f4   :  { %v5409_v26 = vmax.f32 %v6376_v57, 0.0  ;;  %v9423_v56 = vpop.permute.xlu1 %4133 }
 0x5f6   :  { %v9415_v39 = vpack.c.bf16 %v5409_v26, %v5408_v33  ;;  %v9427_v0 = vpop.permute.xlu0 %4138 }
 0x5f7   :  { %v5263_v11 = vpop.f32.mrb[136].mxu0 }
 0x5f8   :  { %v6377_v51 = vadd.f32 %v5263_v11, %v4019_v40  ;;  %v5265_v28 = vpop.f32.mrb[137].mxu0  ;;  %v4054_v40 = vpop.permute.xlu1 %4053 }
 0x5f9   :  { %v5266_v4 = vpop.f32.mrb[138].mxu0 }
 0x5fa   :  { %v6378_v13 = vadd.f32 %v5266_v4, %v4024_v6  ;;  %v5268_v60 = vpop.f32.mrb[139].mxu0  ;;  %v5410_v7 = vmax.f32 %v6377_v51, 0.0  ;;  %v4059_v34 = vpop.permute.xlu0 %4058 }
 0x5fc   :  { %v5411_v31 = vmax.f32 %v6378_v13, 0.0  ;;  %v9431_v15 = vpop.permute.xlu1 %4143 }
 0x5fe   :  { %v9419_v22 = vpack.c.bf16 %v5411_v31, %v5410_v7  ;;  %v9435_v26 = vpop.permute.xlu0 %4148 }
 0x5ff   :  { %v5271_v38 = vpop.f32.mrb[140].mxu0 }
 0x600   :  { %v6379_v62 = vadd.f32 %v5271_v38, %v4029_v53  ;;  %v5273_v52 = vpop.f32.mrb[141].mxu0 }
 0x601   :  { %v5274_v18 = vpop.f32.mrb[142].mxu0 }
 0x602   :  { %v6380_v12 = vadd.f32 %v5274_v18, %v4034_v47  ;;  %v5276_v17 = vpop.f32.mrb[143].mxu0  ;;  %v5412_v27 = vmax.f32 %v6379_v62, 0.0  ;;  %v4064_v47 = vpop.permute.xlu1 %4063 }
 0x603   :  { %v4069_v7 = vpop.permute.xlu0 %4068 }
 0x604   :  { %v5413_v41 = vmax.f32 %v6380_v12, 0.0 }
 0x606   :  { %v9425_v48 = vpack.c.bf16 %v5413_v41, %v5412_v27  ;;  %v9437_v4 = vpop.permute.xlu1 %4153 }
 0x607   :  { %v5279_v36 = vpop.f32.mrb[144].mxu0 }
 0x608   :  { %v6381_v42 = vadd.f32 %v5279_v36, %v4039_v55  ;;  %v5281_v30 = vpop.f32.mrb[145].mxu0 }
 0x609   :  { %v5282_v20 = vpop.f32.mrb[146].mxu0 }
 0x60a   :  { %v6382_v46 = vadd.f32 %v5282_v20, %v4044_v63  ;;  %v5284_v6 = vpop.f32.mrb[147].mxu0  ;;  %v5414_v14 = vmax.f32 %v6381_v42, 0.0  ;;  %v4074_v62 = vpop.permute.xlu1 %4073 }
 0x60c   :  { %v5415_v43 = vmax.f32 %v6382_v46, 0.0 }
 0x60e   :  { %v9429_v37 = vpack.c.bf16 %v5415_v43, %v5414_v14 }
 0x60f   :  { %v5287_v32 = vpop.f32.mrb[148].mxu0 }
 0x610   :  { %v6383_v54 = vadd.f32 %v5287_v32, %v4049_v5  ;;  %v5289_v19 = vpop.f32.mrb[149].mxu0 }
 0x611   :  { %v5290_v10 = vpop.f32.mrb[150].mxu0 }
 0x612   :  { %v6384_v21 = vadd.f32 %v5290_v10, %v4054_v40  ;;  %v5292_v53 = vpop.f32.mrb[151].mxu0  ;;  %v5416_v24 = vmax.f32 %v6383_v54, 0.0 }
 0x614   :  { %v5417_v35 = vmax.f32 %v6384_v21, 0.0 }
 0x616   :  { %v9433_v25 = vpack.c.bf16 %v5417_v35, %v5416_v24 }
 0x617   :  { %v5295_v57 = vpop.f32.mrb[152].mxu0 }
 0x618   :  { %v6385_v59 = vadd.f32 %v5295_v57, %v4059_v34  ;;  %v5297_v33 = vpop.f32.mrb[153].mxu0 }
 0x619   :  { %v5298_v11 = vpop.f32.mrb[154].mxu0 }
 0x61a   :  { %v6386_v51 = vadd.f32 %v5298_v11, %v4064_v47  ;;  %v5300_v28 = vpop.f32.mrb[155].mxu0  ;;  %v5418_v13 = vmax.f32 %v6385_v59, 0.0 }
 0x61c   :  { %v5419_v60 = vmax.f32 %v6386_v51, 0.0 }
 0x61e   :  { %v9439_v55 = vpack.c.bf16 %v5419_v60, %v5418_v13 }
 0x61f   :  { %v5303_v31 = vpop.f32.mrb[156].mxu0 }
 0x620   :  { %v6387_v63 = vadd.f32 %v5303_v31, %v4069_v7  ;;  %v5305_v38 = vpop.f32.mrb[157].mxu0 }
 0x621   :  { %v5306_v52 = vpop.f32.mrb[158].mxu0 }
 0x622   :  { %v6388_v18 = vadd.f32 %v5306_v52, %v4074_v62  ;;  %v5308_v12 = vpop.f32.mrb[159].mxu0  ;;  %v5420_v17 = vmax.f32 %v6387_v63, 0.0 }
 0x624   :  { %v5421_v27 = vmax.f32 %v6388_v18, 0.0 }
 0x626   :  { %v9441_v41 = vpack.c.bf16 %v5421_v27, %v5420_v17 }
 0x627   :  { %v5311_v5 = vpop.f32.mrb[160].mxu0 }
 0x628   :  { %v6389_v36 = vadd.f32 %v5311_v5, %v9379_v23  ;;  %v5313_v42 = vpop.f32.mrb[161].mxu0 }
 0x629   :  { %v5314_v30 = vpop.f32.mrb[162].mxu0 }
 0x62a   :  { %v6390_v40 = vadd.f32 %v5314_v30, %v9381_v16  ;;  %v5316_v20 = vpop.f32.mrb[163].mxu0  ;;  %v5422_v46 = vmax.f32 %v6389_v36, 0.0 }
 0x62c   :  { %v5423_v6 = vmax.f32 %v6390_v40, 0.0 }
 0x62e   :  { %v5463_v14 = vpack.c.bf16 %v5423_v6, %v5422_v46 }
 0x62f   :  { %v5319_v43 = vpop.f32.mrb[164].mxu0 }
 0x630   :  { %v6391_v32 = vadd.f32 %v5319_v43, %v9387_v45  ;;  %v5321_v54 = vpop.f32.mrb[165].mxu0  ;;  %6069 = vmatprep.subr.bf16.mxu1 %v5463_v14 }
 0x631   :  { %v5322_v19 = vpop.f32.mrb[166].mxu0  ;;  %6070 = vmatpush3.bf16.msra.mxu1 %v9411_v2 }
 0x632   :  { %v6392_v10 = vadd.f32 %v5322_v19, %v9391_v29  ;;  %v5324_v21 = vpop.f32.mrb[167].mxu0  ;;  %v5424_v23 = vmax.f32 %v6391_v32, 0.0 }
 0x634   :  { %v5425_v53 = vmax.f32 %v6392_v10, 0.0 }
 0x636   :  { %v5464_v34 = vpack.c.bf16 %v5425_v53, %v5424_v23 }
 0x637   :  { %v5327_v24 = vpop.f32.mrb[168].mxu0 }
 0x638   :  { %v6393_v16 = vadd.f32 %v5327_v24, %v9396_v8  ;;  %v5329_v35 = vpop.f32.mrb[169].mxu0  ;;  %6071 = vmatprep.subr.bf16.mxu1 %v5464_v34 }
 0x639   :  { %v5330_v47 = vpop.f32.mrb[170].mxu0  ;;  %6072 = vmatpush3.bf16.msra.mxu1 %v9415_v39 }
 0x63a   :  { %v6394_v45 = vadd.f32 %v5330_v47, %v9398_v9  ;;  %v5332_v57 = vpop.f32.mrb[171].mxu0  ;;  %v5426_v59 = vmax.f32 %v6393_v16, 0.0  ;;  %v5475_v16 = vpop.permute.xlu0 %5474 }
 0x63c   :  { %v5427_v33 = vmax.f32 %v6394_v45, 0.0 }
 0x63e   :  { %v5465_v2 = vpack.c.bf16 %v5427_v33, %v5426_v59 }
 0x63f   :  { %v5335_v11 = vpop.f32.mrb[172].mxu0 }
 0x640   :  { %v6395_v29 = vadd.f32 %v5335_v11, %v9403_v61  ;;  %v5337_v51 = vpop.f32.mrb[173].mxu0  ;;  %6073 = vmatprep.subr.bf16.mxu1 %v5465_v2 }
 0x641   :  { %v5338_v28 = vpop.f32.mrb[174].mxu0  ;;  %6074 = vmatpush3.bf16.msra.mxu1 %v9419_v22 }
 0x642   :  { %v6396_v8 = vadd.f32 %v5338_v28, %v9408_v3  ;;  %v5340_v13 = vpop.f32.mrb[175].mxu0  ;;  %v5428_v60 = vmax.f32 %v6395_v29, 0.0 }
 0x644   :  { %v5429_v7 = vmax.f32 %v6396_v8, 0.0 }
 0x646   :  { %v5466_v39 = vpack.c.bf16 %v5429_v7, %v5428_v60 }
 0x647   :  { %v5343_v31 = vpop.f32.mrb[176].mxu0 }
 0x648   :  { %v6397_v9 = vadd.f32 %v5343_v31, %v9413_v58  ;;  %v5345_v63 = vpop.f32.mrb[177].mxu0  ;;  %6075 = vmatprep.subr.bf16.mxu1 %v5466_v39 }
 0x649   :  { %v5346_v38 = vpop.f32.mrb[178].mxu0  ;;  %6076 = vmatpush3.bf16.msra.mxu1 %v9425_v48 }
 0x64a   :  { %v6398_v61 = vadd.f32 %v5346_v38, %v9417_v49  ;;  %v5348_v62 = vpop.f32.mrb[179].mxu0  ;;  %v5430_v52 = vmax.f32 %v6397_v9, 0.0 }
 0x64c   :  { %v5431_v18 = vmax.f32 %v6398_v61, 0.0 }
 0x64e   :  { %v5467_v22 = vpack.c.bf16 %v5431_v18, %v5430_v52 }
 0x64f   :  { %v5351_v12 = vpop.f32.mrb[180].mxu0 }
 0x650   :  { %v6399_v3 = vadd.f32 %v5351_v12, %v9421_v1  ;;  %v5353_v17 = vpop.f32.mrb[181].mxu0  ;;  %6077 = vmatprep.subr.bf16.mxu1 %v5467_v22 }
 0x651   :  { %v5354_v27 = vpop.f32.mrb[182].mxu0  ;;  %6078 = vmatpush3.bf16.msra.mxu1 %v9429_v37 }
 0x652   :  { %v6400_v58 = vadd.f32 %v5354_v27, %v9423_v56  ;;  %v5356_v5 = vpop.f32.mrb[183].mxu0  ;;  %v5432_v36 = vmax.f32 %v6399_v3, 0.0 }
 0x654   :  { %v5433_v42 = vmax.f32 %v6400_v58, 0.0 }
 0x656   :  { %v5468_v48 = vpack.c.bf16 %v5433_v42, %v5432_v36 }
 0x657   :  { %v5359_v30 = vpop.f32.mrb[184].mxu0 }
 0x658   :  { %v6401_v49 = vadd.f32 %v5359_v30, %v9427_v0  ;;  %v5361_v40 = vpop.f32.mrb[185].mxu0  ;;  %6079 = vmatprep.subr.bf16.mxu1 %v5468_v48 }
 0x659   :  { %v5362_v20 = vpop.f32.mrb[186].mxu0  ;;  %6080 = vmatpush3.bf16.msra.mxu1 %v9433_v25 }
 0x65a   :  { %v6402_v1 = vadd.f32 %v5362_v20, %v9431_v15  ;;  %v5364_v46 = vpop.f32.mrb[187].mxu0  ;;  %v5434_v6 = vmax.f32 %v6401_v49, 0.0  ;;  %v5504_v15 = vcombine.high %v9310_v44, %v9310_v44 }
 0x65c   :  { %v5435_v14 = vmax.f32 %v6402_v1, 0.0 }
 0x65e   :  { %v5469_v37 = vpack.c.bf16 %v5435_v14, %v5434_v6 }
 0x65f   :  { %v5367_v43 = vpop.f32.mrb[188].mxu0 }
 0x660   :  { %v6403_v56 = vadd.f32 %v5367_v43, %v9435_v26  ;;  %v5369_v32 = vpop.f32.mrb[189].mxu0  ;;  %6081 = vmatprep.subr.bf16.mxu1 %v5469_v37 }
 0x661   :  { %v5370_v54 = vpop.f32.mrb[190].mxu0  ;;  %6082 = vmatpush3.bf16.msra.mxu1 %v9439_v55  ;;  %v5479_v55 = vsub.s32 0, %v9294_v50 }
 0x662   :  { %v6404_v0 = vadd.f32 %v5370_v54, %v9437_v4  ;;  %v5372_v19 = vpop.f32.mrb[191].mxu0  ;;  %v5436_v10 = vmax.f32 %v6403_v56, 0.0 }
 0x663   :  { %v5480_v4 = vrot.slane %v5475_v16, %v5479_v55 }
 0x664   :  { %v5437_v21 = vmax.f32 %v6404_v0, 0.0 }
 0x666   :  { %v5470_v25 = vpack.c.bf16 %v5437_v21, %v5436_v10 }
 0x668   :  { %6083 = vmatprep.subr.bf16.mxu1 %v5470_v25 }
 0x669   :  { %6084 = vmatpush3.bf16.msra.mxu1 %v9441_v41 }
 0x66c   :  { %5583 = vmatmul.mubr.bf16.vlgmr.msra.gmra.mrb[184].mxu1 %v5504_v15 }
 0x6bf   :  { %v6063_v23 = vpop.f32.mrb[180].mxu1 }
 0x6c0   :  { %v6064_v26 = vpop.f32.mrb[181].mxu1 }
 0x6c1   :  { %v6065_v53 = vadd.f32 %v6064_v26, %v6063_v23  ;;  %v6066_v34 = vpop.f32.mrb[182].mxu1 }
 0x6c2   :  { %v6067_v24 = vpop.f32.mrb[183].mxu1 }
 0x6c3   :  { %v5545_v45 = vadd.f32 %v6065_v53, %v5480_v4 }
 0x73f   :  { %v6085_v35 = vpop.f32.mrb[184].mxu1 }
 0x740   :  { %v6086_v47 = vpop.f32.mrb[185].mxu1 }
 0x741   :  { %v6087_v57 = vadd.f32 %v6086_v47, %v6085_v35  ;;  %v6088_v59 = vpop.f32.mrb[186].mxu1 }
 0x742   :  { %v6089_v33 = vpop.f32.mrb[187].mxu1 }
 0x743   :  { %v5585_v2 = vadd.f32 %v6087_v57, %v5545_v45 }
 0x745   :  { %5590 = vst [vmem:[%s9484_s11] sm:$0x1] %v5585_v2 }

</bundles_post_ra>
